<compile_context>
chip_gen: v7x
topology: tpu7x:2x2x1
jax: 0.10.0
libtpu: 0.0.40
codegen_flags: <defaults>
</compile_context>

<pallas_src>
import functools
import math

import jax
import jax.numpy as jnp
from jax.experimental import pallas as pl
from jax.experimental.pallas import tpu as pltpu


MATMUL_DTYPE = jnp.float32   # switch to jnp.bfloat16 for large, compute-bound shapes
LN_EPS = 1e-5


# ----------------------------- in-kernel helpers ---------------------------- #

def _mm(a, b):
    return jnp.dot(a.astype(MATMUL_DTYPE), b.astype(MATMUL_DTYPE),
                   preferred_element_type=jnp.float32)


def _qk(a, b):
    # (Tq, dh) x (Tk, dh) contracted on dh -> (Tq, Tk); no explicit transpose.
    return jax.lax.dot_general(
        a.astype(MATMUL_DTYPE), b.astype(MATMUL_DTYPE),
        (((1,), (1,)), ((), ())),
        preferred_element_type=jnp.float32)


def _add_layernorm(x, res, g, b):
    # LayerNorm(x + residual) over the last dim (biased variance, like torch).
    h = x + res
    mu = jnp.mean(h, axis=-1, keepdims=True)
    var = jnp.mean((h - mu) ** 2, axis=-1, keepdims=True)
    return (h - mu) * jax.lax.rsqrt(var + LN_EPS) * g + b


def _attend(q, k, v, keep, n_heads, scale):
    # q: (Tq, D), k/v: (Tk, D); keep: boolean (Tq, Tk) already broadcast.
    # Heads split via static lane slices; per-head probs returned so the caller
    # can (optionally) store only the last layer's probabilities.
    D = q.shape[-1]
    dh = D // n_heads
    q = q * jnp.float32(scale)                    # fold scale in once
    ctx_parts, prob_parts = [], []
    for h in range(n_heads):
        sl = slice(h * dh, (h + 1) * dh)
        s = _qk(q[:, sl], k[:, sl])
        s = jnp.where(keep, s, jnp.float32(-1e10))
        s = s - jnp.max(s, axis=-1, keepdims=True)          # stable softmax
        e = jnp.exp(s)
        p = e * pl.reciprocal(jnp.sum(e, axis=-1, keepdims=True), approx=True)
        prob_parts.append(p)
        ctx_parts.append(_mm(p, v[:, sl]))
    return jnp.concatenate(ctx_parts, axis=-1), prob_parts


# ------------------------------ fused kernel -------------------------------- #

def _decoder_kernel(trg_ref, src_ref, trg_mask_ref, src_mask_ref,
                    s_wqkv_ref, s_bqkv_ref, s_wo_ref, s_bo_ref,
                    c_wq_ref, c_bq_ref, c_wkv_ref, c_bkv_ref, c_wo_ref, c_bo_ref,
                    ln_g_ref, ln_b_ref,
                    f_w1_ref, f_b1_ref, f_w2_ref, f_b2_ref,
                    w_out_ref, b_out_ref,
                    out_ref, self_p_ref, cross_p_ref,
                    *, n_layers, n_heads):
    D = trg_ref.shape[-1]
    dh = D // n_heads
    scale = 1.0 / math.sqrt(dh)

    x = trg_ref[0]                      # (Tq, D)
    src = src_ref[0]                    # (Tk, D)
    Tq = x.shape[0]
    Tk = src.shape[0]

    # Hoisted mask processing (constant across layers & heads).
    trg_keep = jnp.broadcast_to(trg_mask_ref[0, 0] > 0, (Tq, Tq))   # (Tq, Tq)
    src_keep = jnp.broadcast_to(src_mask_ref[0, 0] > 0, (Tq, Tk))   # (Tq, Tk)

    for l in range(n_layers):
        # ---- masked self attention (fused QKV projection) ----
        qkv = _mm(x, s_wqkv_ref[l]) + s_bqkv_ref[l]                   # (Tq, 3D)
        ctx, self_probs = _attend(qkv[:, :D], qkv[:, D:2 * D], qkv[:, 2 * D:],
                                  trg_keep, n_heads, scale)
        attn = _mm(ctx, s_wo_ref[l]) + s_bo_ref[l]
        x = _add_layernorm(attn, x, ln_g_ref[l, 0], ln_b_ref[l, 0])

        # ---- cross attention (fused K/V projection) ----
        q = _mm(x, c_wq_ref[l]) + c_bq_ref[l]                         # (Tq, D)
        kv = _mm(src, c_wkv_ref[l]) + c_bkv_ref[l]                    # (Tk, 2D)
        ctx, cross_probs = _attend(q, kv[:, :D], kv[:, D:], src_keep,
                                   n_heads, scale)
        attn = _mm(ctx, c_wo_ref[l]) + c_bo_ref[l]
        x = _add_layernorm(attn, x, ln_g_ref[l, 1], ln_b_ref[l, 1])

        # ---- feed-forward ----
        hid = jnp.maximum(_mm(x, f_w1_ref[l]) + f_b1_ref[l], 0.0)     # ReLU
        ffn = _mm(hid, f_w2_ref[l]) + f_b2_ref[l]
        x = _add_layernorm(ffn, x, ln_g_ref[l, 2], ln_b_ref[l, 2])

        # Only the last layer's attention probs are live -> only those hit HBM.
        if l == n_layers - 1:
            for hh in range(n_heads):
                self_p_ref[0, hh] = self_probs[hh]
                cross_p_ref[0, hh] = cross_probs[hh]

    # ---- final vocab projection (lane-padded, unmasked store) ----
    out_ref[0] = _mm(x, w_out_ref[...]) + b_out_ref[...]


# ------------------------------ host wrapper -------------------------------- #

def _rep_spec(shape):
    """BlockSpec for a weight replicated across the batch grid (loaded once)."""
    nd = len(shape)

    def idx(b):
        return (0,) * nd

    return pl.BlockSpec(shape, idx)


@functools.partial(jax.jit, static_argnums=(5, 6))
def decoder_forward(trg, src, trg_mask, src_mask, params, n_heads, vocab_size):
    B, Tq, D = trg.shape
    Tk = src.shape[1]
    L = params["self_wqkv"].shape[0]
    Vpad = params["w_out"].shape[1]

    w_names = ["self_wqkv", "self_bqkv", "self_wo", "self_bo",
               "cross_wq", "cross_bq", "cross_wkv", "cross_bkv",
               "cross_wo", "cross_bo",
               "ln_g", "ln_b",
               "ffn_w1", "ffn_b1", "ffn_w2", "ffn_b2",
               "w_out", "b_out"]
    weights = [params[n] for n in w_names]

    in_specs = [
        pl.BlockSpec((1, Tq, D), lambda b: (b, 0, 0)),
        pl.BlockSpec((1, Tk, D), lambda b: (b, 0, 0)),
        pl.BlockSpec((1, 1, Tq, Tq), lambda b: (b, 0, 0, 0)),
        pl.BlockSpec((1, 1, 1, Tk), lambda b: (b, 0, 0, 0)),
    ] + [_rep_spec(w.shape) for w in weights]

    out_shape = (
        jax.ShapeDtypeStruct((B, Tq, Vpad), jnp.float32),
        jax.ShapeDtypeStruct((B, n_heads, Tq, Tq), jnp.float32),
        jax.ShapeDtypeStruct((B, n_heads, Tq, Tk), jnp.float32),
    )
    out_specs = (
        pl.BlockSpec((1, Tq, Vpad), lambda b: (b, 0, 0)),
        pl.BlockSpec((1, n_heads, Tq, Tq), lambda b: (b, 0, 0, 0)),
        pl.BlockSpec((1, n_heads, Tq, Tk), lambda b: (b, 0, 0, 0)),
    )

    kern = functools.partial(_decoder_kernel, n_layers=L, n_heads=n_heads)

    dec_pad, masked_probs, cross_probs = pl.pallas_call(
        kern,
        out_shape=out_shape,
        grid=(B,),
        in_specs=in_specs,
        out_specs=out_specs,
        compiler_params=pltpu.CompilerParams(
            dimension_semantics=("parallel",),        # megacore split on v7x
            vmem_limit_bytes=32 * 1024 * 1024,
        ),
    )(trg, src, trg_mask, src_mask, *weights)

    dec_out = dec_pad[:, :, :vocab_size]
    # Match reference exposure: (dec_out, attention_probs, masked_attention_probs)
    return dec_out, cross_probs, masked_probs


# ----------------------------- parameter init ------------------------------- #

def init_params(key, vocab_size, d_model, d_ffn, n_heads, n_layers):
    def lin(k, din, dout):
        kw, kb = jax.random.split(k)
        return (0.02 * jax.random.normal(kw, (din, dout), jnp.float32),
                0.02 * jax.random.normal(kb, (dout,), jnp.float32))

    s_wqkv, s_bqkv, s_wo, s_bo = [], [], [], []
    c_wq, c_bq, c_wkv, c_bkv, c_wo, c_bo = [], [], [], [], [], []
    ln_g, ln_b = [], []
    f_w1, f_b1, f_w2, f_b2 = [], [], [], []

    for _ in range(n_layers):
        key, *ks = jax.random.split(key, 11)
        wq, bq = lin(ks[0], d_model, d_model)
        wk, bk = lin(ks[1], d_model, d_model)
        wv, bv = lin(ks[2], d_model, d_model)
        wo, bo = lin(ks[3], d_model, d_model)
        cwq, cbq = lin(ks[4], d_model, d_model)
        cwk, cbk = lin(ks[5], d_model, d_model)
        cwv, cbv = lin(ks[6], d_model, d_model)
        cwo, cbo = lin(ks[7], d_model, d_model)
        w1, b1 = lin(ks[8], d_model, d_ffn)
        w2, b2 = lin(ks[9], d_ffn, d_model)

        s_wqkv.append(jnp.concatenate([wq, wk, wv], axis=1))
        s_bqkv.append(jnp.concatenate([bq, bk, bv])[None, :])
        s_wo.append(wo)
        s_bo.append(bo[None, :])
        c_wq.append(cwq)
        c_bq.append(cbq[None, :])
        c_wkv.append(jnp.concatenate([cwk, cwv], axis=1))
        c_bkv.append(jnp.concatenate([cbk, cbv])[None, :])
        c_wo.append(cwo)
        c_bo.append(cbo[None, :])
        ln_g.append(jnp.ones((3, 1, d_model), jnp.float32))
        ln_b.append(jnp.zeros((3, 1, d_model), jnp.float32))
        f_w1.append(w1)
        f_b1.append(b1[None, :])
        f_w2.append(w2)
        f_b2.append(b2[None, :])

    key, ko = jax.random.split(key)
    w_o, b_o = lin(ko, d_model, vocab_size)
    vpad = ((vocab_size + 127) // 128) * 128
    w_o = jnp.pad(w_o, ((0, 0), (0, vpad - vocab_size)))
    b_o = jnp.pad(b_o, (0, vpad - vocab_size))[None, :]

    stack = lambda xs: jnp.stack(xs, axis=0)
    return dict(
        self_wqkv=stack(s_wqkv), self_bqkv=stack(s_bqkv),
        self_wo=stack(s_wo), self_bo=stack(s_bo),
        cross_wq=stack(c_wq), cross_bq=stack(c_bq),
        cross_wkv=stack(c_wkv), cross_bkv=stack(c_bkv),
        cross_wo=stack(c_wo), cross_bo=stack(c_bo),
        ln_g=stack(ln_g), ln_b=stack(ln_b),
        ffn_w1=stack(f_w1), ffn_b1=stack(f_b1),
        ffn_w2=stack(f_w2), ffn_b2=stack(f_b2),
        w_out=w_o, b_out=b_o,
    )


# --------------------------------- main -------------------------------------- #

if __name__ == "__main__":
    B, T_trg, T_src = 2, 8, 8
    d_model, d_ffn, n_heads, n_layers, vocab_size = 32, 64, 4, 2, 50

    key = jax.random.PRNGKey(0)
    k_trg, k_src, k_par = jax.random.split(key, 3)
    trg = jax.random.normal(k_trg, (B, T_trg, d_model), jnp.float32)
    src = jax.random.normal(k_src, (B, T_src, d_model), jnp.float32)
    trg_mask = jnp.broadcast_to(
        jnp.tril(jnp.ones((T_trg, T_trg), jnp.float32))[None, None],
        (B, 1, T_trg, T_trg))
    src_mask = jnp.ones((B, 1, 1, T_src), jnp.float32)

    params = init_params(k_par, vocab_size, d_model, d_ffn, n_heads, n_layers)

    dec_out, attn_probs, masked_attn_probs = decoder_forward(
        trg, src, trg_mask, src_mask, params, n_heads, vocab_size)

    jax.block_until_ready(dec_out)
    jax.block_until_ready(attn_probs)
    jax.block_until_ready(masked_attn_probs)

    assert dec_out.shape == (B, T_trg, vocab_size)
    assert attn_probs.shape == (B, n_heads, T_trg, T_src)
    assert masked_attn_probs.shape == (B, n_heads, T_trg, T_trg)
    assert bool(jnp.all(jnp.isfinite(dec_out)))
    assert bool(jnp.all(jnp.isfinite(attn_probs)))
    assert bool(jnp.all(jnp.isfinite(masked_attn_probs)))
    print("KERNEL_OK")
</pallas_src>

<mosaic_0001>
module attributes {stable_mosaic.version = 11 : i64} {
  func.func @_decoder_kernel(%arg0: i32, %arg1: memref<1x8x32xf32, #tpu.memory_space<vmem>>, %arg2: memref<1x8x32xf32, #tpu.memory_space<vmem>>, %arg3: memref<1x1x8x8xf32, #tpu.memory_space<vmem>>, %arg4: memref<1x1x1x8xf32, #tpu.memory_space<vmem>>, %arg5: memref<2x32x96xf32, #tpu.memory_space<vmem>>, %arg6: memref<2x1x96xf32, #tpu.memory_space<vmem>>, %arg7: memref<2x32x32xf32, #tpu.memory_space<vmem>>, %arg8: memref<2x1x32xf32, #tpu.memory_space<vmem>>, %arg9: memref<2x32x32xf32, #tpu.memory_space<vmem>>, %arg10: memref<2x1x32xf32, #tpu.memory_space<vmem>>, %arg11: memref<2x32x64xf32, #tpu.memory_space<vmem>>, %arg12: memref<2x1x64xf32, #tpu.memory_space<vmem>>, %arg13: memref<2x32x32xf32, #tpu.memory_space<vmem>>, %arg14: memref<2x1x32xf32, #tpu.memory_space<vmem>>, %arg15: memref<2x3x1x32xf32, #tpu.memory_space<vmem>>, %arg16: memref<2x3x1x32xf32, #tpu.memory_space<vmem>>, %arg17: memref<2x32x64xf32, #tpu.memory_space<vmem>>, %arg18: memref<2x1x64xf32, #tpu.memory_space<vmem>>, %arg19: memref<2x64x32xf32, #tpu.memory_space<vmem>>, %arg20: memref<2x1x32xf32, #tpu.memory_space<vmem>>, %arg21: memref<32x128xf32, #tpu.memory_space<vmem>>, %arg22: memref<1x128xf32, #tpu.memory_space<vmem>>, %arg23: memref<1x8x128xf32, #tpu.memory_space<vmem>>, %arg24: memref<1x4x8x8xf32, #tpu.memory_space<vmem>>, %arg25: memref<1x4x8x8xf32, #tpu.memory_space<vmem>>) attributes {dimension_semantics = [#tpu.dimension_semantics<parallel>], iteration_bounds = array<i64: 2>, scalar_prefetch = 0 : i64, scratch_operands = 0 : i64, tpu.core_type = #tpu.core_type<tc>, window_params = [{transform_indices = @transform_0, window_bounds = array<i64: 1, 8, 32>}, {transform_indices = @transform_1, window_bounds = array<i64: 1, 8, 32>}, {transform_indices = @transform_2, window_bounds = array<i64: 1, 1, 8, 8>}, {transform_indices = @transform_3, window_bounds = array<i64: 1, 1, 1, 8>}, {pipeline_mode = #tpu.pipeline_mode<synchronous>, transform_indices = @transform_4, window_bounds = array<i64: 2, 32, 96>}, {pipeline_mode = #tpu.pipeline_mode<synchronous>, transform_indices = @transform_5, window_bounds = array<i64: 2, 1, 96>}, {pipeline_mode = #tpu.pipeline_mode<synchronous>, transform_indices = @transform_6, window_bounds = array<i64: 2, 32, 32>}, {pipeline_mode = #tpu.pipeline_mode<synchronous>, transform_indices = @transform_7, window_bounds = array<i64: 2, 1, 32>}, {pipeline_mode = #tpu.pipeline_mode<synchronous>, transform_indices = @transform_8, window_bounds = array<i64: 2, 32, 32>}, {pipeline_mode = #tpu.pipeline_mode<synchronous>, transform_indices = @transform_9, window_bounds = array<i64: 2, 1, 32>}, {pipeline_mode = #tpu.pipeline_mode<synchronous>, transform_indices = @transform_10, window_bounds = array<i64: 2, 32, 64>}, {pipeline_mode = #tpu.pipeline_mode<synchronous>, transform_indices = @transform_11, window_bounds = array<i64: 2, 1, 64>}, {pipeline_mode = #tpu.pipeline_mode<synchronous>, transform_indices = @transform_12, window_bounds = array<i64: 2, 32, 32>}, {pipeline_mode = #tpu.pipeline_mode<synchronous>, transform_indices = @transform_13, window_bounds = array<i64: 2, 1, 32>}, {pipeline_mode = #tpu.pipeline_mode<synchronous>, transform_indices = @transform_14, window_bounds = array<i64: 2, 3, 1, 32>}, {pipeline_mode = #tpu.pipeline_mode<synchronous>, transform_indices = @transform_15, window_bounds = array<i64: 2, 3, 1, 32>}, {pipeline_mode = #tpu.pipeline_mode<synchronous>, transform_indices = @transform_16, window_bounds = array<i64: 2, 32, 64>}, {pipeline_mode = #tpu.pipeline_mode<synchronous>, transform_indices = @transform_17, window_bounds = array<i64: 2, 1, 64>}, {pipeline_mode = #tpu.pipeline_mode<synchronous>, transform_indices = @transform_18, window_bounds = array<i64: 2, 64, 32>}, {pipeline_mode = #tpu.pipeline_mode<synchronous>, transform_indices = @transform_19, window_bounds = array<i64: 2, 1, 32>}, {pipeline_mode = #tpu.pipeline_mode<synchronous>, transform_indices = @transform_20, window_bounds = array<i64: 32, 128>}, {pipeline_mode = #tpu.pipeline_mode<synchronous>, transform_indices = @transform_21, window_bounds = array<i64: 1, 128>}, {transform_indices = @transform_22, window_bounds = array<i64: 1, 8, 128>}, {transform_indices = @transform_23, window_bounds = array<i64: 1, 4, 8, 8>}, {transform_indices = @transform_24, window_bounds = array<i64: 1, 4, 8, 8>}]} {
    %c0 = arith.constant 0 : index
    %c0_0 = arith.constant 0 : index
    %c0_1 = arith.constant 0 : index
    %0 = vector.load %arg1[%c0, %c0_0, %c0_1] : memref<1x8x32xf32, #tpu.memory_space<vmem>>, vector<1x8x32xf32>
    %1 = vector.shape_cast %0 : vector<1x8x32xf32> to vector<8x32xf32>
    %c0_2 = arith.constant 0 : index
    %c0_3 = arith.constant 0 : index
    %c0_4 = arith.constant 0 : index
    %2 = vector.load %arg2[%c0_2, %c0_3, %c0_4] : memref<1x8x32xf32, #tpu.memory_space<vmem>>, vector<1x8x32xf32>
    %3 = vector.shape_cast %2 : vector<1x8x32xf32> to vector<8x32xf32>
    %c0_5 = arith.constant 0 : index
    %c0_6 = arith.constant 0 : index
    %c0_7 = arith.constant 0 : index
    %c0_8 = arith.constant 0 : index
    %4 = vector.load %arg3[%c0_5, %c0_6, %c0_7, %c0_8] : memref<1x1x8x8xf32, #tpu.memory_space<vmem>>, vector<1x1x8x8xf32>
    %5 = vector.shape_cast %4 : vector<1x1x8x8xf32> to vector<8x8xf32>
    %cst = arith.constant 0.000000e+00 : f32
    %6 = vector.broadcast %cst : f32 to vector<8x8xf32>
    %7 = arith.cmpf ogt, %5, %6 : vector<8x8xf32>
    %c0_9 = arith.constant 0 : index
    %c0_10 = arith.constant 0 : index
    %c0_11 = arith.constant 0 : index
    %c0_12 = arith.constant 0 : index
    %8 = vector.load %arg4[%c0_9, %c0_10, %c0_11, %c0_12] : memref<1x1x1x8xf32, #tpu.memory_space<vmem>>, vector<1x1x1x8xf32>
    %9 = vector.shape_cast %8 : vector<1x1x1x8xf32> to vector<1x8xf32>
    %cst_13 = arith.constant 0.000000e+00 : f32
    %10 = vector.broadcast %cst_13 : f32 to vector<1x8xf32>
    %11 = arith.cmpf ogt, %9, %10 : vector<1x8xf32>
    %12 = vector.shape_cast %11 : vector<1x8xi1> to vector<1x8xi1>
    %13 = vector.broadcast %12 : vector<1x8xi1> to vector<8x8xi1>
    %c0_14 = arith.constant 0 : index
    %c0_15 = arith.constant 0 : index
    %c0_16 = arith.constant 0 : index
    %14 = vector.load %arg5[%c0_14, %c0_15, %c0_16] : memref<2x32x96xf32, #tpu.memory_space<vmem>>, vector<1x32x96xf32>
    %15 = vector.shape_cast %14 : vector<1x32x96xf32> to vector<32x96xf32>
    %cst_17 = arith.constant dense<0.000000e+00> : vector<8x96xf32>
    %16 = tpu.matmul %1, %15, %cst_17 {dimension_numbers = #tpu.dot_dimension_numbers<[1], [0], [0], [1], [0, 0, 1, 1], [], []>} : vector<8x32xf32>, vector<32x96xf32>, vector<8x96xf32> -> vector<8x96xf32>
    %c0_18 = arith.constant 0 : index
    %c0_19 = arith.constant 0 : index
    %c0_20 = arith.constant 0 : index
    %17 = vector.load %arg6[%c0_18, %c0_19, %c0_20] : memref<2x1x96xf32, #tpu.memory_space<vmem>>, vector<1x1x96xf32>
    %18 = vector.shape_cast %17 : vector<1x1x96xf32> to vector<1x96xf32>
    %19 = vector.broadcast %18 : vector<1x96xf32> to vector<8x96xf32>
    %20 = arith.addf %16, %19 : vector<8x96xf32>
    %21 = vector.extract_strided_slice %20 {offsets = [0, 0], sizes = [8, 32], strides = [1, 1]} : vector<8x96xf32> to vector<8x32xf32>
    %22 = vector.extract_strided_slice %20 {offsets = [0, 32], sizes = [8, 32], strides = [1, 1]} : vector<8x96xf32> to vector<8x32xf32>
    %23 = vector.extract_strided_slice %20 {offsets = [0, 64], sizes = [8, 32], strides = [1, 1]} : vector<8x96xf32> to vector<8x32xf32>
    %cst_21 = arith.constant 0.353553385 : f32
    %24 = vector.broadcast %cst_21 : f32 to vector<8x32xf32>
    %25 = arith.mulf %21, %24 : vector<8x32xf32>
    %26 = vector.extract_strided_slice %25 {offsets = [0, 0], sizes = [8, 8], strides = [1, 1]} : vector<8x32xf32> to vector<8x8xf32>
    %27 = vector.extract_strided_slice %22 {offsets = [0, 0], sizes = [8, 8], strides = [1, 1]} : vector<8x32xf32> to vector<8x8xf32>
    %cst_22 = arith.constant dense<0.000000e+00> : vector<8x8xf32>
    %28 = tpu.matmul %26, %27, %cst_22 {dimension_numbers = #tpu.dot_dimension_numbers<[1], [1], [0], [0], [0, 0, 1, 0], [], []>} : vector<8x8xf32>, vector<8x8xf32>, vector<8x8xf32> -> vector<8x8xf32>
    %cst_23 = arith.constant -1.000000e+10 : f32
    %29 = vector.broadcast %cst_23 : f32 to vector<8x8xf32>
    %30 = arith.select %7, %28, %29 : vector<8x8xi1>, vector<8x8xf32>
    %cst_24 = arith.constant dense<0xFF800000> : vector<8xf32>
    %31 = vector.multi_reduction <maximumf>, %30, %cst_24 [1] : vector<8x8xf32> to vector<8xf32>
    %32 = vector.shape_cast %31 : vector<8xf32> to vector<8x1xf32>
    %33 = vector.broadcast %32 : vector<8x1xf32> to vector<8x8xf32>
    %34 = arith.subf %30, %33 : vector<8x8xf32>
    %35 = math.exp %34 : vector<8x8xf32>
    %cst_25 = arith.constant dense<0.000000e+00> : vector<8xf32>
    %36 = vector.multi_reduction <add>, %35, %cst_25 [1] : vector<8x8xf32> to vector<8xf32>
    %37 = vector.shape_cast %36 : vector<8xf32> to vector<8x1xf32>
    %38 = tpu.reciprocal %37 {approx = true} : vector<8x1xf32> -> vector<8x1xf32>
    %39 = vector.broadcast %38 : vector<8x1xf32> to vector<8x8xf32>
    %40 = arith.mulf %35, %39 : vector<8x8xf32>
    %41 = vector.extract_strided_slice %23 {offsets = [0, 0], sizes = [8, 8], strides = [1, 1]} : vector<8x32xf32> to vector<8x8xf32>
    %cst_26 = arith.constant dense<0.000000e+00> : vector<8x8xf32>
    %42 = tpu.matmul %40, %41, %cst_26 {dimension_numbers = #tpu.dot_dimension_numbers<[1], [0], [0], [1], [0, 0, 1, 1], [], []>} : vector<8x8xf32>, vector<8x8xf32>, vector<8x8xf32> -> vector<8x8xf32>
    %43 = vector.extract_strided_slice %25 {offsets = [0, 8], sizes = [8, 8], strides = [1, 1]} : vector<8x32xf32> to vector<8x8xf32>
    %44 = vector.extract_strided_slice %22 {offsets = [0, 8], sizes = [8, 8], strides = [1, 1]} : vector<8x32xf32> to vector<8x8xf32>
    %cst_27 = arith.constant dense<0.000000e+00> : vector<8x8xf32>
    %45 = tpu.matmul %43, %44, %cst_27 {dimension_numbers = #tpu.dot_dimension_numbers<[1], [1], [0], [0], [0, 0, 1, 0], [], []>} : vector<8x8xf32>, vector<8x8xf32>, vector<8x8xf32> -> vector<8x8xf32>
    %cst_28 = arith.constant -1.000000e+10 : f32
    %46 = vector.broadcast %cst_28 : f32 to vector<8x8xf32>
    %47 = arith.select %7, %45, %46 : vector<8x8xi1>, vector<8x8xf32>
    %cst_29 = arith.constant dense<0xFF800000> : vector<8xf32>
    %48 = vector.multi_reduction <maximumf>, %47, %cst_29 [1] : vector<8x8xf32> to vector<8xf32>
    %49 = vector.shape_cast %48 : vector<8xf32> to vector<8x1xf32>
    %50 = vector.broadcast %49 : vector<8x1xf32> to vector<8x8xf32>
    %51 = arith.subf %47, %50 : vector<8x8xf32>
    %52 = math.exp %51 : vector<8x8xf32>
    %cst_30 = arith.constant dense<0.000000e+00> : vector<8xf32>
    %53 = vector.multi_reduction <add>, %52, %cst_30 [1] : vector<8x8xf32> to vector<8xf32>
    %54 = vector.shape_cast %53 : vector<8xf32> to vector<8x1xf32>
    %55 = tpu.reciprocal %54 {approx = true} : vector<8x1xf32> -> vector<8x1xf32>
    %56 = vector.broadcast %55 : vector<8x1xf32> to vector<8x8xf32>
    %57 = arith.mulf %52, %56 : vector<8x8xf32>
    %58 = vector.extract_strided_slice %23 {offsets = [0, 8], sizes = [8, 8], strides = [1, 1]} : vector<8x32xf32> to vector<8x8xf32>
    %cst_31 = arith.constant dense<0.000000e+00> : vector<8x8xf32>
    %59 = tpu.matmul %57, %58, %cst_31 {dimension_numbers = #tpu.dot_dimension_numbers<[1], [0], [0], [1], [0, 0, 1, 1], [], []>} : vector<8x8xf32>, vector<8x8xf32>, vector<8x8xf32> -> vector<8x8xf32>
    %60 = vector.extract_strided_slice %25 {offsets = [0, 16], sizes = [8, 8], strides = [1, 1]} : vector<8x32xf32> to vector<8x8xf32>
    %61 = vector.extract_strided_slice %22 {offsets = [0, 16], sizes = [8, 8], strides = [1, 1]} : vector<8x32xf32> to vector<8x8xf32>
    %cst_32 = arith.constant dense<0.000000e+00> : vector<8x8xf32>
    %62 = tpu.matmul %60, %61, %cst_32 {dimension_numbers = #tpu.dot_dimension_numbers<[1], [1], [0], [0], [0, 0, 1, 0], [], []>} : vector<8x8xf32>, vector<8x8xf32>, vector<8x8xf32> -> vector<8x8xf32>
    %cst_33 = arith.constant -1.000000e+10 : f32
    %63 = vector.broadcast %cst_33 : f32 to vector<8x8xf32>
    %64 = arith.select %7, %62, %63 : vector<8x8xi1>, vector<8x8xf32>
    %cst_34 = arith.constant dense<0xFF800000> : vector<8xf32>
    %65 = vector.multi_reduction <maximumf>, %64, %cst_34 [1] : vector<8x8xf32> to vector<8xf32>
    %66 = vector.shape_cast %65 : vector<8xf32> to vector<8x1xf32>
    %67 = vector.broadcast %66 : vector<8x1xf32> to vector<8x8xf32>
    %68 = arith.subf %64, %67 : vector<8x8xf32>
    %69 = math.exp %68 : vector<8x8xf32>
    %cst_35 = arith.constant dense<0.000000e+00> : vector<8xf32>
    %70 = vector.multi_reduction <add>, %69, %cst_35 [1] : vector<8x8xf32> to vector<8xf32>
    %71 = vector.shape_cast %70 : vector<8xf32> to vector<8x1xf32>
    %72 = tpu.reciprocal %71 {approx = true} : vector<8x1xf32> -> vector<8x1xf32>
    %73 = vector.broadcast %72 : vector<8x1xf32> to vector<8x8xf32>
    %74 = arith.mulf %69, %73 : vector<8x8xf32>
    %75 = vector.extract_strided_slice %23 {offsets = [0, 16], sizes = [8, 8], strides = [1, 1]} : vector<8x32xf32> to vector<8x8xf32>
    %cst_36 = arith.constant dense<0.000000e+00> : vector<8x8xf32>
    %76 = tpu.matmul %74, %75, %cst_36 {dimension_numbers = #tpu.dot_dimension_numbers<[1], [0], [0], [1], [0, 0, 1, 1], [], []>} : vector<8x8xf32>, vector<8x8xf32>, vector<8x8xf32> -> vector<8x8xf32>
    %77 = vector.extract_strided_slice %25 {offsets = [0, 24], sizes = [8, 8], strides = [1, 1]} : vector<8x32xf32> to vector<8x8xf32>
    %78 = vector.extract_strided_slice %22 {offsets = [0, 24], sizes = [8, 8], strides = [1, 1]} : vector<8x32xf32> to vector<8x8xf32>
    %cst_37 = arith.constant dense<0.000000e+00> : vector<8x8xf32>
    %79 = tpu.matmul %77, %78, %cst_37 {dimension_numbers = #tpu.dot_dimension_numbers<[1], [1], [0], [0], [0, 0, 1, 0], [], []>} : vector<8x8xf32>, vector<8x8xf32>, vector<8x8xf32> -> vector<8x8xf32>
    %cst_38 = arith.constant -1.000000e+10 : f32
    %80 = vector.broadcast %cst_38 : f32 to vector<8x8xf32>
    %81 = arith.select %7, %79, %80 : vector<8x8xi1>, vector<8x8xf32>
    %cst_39 = arith.constant dense<0xFF800000> : vector<8xf32>
    %82 = vector.multi_reduction <maximumf>, %81, %cst_39 [1] : vector<8x8xf32> to vector<8xf32>
    %83 = vector.shape_cast %82 : vector<8xf32> to vector<8x1xf32>
    %84 = vector.broadcast %83 : vector<8x1xf32> to vector<8x8xf32>
    %85 = arith.subf %81, %84 : vector<8x8xf32>
    %86 = math.exp %85 : vector<8x8xf32>
    %cst_40 = arith.constant dense<0.000000e+00> : vector<8xf32>
    %87 = vector.multi_reduction <add>, %86, %cst_40 [1] : vector<8x8xf32> to vector<8xf32>
    %88 = vector.shape_cast %87 : vector<8xf32> to vector<8x1xf32>
    %89 = tpu.reciprocal %88 {approx = true} : vector<8x1xf32> -> vector<8x1xf32>
    %90 = vector.broadcast %89 : vector<8x1xf32> to vector<8x8xf32>
    %91 = arith.mulf %86, %90 : vector<8x8xf32>
    %92 = vector.extract_strided_slice %23 {offsets = [0, 24], sizes = [8, 8], strides = [1, 1]} : vector<8x32xf32> to vector<8x8xf32>
    %cst_41 = arith.constant dense<0.000000e+00> : vector<8x8xf32>
    %93 = tpu.matmul %91, %92, %cst_41 {dimension_numbers = #tpu.dot_dimension_numbers<[1], [0], [0], [1], [0, 0, 1, 1], [], []>} : vector<8x8xf32>, vector<8x8xf32>, vector<8x8xf32> -> vector<8x8xf32>
    %94 = tpu.concatenate %42, %59, %76, %93 in 1 : vector<8x8xf32>, vector<8x8xf32>, vector<8x8xf32>, vector<8x8xf32> -> vector<8x32xf32>
    %c0_42 = arith.constant 0 : index
    %c0_43 = arith.constant 0 : index
    %c0_44 = arith.constant 0 : index
    %95 = vector.load %arg7[%c0_42, %c0_43, %c0_44] : memref<2x32x32xf32, #tpu.memory_space<vmem>>, vector<1x32x32xf32>
    %96 = vector.shape_cast %95 : vector<1x32x32xf32> to vector<32x32xf32>
    %cst_45 = arith.constant dense<0.000000e+00> : vector<8x32xf32>
    %97 = tpu.matmul %94, %96, %cst_45 {dimension_numbers = #tpu.dot_dimension_numbers<[1], [0], [0], [1], [0, 0, 1, 1], [], []>} : vector<8x32xf32>, vector<32x32xf32>, vector<8x32xf32> -> vector<8x32xf32>
    %c0_46 = arith.constant 0 : index
    %c0_47 = arith.constant 0 : index
    %c0_48 = arith.constant 0 : index
    %98 = vector.load %arg8[%c0_46, %c0_47, %c0_48] : memref<2x1x32xf32, #tpu.memory_space<vmem>>, vector<1x1x32xf32>
    %99 = vector.shape_cast %98 : vector<1x1x32xf32> to vector<1x32xf32>
    %100 = vector.broadcast %99 : vector<1x32xf32> to vector<8x32xf32>
    %101 = arith.addf %97, %100 : vector<8x32xf32>
    %c0_49 = arith.constant 0 : index
    %c0_50 = arith.constant 0 : index
    %c0_51 = arith.constant 0 : index
    %c0_52 = arith.constant 0 : index
    %102 = vector.load %arg15[%c0_49, %c0_50, %c0_51, %c0_52] : memref<2x3x1x32xf32, #tpu.memory_space<vmem>>, vector<1x1x1x32xf32>
    %103 = vector.shape_cast %102 : vector<1x1x1x32xf32> to vector<1x32xf32>
    %c0_53 = arith.constant 0 : index
    %c0_54 = arith.constant 0 : index
    %c0_55 = arith.constant 0 : index
    %c0_56 = arith.constant 0 : index
    %104 = vector.load %arg16[%c0_53, %c0_54, %c0_55, %c0_56] : memref<2x3x1x32xf32, #tpu.memory_space<vmem>>, vector<1x1x1x32xf32>
    %105 = vector.shape_cast %104 : vector<1x1x1x32xf32> to vector<1x32xf32>
    %106 = arith.addf %101, %1 : vector<8x32xf32>
    %cst_57 = arith.constant dense<0.000000e+00> : vector<8xf32>
    %107 = vector.multi_reduction <add>, %106, %cst_57 [1] : vector<8x32xf32> to vector<8xf32>
    %108 = vector.shape_cast %107 : vector<8xf32> to vector<8x1xf32>
    %cst_58 = arith.constant 3.200000e+01 : f32
    %109 = vector.broadcast %cst_58 : f32 to vector<8x1xf32>
    %110 = arith.divf %108, %109 : vector<8x1xf32>
    %111 = vector.broadcast %110 : vector<8x1xf32> to vector<8x32xf32>
    %112 = arith.subf %106, %111 : vector<8x32xf32>
    %113 = arith.mulf %112, %112 : vector<8x32xf32>
    %cst_59 = arith.constant dense<0.000000e+00> : vector<8xf32>
    %114 = vector.multi_reduction <add>, %113, %cst_59 [1] : vector<8x32xf32> to vector<8xf32>
    %115 = vector.shape_cast %114 : vector<8xf32> to vector<8x1xf32>
    %cst_60 = arith.constant 3.200000e+01 : f32
    %116 = vector.broadcast %cst_60 : f32 to vector<8x1xf32>
    %117 = arith.divf %115, %116 : vector<8x1xf32>
    %118 = vector.broadcast %110 : vector<8x1xf32> to vector<8x32xf32>
    %119 = arith.subf %106, %118 : vector<8x32xf32>
    %cst_61 = arith.constant 9.99999974E-6 : f32
    %120 = vector.broadcast %cst_61 : f32 to vector<8x1xf32>
    %121 = arith.addf %117, %120 : vector<8x1xf32>
    %122 = math.rsqrt %121 : vector<8x1xf32>
    %123 = vector.broadcast %122 : vector<8x1xf32> to vector<8x32xf32>
    %124 = arith.mulf %119, %123 : vector<8x32xf32>
    %125 = vector.broadcast %103 : vector<1x32xf32> to vector<8x32xf32>
    %126 = arith.mulf %124, %125 : vector<8x32xf32>
    %127 = vector.broadcast %105 : vector<1x32xf32> to vector<8x32xf32>
    %128 = arith.addf %126, %127 : vector<8x32xf32>
    %c0_62 = arith.constant 0 : index
    %c0_63 = arith.constant 0 : index
    %c0_64 = arith.constant 0 : index
    %129 = vector.load %arg9[%c0_62, %c0_63, %c0_64] : memref<2x32x32xf32, #tpu.memory_space<vmem>>, vector<1x32x32xf32>
    %130 = vector.shape_cast %129 : vector<1x32x32xf32> to vector<32x32xf32>
    %cst_65 = arith.constant dense<0.000000e+00> : vector<8x32xf32>
    %131 = tpu.matmul %128, %130, %cst_65 {dimension_numbers = #tpu.dot_dimension_numbers<[1], [0], [0], [1], [0, 0, 1, 1], [], []>} : vector<8x32xf32>, vector<32x32xf32>, vector<8x32xf32> -> vector<8x32xf32>
    %c0_66 = arith.constant 0 : index
    %c0_67 = arith.constant 0 : index
    %c0_68 = arith.constant 0 : index
    %132 = vector.load %arg10[%c0_66, %c0_67, %c0_68] : memref<2x1x32xf32, #tpu.memory_space<vmem>>, vector<1x1x32xf32>
    %133 = vector.shape_cast %132 : vector<1x1x32xf32> to vector<1x32xf32>
    %134 = vector.broadcast %133 : vector<1x32xf32> to vector<8x32xf32>
    %135 = arith.addf %131, %134 : vector<8x32xf32>
    %c0_69 = arith.constant 0 : index
    %c0_70 = arith.constant 0 : index
    %c0_71 = arith.constant 0 : index
    %136 = vector.load %arg11[%c0_69, %c0_70, %c0_71] : memref<2x32x64xf32, #tpu.memory_space<vmem>>, vector<1x32x64xf32>
    %137 = vector.shape_cast %136 : vector<1x32x64xf32> to vector<32x64xf32>
    %cst_72 = arith.constant dense<0.000000e+00> : vector<8x64xf32>
    %138 = tpu.matmul %3, %137, %cst_72 {dimension_numbers = #tpu.dot_dimension_numbers<[1], [0], [0], [1], [0, 0, 1, 1], [], []>} : vector<8x32xf32>, vector<32x64xf32>, vector<8x64xf32> -> vector<8x64xf32>
    %c0_73 = arith.constant 0 : index
    %c0_74 = arith.constant 0 : index
    %c0_75 = arith.constant 0 : index
    %139 = vector.load %arg12[%c0_73, %c0_74, %c0_75] : memref<2x1x64xf32, #tpu.memory_space<vmem>>, vector<1x1x64xf32>
    %140 = vector.shape_cast %139 : vector<1x1x64xf32> to vector<1x64xf32>
    %141 = vector.broadcast %140 : vector<1x64xf32> to vector<8x64xf32>
    %142 = arith.addf %138, %141 : vector<8x64xf32>
    %143 = vector.extract_strided_slice %142 {offsets = [0, 0], sizes = [8, 32], strides = [1, 1]} : vector<8x64xf32> to vector<8x32xf32>
    %144 = vector.extract_strided_slice %142 {offsets = [0, 32], sizes = [8, 32], strides = [1, 1]} : vector<8x64xf32> to vector<8x32xf32>
    %cst_76 = arith.constant 0.353553385 : f32
    %145 = vector.broadcast %cst_76 : f32 to vector<8x32xf32>
    %146 = arith.mulf %135, %145 : vector<8x32xf32>
    %147 = vector.extract_strided_slice %146 {offsets = [0, 0], sizes = [8, 8], strides = [1, 1]} : vector<8x32xf32> to vector<8x8xf32>
    %148 = vector.extract_strided_slice %143 {offsets = [0, 0], sizes = [8, 8], strides = [1, 1]} : vector<8x32xf32> to vector<8x8xf32>
    %cst_77 = arith.constant dense<0.000000e+00> : vector<8x8xf32>
    %149 = tpu.matmul %147, %148, %cst_77 {dimension_numbers = #tpu.dot_dimension_numbers<[1], [1], [0], [0], [0, 0, 1, 0], [], []>} : vector<8x8xf32>, vector<8x8xf32>, vector<8x8xf32> -> vector<8x8xf32>
    %cst_78 = arith.constant -1.000000e+10 : f32
    %150 = vector.broadcast %cst_78 : f32 to vector<8x8xf32>
    %151 = arith.select %13, %149, %150 : vector<8x8xi1>, vector<8x8xf32>
    %cst_79 = arith.constant dense<0xFF800000> : vector<8xf32>
    %152 = vector.multi_reduction <maximumf>, %151, %cst_79 [1] : vector<8x8xf32> to vector<8xf32>
    %153 = vector.shape_cast %152 : vector<8xf32> to vector<8x1xf32>
    %154 = vector.broadcast %153 : vector<8x1xf32> to vector<8x8xf32>
    %155 = arith.subf %151, %154 : vector<8x8xf32>
    %156 = math.exp %155 : vector<8x8xf32>
    %cst_80 = arith.constant dense<0.000000e+00> : vector<8xf32>
    %157 = vector.multi_reduction <add>, %156, %cst_80 [1] : vector<8x8xf32> to vector<8xf32>
    %158 = vector.shape_cast %157 : vector<8xf32> to vector<8x1xf32>
    %159 = tpu.reciprocal %158 {approx = true} : vector<8x1xf32> -> vector<8x1xf32>
    %160 = vector.broadcast %159 : vector<8x1xf32> to vector<8x8xf32>
    %161 = arith.mulf %156, %160 : vector<8x8xf32>
    %162 = vector.extract_strided_slice %144 {offsets = [0, 0], sizes = [8, 8], strides = [1, 1]} : vector<8x32xf32> to vector<8x8xf32>
    %cst_81 = arith.constant dense<0.000000e+00> : vector<8x8xf32>
    %163 = tpu.matmul %161, %162, %cst_81 {dimension_numbers = #tpu.dot_dimension_numbers<[1], [0], [0], [1], [0, 0, 1, 1], [], []>} : vector<8x8xf32>, vector<8x8xf32>, vector<8x8xf32> -> vector<8x8xf32>
    %164 = vector.extract_strided_slice %146 {offsets = [0, 8], sizes = [8, 8], strides = [1, 1]} : vector<8x32xf32> to vector<8x8xf32>
    %165 = vector.extract_strided_slice %143 {offsets = [0, 8], sizes = [8, 8], strides = [1, 1]} : vector<8x32xf32> to vector<8x8xf32>
    %cst_82 = arith.constant dense<0.000000e+00> : vector<8x8xf32>
    %166 = tpu.matmul %164, %165, %cst_82 {dimension_numbers = #tpu.dot_dimension_numbers<[1], [1], [0], [0], [0, 0, 1, 0], [], []>} : vector<8x8xf32>, vector<8x8xf32>, vector<8x8xf32> -> vector<8x8xf32>
    %cst_83 = arith.constant -1.000000e+10 : f32
    %167 = vector.broadcast %cst_83 : f32 to vector<8x8xf32>
    %168 = arith.select %13, %166, %167 : vector<8x8xi1>, vector<8x8xf32>
    %cst_84 = arith.constant dense<0xFF800000> : vector<8xf32>
    %169 = vector.multi_reduction <maximumf>, %168, %cst_84 [1] : vector<8x8xf32> to vector<8xf32>
    %170 = vector.shape_cast %169 : vector<8xf32> to vector<8x1xf32>
    %171 = vector.broadcast %170 : vector<8x1xf32> to vector<8x8xf32>
    %172 = arith.subf %168, %171 : vector<8x8xf32>
    %173 = math.exp %172 : vector<8x8xf32>
    %cst_85 = arith.constant dense<0.000000e+00> : vector<8xf32>
    %174 = vector.multi_reduction <add>, %173, %cst_85 [1] : vector<8x8xf32> to vector<8xf32>
    %175 = vector.shape_cast %174 : vector<8xf32> to vector<8x1xf32>
    %176 = tpu.reciprocal %175 {approx = true} : vector<8x1xf32> -> vector<8x1xf32>
    %177 = vector.broadcast %176 : vector<8x1xf32> to vector<8x8xf32>
    %178 = arith.mulf %173, %177 : vector<8x8xf32>
    %179 = vector.extract_strided_slice %144 {offsets = [0, 8], sizes = [8, 8], strides = [1, 1]} : vector<8x32xf32> to vector<8x8xf32>
    %cst_86 = arith.constant dense<0.000000e+00> : vector<8x8xf32>
    %180 = tpu.matmul %178, %179, %cst_86 {dimension_numbers = #tpu.dot_dimension_numbers<[1], [0], [0], [1], [0, 0, 1, 1], [], []>} : vector<8x8xf32>, vector<8x8xf32>, vector<8x8xf32> -> vector<8x8xf32>
    %181 = vector.extract_strided_slice %146 {offsets = [0, 16], sizes = [8, 8], strides = [1, 1]} : vector<8x32xf32> to vector<8x8xf32>
    %182 = vector.extract_strided_slice %143 {offsets = [0, 16], sizes = [8, 8], strides = [1, 1]} : vector<8x32xf32> to vector<8x8xf32>
    %cst_87 = arith.constant dense<0.000000e+00> : vector<8x8xf32>
    %183 = tpu.matmul %181, %182, %cst_87 {dimension_numbers = #tpu.dot_dimension_numbers<[1], [1], [0], [0], [0, 0, 1, 0], [], []>} : vector<8x8xf32>, vector<8x8xf32>, vector<8x8xf32> -> vector<8x8xf32>
    %cst_88 = arith.constant -1.000000e+10 : f32
    %184 = vector.broadcast %cst_88 : f32 to vector<8x8xf32>
    %185 = arith.select %13, %183, %184 : vector<8x8xi1>, vector<8x8xf32>
    %cst_89 = arith.constant dense<0xFF800000> : vector<8xf32>
    %186 = vector.multi_reduction <maximumf>, %185, %cst_89 [1] : vector<8x8xf32> to vector<8xf32>
    %187 = vector.shape_cast %186 : vector<8xf32> to vector<8x1xf32>
    %188 = vector.broadcast %187 : vector<8x1xf32> to vector<8x8xf32>
    %189 = arith.subf %185, %188 : vector<8x8xf32>
    %190 = math.exp %189 : vector<8x8xf32>
    %cst_90 = arith.constant dense<0.000000e+00> : vector<8xf32>
    %191 = vector.multi_reduction <add>, %190, %cst_90 [1] : vector<8x8xf32> to vector<8xf32>
    %192 = vector.shape_cast %191 : vector<8xf32> to vector<8x1xf32>
    %193 = tpu.reciprocal %192 {approx = true} : vector<8x1xf32> -> vector<8x1xf32>
    %194 = vector.broadcast %193 : vector<8x1xf32> to vector<8x8xf32>
    %195 = arith.mulf %190, %194 : vector<8x8xf32>
    %196 = vector.extract_strided_slice %144 {offsets = [0, 16], sizes = [8, 8], strides = [1, 1]} : vector<8x32xf32> to vector<8x8xf32>
    %cst_91 = arith.constant dense<0.000000e+00> : vector<8x8xf32>
    %197 = tpu.matmul %195, %196, %cst_91 {dimension_numbers = #tpu.dot_dimension_numbers<[1], [0], [0], [1], [0, 0, 1, 1], [], []>} : vector<8x8xf32>, vector<8x8xf32>, vector<8x8xf32> -> vector<8x8xf32>
    %198 = vector.extract_strided_slice %146 {offsets = [0, 24], sizes = [8, 8], strides = [1, 1]} : vector<8x32xf32> to vector<8x8xf32>
    %199 = vector.extract_strided_slice %143 {offsets = [0, 24], sizes = [8, 8], strides = [1, 1]} : vector<8x32xf32> to vector<8x8xf32>
    %cst_92 = arith.constant dense<0.000000e+00> : vector<8x8xf32>
    %200 = tpu.matmul %198, %199, %cst_92 {dimension_numbers = #tpu.dot_dimension_numbers<[1], [1], [0], [0], [0, 0, 1, 0], [], []>} : vector<8x8xf32>, vector<8x8xf32>, vector<8x8xf32> -> vector<8x8xf32>
    %cst_93 = arith.constant -1.000000e+10 : f32
    %201 = vector.broadcast %cst_93 : f32 to vector<8x8xf32>
    %202 = arith.select %13, %200, %201 : vector<8x8xi1>, vector<8x8xf32>
    %cst_94 = arith.constant dense<0xFF800000> : vector<8xf32>
    %203 = vector.multi_reduction <maximumf>, %202, %cst_94 [1] : vector<8x8xf32> to vector<8xf32>
    %204 = vector.shape_cast %203 : vector<8xf32> to vector<8x1xf32>
    %205 = vector.broadcast %204 : vector<8x1xf32> to vector<8x8xf32>
    %206 = arith.subf %202, %205 : vector<8x8xf32>
    %207 = math.exp %206 : vector<8x8xf32>
    %cst_95 = arith.constant dense<0.000000e+00> : vector<8xf32>
    %208 = vector.multi_reduction <add>, %207, %cst_95 [1] : vector<8x8xf32> to vector<8xf32>
    %209 = vector.shape_cast %208 : vector<8xf32> to vector<8x1xf32>
    %210 = tpu.reciprocal %209 {approx = true} : vector<8x1xf32> -> vector<8x1xf32>
    %211 = vector.broadcast %210 : vector<8x1xf32> to vector<8x8xf32>
    %212 = arith.mulf %207, %211 : vector<8x8xf32>
    %213 = vector.extract_strided_slice %144 {offsets = [0, 24], sizes = [8, 8], strides = [1, 1]} : vector<8x32xf32> to vector<8x8xf32>
    %cst_96 = arith.constant dense<0.000000e+00> : vector<8x8xf32>
    %214 = tpu.matmul %212, %213, %cst_96 {dimension_numbers = #tpu.dot_dimension_numbers<[1], [0], [0], [1], [0, 0, 1, 1], [], []>} : vector<8x8xf32>, vector<8x8xf32>, vector<8x8xf32> -> vector<8x8xf32>
    %215 = tpu.concatenate %163, %180, %197, %214 in 1 : vector<8x8xf32>, vector<8x8xf32>, vector<8x8xf32>, vector<8x8xf32> -> vector<8x32xf32>
    %c0_97 = arith.constant 0 : index
    %c0_98 = arith.constant 0 : index
    %c0_99 = arith.constant 0 : index
    %216 = vector.load %arg13[%c0_97, %c0_98, %c0_99] : memref<2x32x32xf32, #tpu.memory_space<vmem>>, vector<1x32x32xf32>
    %217 = vector.shape_cast %216 : vector<1x32x32xf32> to vector<32x32xf32>
    %cst_100 = arith.constant dense<0.000000e+00> : vector<8x32xf32>
    %218 = tpu.matmul %215, %217, %cst_100 {dimension_numbers = #tpu.dot_dimension_numbers<[1], [0], [0], [1], [0, 0, 1, 1], [], []>} : vector<8x32xf32>, vector<32x32xf32>, vector<8x32xf32> -> vector<8x32xf32>
    %c0_101 = arith.constant 0 : index
    %c0_102 = arith.constant 0 : index
    %c0_103 = arith.constant 0 : index
    %219 = vector.load %arg14[%c0_101, %c0_102, %c0_103] : memref<2x1x32xf32, #tpu.memory_space<vmem>>, vector<1x1x32xf32>
    %220 = vector.shape_cast %219 : vector<1x1x32xf32> to vector<1x32xf32>
    %221 = vector.broadcast %220 : vector<1x32xf32> to vector<8x32xf32>
    %222 = arith.addf %218, %221 : vector<8x32xf32>
    %c0_104 = arith.constant 0 : index
    %c1 = arith.constant 1 : index
    %c0_105 = arith.constant 0 : index
    %c0_106 = arith.constant 0 : index
    %223 = vector.load %arg15[%c0_104, %c1, %c0_105, %c0_106] : memref<2x3x1x32xf32, #tpu.memory_space<vmem>>, vector<1x1x1x32xf32>
    %224 = vector.shape_cast %223 : vector<1x1x1x32xf32> to vector<1x32xf32>
    %c0_107 = arith.constant 0 : index
    %c1_108 = arith.constant 1 : index
    %c0_109 = arith.constant 0 : index
    %c0_110 = arith.constant 0 : index
    %225 = vector.load %arg16[%c0_107, %c1_108, %c0_109, %c0_110] : memref<2x3x1x32xf32, #tpu.memory_space<vmem>>, vector<1x1x1x32xf32>
    %226 = vector.shape_cast %225 : vector<1x1x1x32xf32> to vector<1x32xf32>
    %227 = arith.addf %222, %128 : vector<8x32xf32>
    %cst_111 = arith.constant dense<0.000000e+00> : vector<8xf32>
    %228 = vector.multi_reduction <add>, %227, %cst_111 [1] : vector<8x32xf32> to vector<8xf32>
    %229 = vector.shape_cast %228 : vector<8xf32> to vector<8x1xf32>
    %cst_112 = arith.constant 3.200000e+01 : f32
    %230 = vector.broadcast %cst_112 : f32 to vector<8x1xf32>
    %231 = arith.divf %229, %230 : vector<8x1xf32>
    %232 = vector.broadcast %231 : vector<8x1xf32> to vector<8x32xf32>
    %233 = arith.subf %227, %232 : vector<8x32xf32>
    %234 = arith.mulf %233, %233 : vector<8x32xf32>
    %cst_113 = arith.constant dense<0.000000e+00> : vector<8xf32>
    %235 = vector.multi_reduction <add>, %234, %cst_113 [1] : vector<8x32xf32> to vector<8xf32>
    %236 = vector.shape_cast %235 : vector<8xf32> to vector<8x1xf32>
    %cst_114 = arith.constant 3.200000e+01 : f32
    %237 = vector.broadcast %cst_114 : f32 to vector<8x1xf32>
    %238 = arith.divf %236, %237 : vector<8x1xf32>
    %239 = vector.broadcast %231 : vector<8x1xf32> to vector<8x32xf32>
    %240 = arith.subf %227, %239 : vector<8x32xf32>
    %cst_115 = arith.constant 9.99999974E-6 : f32
    %241 = vector.broadcast %cst_115 : f32 to vector<8x1xf32>
    %242 = arith.addf %238, %241 : vector<8x1xf32>
    %243 = math.rsqrt %242 : vector<8x1xf32>
    %244 = vector.broadcast %243 : vector<8x1xf32> to vector<8x32xf32>
    %245 = arith.mulf %240, %244 : vector<8x32xf32>
    %246 = vector.broadcast %224 : vector<1x32xf32> to vector<8x32xf32>
    %247 = arith.mulf %245, %246 : vector<8x32xf32>
    %248 = vector.broadcast %226 : vector<1x32xf32> to vector<8x32xf32>
    %249 = arith.addf %247, %248 : vector<8x32xf32>
    %c0_116 = arith.constant 0 : index
    %c0_117 = arith.constant 0 : index
    %c0_118 = arith.constant 0 : index
    %250 = vector.load %arg17[%c0_116, %c0_117, %c0_118] : memref<2x32x64xf32, #tpu.memory_space<vmem>>, vector<1x32x64xf32>
    %251 = vector.shape_cast %250 : vector<1x32x64xf32> to vector<32x64xf32>
    %cst_119 = arith.constant dense<0.000000e+00> : vector<8x64xf32>
    %252 = tpu.matmul %249, %251, %cst_119 {dimension_numbers = #tpu.dot_dimension_numbers<[1], [0], [0], [1], [0, 0, 1, 1], [], []>} : vector<8x32xf32>, vector<32x64xf32>, vector<8x64xf32> -> vector<8x64xf32>
    %c0_120 = arith.constant 0 : index
    %c0_121 = arith.constant 0 : index
    %c0_122 = arith.constant 0 : index
    %253 = vector.load %arg18[%c0_120, %c0_121, %c0_122] : memref<2x1x64xf32, #tpu.memory_space<vmem>>, vector<1x1x64xf32>
    %254 = vector.shape_cast %253 : vector<1x1x64xf32> to vector<1x64xf32>
    %255 = vector.broadcast %254 : vector<1x64xf32> to vector<8x64xf32>
    %256 = arith.addf %252, %255 : vector<8x64xf32>
    %cst_123 = arith.constant 0.000000e+00 : f32
    %257 = vector.broadcast %cst_123 : f32 to vector<8x64xf32>
    %258 = arith.maximumf %256, %257 : vector<8x64xf32>
    %c0_124 = arith.constant 0 : index
    %c0_125 = arith.constant 0 : index
    %c0_126 = arith.constant 0 : index
    %259 = vector.load %arg19[%c0_124, %c0_125, %c0_126] : memref<2x64x32xf32, #tpu.memory_space<vmem>>, vector<1x64x32xf32>
    %260 = vector.shape_cast %259 : vector<1x64x32xf32> to vector<64x32xf32>
    %cst_127 = arith.constant dense<0.000000e+00> : vector<8x32xf32>
    %261 = tpu.matmul %258, %260, %cst_127 {dimension_numbers = #tpu.dot_dimension_numbers<[1], [0], [0], [1], [0, 0, 1, 1], [], []>} : vector<8x64xf32>, vector<64x32xf32>, vector<8x32xf32> -> vector<8x32xf32>
    %c0_128 = arith.constant 0 : index
    %c0_129 = arith.constant 0 : index
    %c0_130 = arith.constant 0 : index
    %262 = vector.load %arg20[%c0_128, %c0_129, %c0_130] : memref<2x1x32xf32, #tpu.memory_space<vmem>>, vector<1x1x32xf32>
    %263 = vector.shape_cast %262 : vector<1x1x32xf32> to vector<1x32xf32>
    %264 = vector.broadcast %263 : vector<1x32xf32> to vector<8x32xf32>
    %265 = arith.addf %261, %264 : vector<8x32xf32>
    %c0_131 = arith.constant 0 : index
    %c2 = arith.constant 2 : index
    %c0_132 = arith.constant 0 : index
    %c0_133 = arith.constant 0 : index
    %266 = vector.load %arg15[%c0_131, %c2, %c0_132, %c0_133] : memref<2x3x1x32xf32, #tpu.memory_space<vmem>>, vector<1x1x1x32xf32>
    %267 = vector.shape_cast %266 : vector<1x1x1x32xf32> to vector<1x32xf32>
    %c0_134 = arith.constant 0 : index
    %c2_135 = arith.constant 2 : index
    %c0_136 = arith.constant 0 : index
    %c0_137 = arith.constant 0 : index
    %268 = vector.load %arg16[%c0_134, %c2_135, %c0_136, %c0_137] : memref<2x3x1x32xf32, #tpu.memory_space<vmem>>, vector<1x1x1x32xf32>
    %269 = vector.shape_cast %268 : vector<1x1x1x32xf32> to vector<1x32xf32>
    %270 = arith.addf %265, %249 : vector<8x32xf32>
    %cst_138 = arith.constant dense<0.000000e+00> : vector<8xf32>
    %271 = vector.multi_reduction <add>, %270, %cst_138 [1] : vector<8x32xf32> to vector<8xf32>
    %272 = vector.shape_cast %271 : vector<8xf32> to vector<8x1xf32>
    %cst_139 = arith.constant 3.200000e+01 : f32
    %273 = vector.broadcast %cst_139 : f32 to vector<8x1xf32>
    %274 = arith.divf %272, %273 : vector<8x1xf32>
    %275 = vector.broadcast %274 : vector<8x1xf32> to vector<8x32xf32>
    %276 = arith.subf %270, %275 : vector<8x32xf32>
    %277 = arith.mulf %276, %276 : vector<8x32xf32>
    %cst_140 = arith.constant dense<0.000000e+00> : vector<8xf32>
    %278 = vector.multi_reduction <add>, %277, %cst_140 [1] : vector<8x32xf32> to vector<8xf32>
    %279 = vector.shape_cast %278 : vector<8xf32> to vector<8x1xf32>
    %cst_141 = arith.constant 3.200000e+01 : f32
    %280 = vector.broadcast %cst_141 : f32 to vector<8x1xf32>
    %281 = arith.divf %279, %280 : vector<8x1xf32>
    %282 = vector.broadcast %274 : vector<8x1xf32> to vector<8x32xf32>
    %283 = arith.subf %270, %282 : vector<8x32xf32>
    %cst_142 = arith.constant 9.99999974E-6 : f32
    %284 = vector.broadcast %cst_142 : f32 to vector<8x1xf32>
    %285 = arith.addf %281, %284 : vector<8x1xf32>
    %286 = math.rsqrt %285 : vector<8x1xf32>
    %287 = vector.broadcast %286 : vector<8x1xf32> to vector<8x32xf32>
    %288 = arith.mulf %283, %287 : vector<8x32xf32>
    %289 = vector.broadcast %267 : vector<1x32xf32> to vector<8x32xf32>
    %290 = arith.mulf %288, %289 : vector<8x32xf32>
    %291 = vector.broadcast %269 : vector<1x32xf32> to vector<8x32xf32>
    %292 = arith.addf %290, %291 : vector<8x32xf32>
    %c1_143 = arith.constant 1 : index
    %c0_144 = arith.constant 0 : index
    %c0_145 = arith.constant 0 : index
    %293 = vector.load %arg5[%c1_143, %c0_144, %c0_145] : memref<2x32x96xf32, #tpu.memory_space<vmem>>, vector<1x32x96xf32>
    %294 = vector.shape_cast %293 : vector<1x32x96xf32> to vector<32x96xf32>
    %cst_146 = arith.constant dense<0.000000e+00> : vector<8x96xf32>
    %295 = tpu.matmul %292, %294, %cst_146 {dimension_numbers = #tpu.dot_dimension_numbers<[1], [0], [0], [1], [0, 0, 1, 1], [], []>} : vector<8x32xf32>, vector<32x96xf32>, vector<8x96xf32> -> vector<8x96xf32>
    %c1_147 = arith.constant 1 : index
    %c0_148 = arith.constant 0 : index
    %c0_149 = arith.constant 0 : index
    %296 = vector.load %arg6[%c1_147, %c0_148, %c0_149] : memref<2x1x96xf32, #tpu.memory_space<vmem>>, vector<1x1x96xf32>
    %297 = vector.shape_cast %296 : vector<1x1x96xf32> to vector<1x96xf32>
    %298 = vector.broadcast %297 : vector<1x96xf32> to vector<8x96xf32>
    %299 = arith.addf %295, %298 : vector<8x96xf32>
    %300 = vector.extract_strided_slice %299 {offsets = [0, 0], sizes = [8, 32], strides = [1, 1]} : vector<8x96xf32> to vector<8x32xf32>
    %301 = vector.extract_strided_slice %299 {offsets = [0, 32], sizes = [8, 32], strides = [1, 1]} : vector<8x96xf32> to vector<8x32xf32>
    %302 = vector.extract_strided_slice %299 {offsets = [0, 64], sizes = [8, 32], strides = [1, 1]} : vector<8x96xf32> to vector<8x32xf32>
    %cst_150 = arith.constant 0.353553385 : f32
    %303 = vector.broadcast %cst_150 : f32 to vector<8x32xf32>
    %304 = arith.mulf %300, %303 : vector<8x32xf32>
    %305 = vector.extract_strided_slice %304 {offsets = [0, 0], sizes = [8, 8], strides = [1, 1]} : vector<8x32xf32> to vector<8x8xf32>
    %306 = vector.extract_strided_slice %301 {offsets = [0, 0], sizes = [8, 8], strides = [1, 1]} : vector<8x32xf32> to vector<8x8xf32>
    %cst_151 = arith.constant dense<0.000000e+00> : vector<8x8xf32>
    %307 = tpu.matmul %305, %306, %cst_151 {dimension_numbers = #tpu.dot_dimension_numbers<[1], [1], [0], [0], [0, 0, 1, 0], [], []>} : vector<8x8xf32>, vector<8x8xf32>, vector<8x8xf32> -> vector<8x8xf32>
    %cst_152 = arith.constant -1.000000e+10 : f32
    %308 = vector.broadcast %cst_152 : f32 to vector<8x8xf32>
    %309 = arith.select %7, %307, %308 : vector<8x8xi1>, vector<8x8xf32>
    %cst_153 = arith.constant dense<0xFF800000> : vector<8xf32>
    %310 = vector.multi_reduction <maximumf>, %309, %cst_153 [1] : vector<8x8xf32> to vector<8xf32>
    %311 = vector.shape_cast %310 : vector<8xf32> to vector<8x1xf32>
    %312 = vector.broadcast %311 : vector<8x1xf32> to vector<8x8xf32>
    %313 = arith.subf %309, %312 : vector<8x8xf32>
    %314 = math.exp %313 : vector<8x8xf32>
    %cst_154 = arith.constant dense<0.000000e+00> : vector<8xf32>
    %315 = vector.multi_reduction <add>, %314, %cst_154 [1] : vector<8x8xf32> to vector<8xf32>
    %316 = vector.shape_cast %315 : vector<8xf32> to vector<8x1xf32>
    %317 = tpu.reciprocal %316 {approx = true} : vector<8x1xf32> -> vector<8x1xf32>
    %318 = vector.broadcast %317 : vector<8x1xf32> to vector<8x8xf32>
    %319 = arith.mulf %314, %318 : vector<8x8xf32>
    %320 = vector.extract_strided_slice %302 {offsets = [0, 0], sizes = [8, 8], strides = [1, 1]} : vector<8x32xf32> to vector<8x8xf32>
    %cst_155 = arith.constant dense<0.000000e+00> : vector<8x8xf32>
    %321 = tpu.matmul %319, %320, %cst_155 {dimension_numbers = #tpu.dot_dimension_numbers<[1], [0], [0], [1], [0, 0, 1, 1], [], []>} : vector<8x8xf32>, vector<8x8xf32>, vector<8x8xf32> -> vector<8x8xf32>
    %322 = vector.extract_strided_slice %304 {offsets = [0, 8], sizes = [8, 8], strides = [1, 1]} : vector<8x32xf32> to vector<8x8xf32>
    %323 = vector.extract_strided_slice %301 {offsets = [0, 8], sizes = [8, 8], strides = [1, 1]} : vector<8x32xf32> to vector<8x8xf32>
    %cst_156 = arith.constant dense<0.000000e+00> : vector<8x8xf32>
    %324 = tpu.matmul %322, %323, %cst_156 {dimension_numbers = #tpu.dot_dimension_numbers<[1], [1], [0], [0], [0, 0, 1, 0], [], []>} : vector<8x8xf32>, vector<8x8xf32>, vector<8x8xf32> -> vector<8x8xf32>
    %cst_157 = arith.constant -1.000000e+10 : f32
    %325 = vector.broadcast %cst_157 : f32 to vector<8x8xf32>
    %326 = arith.select %7, %324, %325 : vector<8x8xi1>, vector<8x8xf32>
    %cst_158 = arith.constant dense<0xFF800000> : vector<8xf32>
    %327 = vector.multi_reduction <maximumf>, %326, %cst_158 [1] : vector<8x8xf32> to vector<8xf32>
    %328 = vector.shape_cast %327 : vector<8xf32> to vector<8x1xf32>
    %329 = vector.broadcast %328 : vector<8x1xf32> to vector<8x8xf32>
    %330 = arith.subf %326, %329 : vector<8x8xf32>
    %331 = math.exp %330 : vector<8x8xf32>
    %cst_159 = arith.constant dense<0.000000e+00> : vector<8xf32>
    %332 = vector.multi_reduction <add>, %331, %cst_159 [1] : vector<8x8xf32> to vector<8xf32>
    %333 = vector.shape_cast %332 : vector<8xf32> to vector<8x1xf32>
    %334 = tpu.reciprocal %333 {approx = true} : vector<8x1xf32> -> vector<8x1xf32>
    %335 = vector.broadcast %334 : vector<8x1xf32> to vector<8x8xf32>
    %336 = arith.mulf %331, %335 : vector<8x8xf32>
    %337 = vector.extract_strided_slice %302 {offsets = [0, 8], sizes = [8, 8], strides = [1, 1]} : vector<8x32xf32> to vector<8x8xf32>
    %cst_160 = arith.constant dense<0.000000e+00> : vector<8x8xf32>
    %338 = tpu.matmul %336, %337, %cst_160 {dimension_numbers = #tpu.dot_dimension_numbers<[1], [0], [0], [1], [0, 0, 1, 1], [], []>} : vector<8x8xf32>, vector<8x8xf32>, vector<8x8xf32> -> vector<8x8xf32>
    %339 = vector.extract_strided_slice %304 {offsets = [0, 16], sizes = [8, 8], strides = [1, 1]} : vector<8x32xf32> to vector<8x8xf32>
    %340 = vector.extract_strided_slice %301 {offsets = [0, 16], sizes = [8, 8], strides = [1, 1]} : vector<8x32xf32> to vector<8x8xf32>
    %cst_161 = arith.constant dense<0.000000e+00> : vector<8x8xf32>
    %341 = tpu.matmul %339, %340, %cst_161 {dimension_numbers = #tpu.dot_dimension_numbers<[1], [1], [0], [0], [0, 0, 1, 0], [], []>} : vector<8x8xf32>, vector<8x8xf32>, vector<8x8xf32> -> vector<8x8xf32>
    %cst_162 = arith.constant -1.000000e+10 : f32
    %342 = vector.broadcast %cst_162 : f32 to vector<8x8xf32>
    %343 = arith.select %7, %341, %342 : vector<8x8xi1>, vector<8x8xf32>
    %cst_163 = arith.constant dense<0xFF800000> : vector<8xf32>
    %344 = vector.multi_reduction <maximumf>, %343, %cst_163 [1] : vector<8x8xf32> to vector<8xf32>
    %345 = vector.shape_cast %344 : vector<8xf32> to vector<8x1xf32>
    %346 = vector.broadcast %345 : vector<8x1xf32> to vector<8x8xf32>
    %347 = arith.subf %343, %346 : vector<8x8xf32>
    %348 = math.exp %347 : vector<8x8xf32>
    %cst_164 = arith.constant dense<0.000000e+00> : vector<8xf32>
    %349 = vector.multi_reduction <add>, %348, %cst_164 [1] : vector<8x8xf32> to vector<8xf32>
    %350 = vector.shape_cast %349 : vector<8xf32> to vector<8x1xf32>
    %351 = tpu.reciprocal %350 {approx = true} : vector<8x1xf32> -> vector<8x1xf32>
    %352 = vector.broadcast %351 : vector<8x1xf32> to vector<8x8xf32>
    %353 = arith.mulf %348, %352 : vector<8x8xf32>
    %354 = vector.extract_strided_slice %302 {offsets = [0, 16], sizes = [8, 8], strides = [1, 1]} : vector<8x32xf32> to vector<8x8xf32>
    %cst_165 = arith.constant dense<0.000000e+00> : vector<8x8xf32>
    %355 = tpu.matmul %353, %354, %cst_165 {dimension_numbers = #tpu.dot_dimension_numbers<[1], [0], [0], [1], [0, 0, 1, 1], [], []>} : vector<8x8xf32>, vector<8x8xf32>, vector<8x8xf32> -> vector<8x8xf32>
    %356 = vector.extract_strided_slice %304 {offsets = [0, 24], sizes = [8, 8], strides = [1, 1]} : vector<8x32xf32> to vector<8x8xf32>
    %357 = vector.extract_strided_slice %301 {offsets = [0, 24], sizes = [8, 8], strides = [1, 1]} : vector<8x32xf32> to vector<8x8xf32>
    %cst_166 = arith.constant dense<0.000000e+00> : vector<8x8xf32>
    %358 = tpu.matmul %356, %357, %cst_166 {dimension_numbers = #tpu.dot_dimension_numbers<[1], [1], [0], [0], [0, 0, 1, 0], [], []>} : vector<8x8xf32>, vector<8x8xf32>, vector<8x8xf32> -> vector<8x8xf32>
    %cst_167 = arith.constant -1.000000e+10 : f32
    %359 = vector.broadcast %cst_167 : f32 to vector<8x8xf32>
    %360 = arith.select %7, %358, %359 : vector<8x8xi1>, vector<8x8xf32>
    %cst_168 = arith.constant dense<0xFF800000> : vector<8xf32>
    %361 = vector.multi_reduction <maximumf>, %360, %cst_168 [1] : vector<8x8xf32> to vector<8xf32>
    %362 = vector.shape_cast %361 : vector<8xf32> to vector<8x1xf32>
    %363 = vector.broadcast %362 : vector<8x1xf32> to vector<8x8xf32>
    %364 = arith.subf %360, %363 : vector<8x8xf32>
    %365 = math.exp %364 : vector<8x8xf32>
    %cst_169 = arith.constant dense<0.000000e+00> : vector<8xf32>
    %366 = vector.multi_reduction <add>, %365, %cst_169 [1] : vector<8x8xf32> to vector<8xf32>
    %367 = vector.shape_cast %366 : vector<8xf32> to vector<8x1xf32>
    %368 = tpu.reciprocal %367 {approx = true} : vector<8x1xf32> -> vector<8x1xf32>
    %369 = vector.broadcast %368 : vector<8x1xf32> to vector<8x8xf32>
    %370 = arith.mulf %365, %369 : vector<8x8xf32>
    %371 = vector.extract_strided_slice %302 {offsets = [0, 24], sizes = [8, 8], strides = [1, 1]} : vector<8x32xf32> to vector<8x8xf32>
    %cst_170 = arith.constant dense<0.000000e+00> : vector<8x8xf32>
    %372 = tpu.matmul %370, %371, %cst_170 {dimension_numbers = #tpu.dot_dimension_numbers<[1], [0], [0], [1], [0, 0, 1, 1], [], []>} : vector<8x8xf32>, vector<8x8xf32>, vector<8x8xf32> -> vector<8x8xf32>
    %373 = tpu.concatenate %321, %338, %355, %372 in 1 : vector<8x8xf32>, vector<8x8xf32>, vector<8x8xf32>, vector<8x8xf32> -> vector<8x32xf32>
    %c1_171 = arith.constant 1 : index
    %c0_172 = arith.constant 0 : index
    %c0_173 = arith.constant 0 : index
    %374 = vector.load %arg7[%c1_171, %c0_172, %c0_173] : memref<2x32x32xf32, #tpu.memory_space<vmem>>, vector<1x32x32xf32>
    %375 = vector.shape_cast %374 : vector<1x32x32xf32> to vector<32x32xf32>
    %cst_174 = arith.constant dense<0.000000e+00> : vector<8x32xf32>
    %376 = tpu.matmul %373, %375, %cst_174 {dimension_numbers = #tpu.dot_dimension_numbers<[1], [0], [0], [1], [0, 0, 1, 1], [], []>} : vector<8x32xf32>, vector<32x32xf32>, vector<8x32xf32> -> vector<8x32xf32>
    %c1_175 = arith.constant 1 : index
    %c0_176 = arith.constant 0 : index
    %c0_177 = arith.constant 0 : index
    %377 = vector.load %arg8[%c1_175, %c0_176, %c0_177] : memref<2x1x32xf32, #tpu.memory_space<vmem>>, vector<1x1x32xf32>
    %378 = vector.shape_cast %377 : vector<1x1x32xf32> to vector<1x32xf32>
    %379 = vector.broadcast %378 : vector<1x32xf32> to vector<8x32xf32>
    %380 = arith.addf %376, %379 : vector<8x32xf32>
    %c1_178 = arith.constant 1 : index
    %c0_179 = arith.constant 0 : index
    %c0_180 = arith.constant 0 : index
    %c0_181 = arith.constant 0 : index
    %381 = vector.load %arg15[%c1_178, %c0_179, %c0_180, %c0_181] : memref<2x3x1x32xf32, #tpu.memory_space<vmem>>, vector<1x1x1x32xf32>
    %382 = vector.shape_cast %381 : vector<1x1x1x32xf32> to vector<1x32xf32>
    %c1_182 = arith.constant 1 : index
    %c0_183 = arith.constant 0 : index
    %c0_184 = arith.constant 0 : index
    %c0_185 = arith.constant 0 : index
    %383 = vector.load %arg16[%c1_182, %c0_183, %c0_184, %c0_185] : memref<2x3x1x32xf32, #tpu.memory_space<vmem>>, vector<1x1x1x32xf32>
    %384 = vector.shape_cast %383 : vector<1x1x1x32xf32> to vector<1x32xf32>
    %385 = arith.addf %380, %292 : vector<8x32xf32>
    %cst_186 = arith.constant dense<0.000000e+00> : vector<8xf32>
    %386 = vector.multi_reduction <add>, %385, %cst_186 [1] : vector<8x32xf32> to vector<8xf32>
    %387 = vector.shape_cast %386 : vector<8xf32> to vector<8x1xf32>
    %cst_187 = arith.constant 3.200000e+01 : f32
    %388 = vector.broadcast %cst_187 : f32 to vector<8x1xf32>
    %389 = arith.divf %387, %388 : vector<8x1xf32>
    %390 = vector.broadcast %389 : vector<8x1xf32> to vector<8x32xf32>
    %391 = arith.subf %385, %390 : vector<8x32xf32>
    %392 = arith.mulf %391, %391 : vector<8x32xf32>
    %cst_188 = arith.constant dense<0.000000e+00> : vector<8xf32>
    %393 = vector.multi_reduction <add>, %392, %cst_188 [1] : vector<8x32xf32> to vector<8xf32>
    %394 = vector.shape_cast %393 : vector<8xf32> to vector<8x1xf32>
    %cst_189 = arith.constant 3.200000e+01 : f32
    %395 = vector.broadcast %cst_189 : f32 to vector<8x1xf32>
    %396 = arith.divf %394, %395 : vector<8x1xf32>
    %397 = vector.broadcast %389 : vector<8x1xf32> to vector<8x32xf32>
    %398 = arith.subf %385, %397 : vector<8x32xf32>
    %cst_190 = arith.constant 9.99999974E-6 : f32
    %399 = vector.broadcast %cst_190 : f32 to vector<8x1xf32>
    %400 = arith.addf %396, %399 : vector<8x1xf32>
    %401 = math.rsqrt %400 : vector<8x1xf32>
    %402 = vector.broadcast %401 : vector<8x1xf32> to vector<8x32xf32>
    %403 = arith.mulf %398, %402 : vector<8x32xf32>
    %404 = vector.broadcast %382 : vector<1x32xf32> to vector<8x32xf32>
    %405 = arith.mulf %403, %404 : vector<8x32xf32>
    %406 = vector.broadcast %384 : vector<1x32xf32> to vector<8x32xf32>
    %407 = arith.addf %405, %406 : vector<8x32xf32>
    %c1_191 = arith.constant 1 : index
    %c0_192 = arith.constant 0 : index
    %c0_193 = arith.constant 0 : index
    %408 = vector.load %arg9[%c1_191, %c0_192, %c0_193] : memref<2x32x32xf32, #tpu.memory_space<vmem>>, vector<1x32x32xf32>
    %409 = vector.shape_cast %408 : vector<1x32x32xf32> to vector<32x32xf32>
    %cst_194 = arith.constant dense<0.000000e+00> : vector<8x32xf32>
    %410 = tpu.matmul %407, %409, %cst_194 {dimension_numbers = #tpu.dot_dimension_numbers<[1], [0], [0], [1], [0, 0, 1, 1], [], []>} : vector<8x32xf32>, vector<32x32xf32>, vector<8x32xf32> -> vector<8x32xf32>
    %c1_195 = arith.constant 1 : index
    %c0_196 = arith.constant 0 : index
    %c0_197 = arith.constant 0 : index
    %411 = vector.load %arg10[%c1_195, %c0_196, %c0_197] : memref<2x1x32xf32, #tpu.memory_space<vmem>>, vector<1x1x32xf32>
    %412 = vector.shape_cast %411 : vector<1x1x32xf32> to vector<1x32xf32>
    %413 = vector.broadcast %412 : vector<1x32xf32> to vector<8x32xf32>
    %414 = arith.addf %410, %413 : vector<8x32xf32>
    %c1_198 = arith.constant 1 : index
    %c0_199 = arith.constant 0 : index
    %c0_200 = arith.constant 0 : index
    %415 = vector.load %arg11[%c1_198, %c0_199, %c0_200] : memref<2x32x64xf32, #tpu.memory_space<vmem>>, vector<1x32x64xf32>
    %416 = vector.shape_cast %415 : vector<1x32x64xf32> to vector<32x64xf32>
    %cst_201 = arith.constant dense<0.000000e+00> : vector<8x64xf32>
    %417 = tpu.matmul %3, %416, %cst_201 {dimension_numbers = #tpu.dot_dimension_numbers<[1], [0], [0], [1], [0, 0, 1, 1], [], []>} : vector<8x32xf32>, vector<32x64xf32>, vector<8x64xf32> -> vector<8x64xf32>
    %c1_202 = arith.constant 1 : index
    %c0_203 = arith.constant 0 : index
    %c0_204 = arith.constant 0 : index
    %418 = vector.load %arg12[%c1_202, %c0_203, %c0_204] : memref<2x1x64xf32, #tpu.memory_space<vmem>>, vector<1x1x64xf32>
    %419 = vector.shape_cast %418 : vector<1x1x64xf32> to vector<1x64xf32>
    %420 = vector.broadcast %419 : vector<1x64xf32> to vector<8x64xf32>
    %421 = arith.addf %417, %420 : vector<8x64xf32>
    %422 = vector.extract_strided_slice %421 {offsets = [0, 0], sizes = [8, 32], strides = [1, 1]} : vector<8x64xf32> to vector<8x32xf32>
    %423 = vector.extract_strided_slice %421 {offsets = [0, 32], sizes = [8, 32], strides = [1, 1]} : vector<8x64xf32> to vector<8x32xf32>
    %cst_205 = arith.constant 0.353553385 : f32
    %424 = vector.broadcast %cst_205 : f32 to vector<8x32xf32>
    %425 = arith.mulf %414, %424 : vector<8x32xf32>
    %426 = vector.extract_strided_slice %425 {offsets = [0, 0], sizes = [8, 8], strides = [1, 1]} : vector<8x32xf32> to vector<8x8xf32>
    %427 = vector.extract_strided_slice %422 {offsets = [0, 0], sizes = [8, 8], strides = [1, 1]} : vector<8x32xf32> to vector<8x8xf32>
    %cst_206 = arith.constant dense<0.000000e+00> : vector<8x8xf32>
    %428 = tpu.matmul %426, %427, %cst_206 {dimension_numbers = #tpu.dot_dimension_numbers<[1], [1], [0], [0], [0, 0, 1, 0], [], []>} : vector<8x8xf32>, vector<8x8xf32>, vector<8x8xf32> -> vector<8x8xf32>
    %cst_207 = arith.constant -1.000000e+10 : f32
    %429 = vector.broadcast %cst_207 : f32 to vector<8x8xf32>
    %430 = arith.select %13, %428, %429 : vector<8x8xi1>, vector<8x8xf32>
    %cst_208 = arith.constant dense<0xFF800000> : vector<8xf32>
    %431 = vector.multi_reduction <maximumf>, %430, %cst_208 [1] : vector<8x8xf32> to vector<8xf32>
    %432 = vector.shape_cast %431 : vector<8xf32> to vector<8x1xf32>
    %433 = vector.broadcast %432 : vector<8x1xf32> to vector<8x8xf32>
    %434 = arith.subf %430, %433 : vector<8x8xf32>
    %435 = math.exp %434 : vector<8x8xf32>
    %cst_209 = arith.constant dense<0.000000e+00> : vector<8xf32>
    %436 = vector.multi_reduction <add>, %435, %cst_209 [1] : vector<8x8xf32> to vector<8xf32>
    %437 = vector.shape_cast %436 : vector<8xf32> to vector<8x1xf32>
    %438 = tpu.reciprocal %437 {approx = true} : vector<8x1xf32> -> vector<8x1xf32>
    %439 = vector.broadcast %438 : vector<8x1xf32> to vector<8x8xf32>
    %440 = arith.mulf %435, %439 : vector<8x8xf32>
    %441 = vector.extract_strided_slice %423 {offsets = [0, 0], sizes = [8, 8], strides = [1, 1]} : vector<8x32xf32> to vector<8x8xf32>
    %cst_210 = arith.constant dense<0.000000e+00> : vector<8x8xf32>
    %442 = tpu.matmul %440, %441, %cst_210 {dimension_numbers = #tpu.dot_dimension_numbers<[1], [0], [0], [1], [0, 0, 1, 1], [], []>} : vector<8x8xf32>, vector<8x8xf32>, vector<8x8xf32> -> vector<8x8xf32>
    %443 = vector.extract_strided_slice %425 {offsets = [0, 8], sizes = [8, 8], strides = [1, 1]} : vector<8x32xf32> to vector<8x8xf32>
    %444 = vector.extract_strided_slice %422 {offsets = [0, 8], sizes = [8, 8], strides = [1, 1]} : vector<8x32xf32> to vector<8x8xf32>
    %cst_211 = arith.constant dense<0.000000e+00> : vector<8x8xf32>
    %445 = tpu.matmul %443, %444, %cst_211 {dimension_numbers = #tpu.dot_dimension_numbers<[1], [1], [0], [0], [0, 0, 1, 0], [], []>} : vector<8x8xf32>, vector<8x8xf32>, vector<8x8xf32> -> vector<8x8xf32>
    %cst_212 = arith.constant -1.000000e+10 : f32
    %446 = vector.broadcast %cst_212 : f32 to vector<8x8xf32>
    %447 = arith.select %13, %445, %446 : vector<8x8xi1>, vector<8x8xf32>
    %cst_213 = arith.constant dense<0xFF800000> : vector<8xf32>
    %448 = vector.multi_reduction <maximumf>, %447, %cst_213 [1] : vector<8x8xf32> to vector<8xf32>
    %449 = vector.shape_cast %448 : vector<8xf32> to vector<8x1xf32>
    %450 = vector.broadcast %449 : vector<8x1xf32> to vector<8x8xf32>
    %451 = arith.subf %447, %450 : vector<8x8xf32>
    %452 = math.exp %451 : vector<8x8xf32>
    %cst_214 = arith.constant dense<0.000000e+00> : vector<8xf32>
    %453 = vector.multi_reduction <add>, %452, %cst_214 [1] : vector<8x8xf32> to vector<8xf32>
    %454 = vector.shape_cast %453 : vector<8xf32> to vector<8x1xf32>
    %455 = tpu.reciprocal %454 {approx = true} : vector<8x1xf32> -> vector<8x1xf32>
    %456 = vector.broadcast %455 : vector<8x1xf32> to vector<8x8xf32>
    %457 = arith.mulf %452, %456 : vector<8x8xf32>
    %458 = vector.extract_strided_slice %423 {offsets = [0, 8], sizes = [8, 8], strides = [1, 1]} : vector<8x32xf32> to vector<8x8xf32>
    %cst_215 = arith.constant dense<0.000000e+00> : vector<8x8xf32>
    %459 = tpu.matmul %457, %458, %cst_215 {dimension_numbers = #tpu.dot_dimension_numbers<[1], [0], [0], [1], [0, 0, 1, 1], [], []>} : vector<8x8xf32>, vector<8x8xf32>, vector<8x8xf32> -> vector<8x8xf32>
    %460 = vector.extract_strided_slice %425 {offsets = [0, 16], sizes = [8, 8], strides = [1, 1]} : vector<8x32xf32> to vector<8x8xf32>
    %461 = vector.extract_strided_slice %422 {offsets = [0, 16], sizes = [8, 8], strides = [1, 1]} : vector<8x32xf32> to vector<8x8xf32>
    %cst_216 = arith.constant dense<0.000000e+00> : vector<8x8xf32>
    %462 = tpu.matmul %460, %461, %cst_216 {dimension_numbers = #tpu.dot_dimension_numbers<[1], [1], [0], [0], [0, 0, 1, 0], [], []>} : vector<8x8xf32>, vector<8x8xf32>, vector<8x8xf32> -> vector<8x8xf32>
    %cst_217 = arith.constant -1.000000e+10 : f32
    %463 = vector.broadcast %cst_217 : f32 to vector<8x8xf32>
    %464 = arith.select %13, %462, %463 : vector<8x8xi1>, vector<8x8xf32>
    %cst_218 = arith.constant dense<0xFF800000> : vector<8xf32>
    %465 = vector.multi_reduction <maximumf>, %464, %cst_218 [1] : vector<8x8xf32> to vector<8xf32>
    %466 = vector.shape_cast %465 : vector<8xf32> to vector<8x1xf32>
    %467 = vector.broadcast %466 : vector<8x1xf32> to vector<8x8xf32>
    %468 = arith.subf %464, %467 : vector<8x8xf32>
    %469 = math.exp %468 : vector<8x8xf32>
    %cst_219 = arith.constant dense<0.000000e+00> : vector<8xf32>
    %470 = vector.multi_reduction <add>, %469, %cst_219 [1] : vector<8x8xf32> to vector<8xf32>
    %471 = vector.shape_cast %470 : vector<8xf32> to vector<8x1xf32>
    %472 = tpu.reciprocal %471 {approx = true} : vector<8x1xf32> -> vector<8x1xf32>
    %473 = vector.broadcast %472 : vector<8x1xf32> to vector<8x8xf32>
    %474 = arith.mulf %469, %473 : vector<8x8xf32>
    %475 = vector.extract_strided_slice %423 {offsets = [0, 16], sizes = [8, 8], strides = [1, 1]} : vector<8x32xf32> to vector<8x8xf32>
    %cst_220 = arith.constant dense<0.000000e+00> : vector<8x8xf32>
    %476 = tpu.matmul %474, %475, %cst_220 {dimension_numbers = #tpu.dot_dimension_numbers<[1], [0], [0], [1], [0, 0, 1, 1], [], []>} : vector<8x8xf32>, vector<8x8xf32>, vector<8x8xf32> -> vector<8x8xf32>
    %477 = vector.extract_strided_slice %425 {offsets = [0, 24], sizes = [8, 8], strides = [1, 1]} : vector<8x32xf32> to vector<8x8xf32>
    %478 = vector.extract_strided_slice %422 {offsets = [0, 24], sizes = [8, 8], strides = [1, 1]} : vector<8x32xf32> to vector<8x8xf32>
    %cst_221 = arith.constant dense<0.000000e+00> : vector<8x8xf32>
    %479 = tpu.matmul %477, %478, %cst_221 {dimension_numbers = #tpu.dot_dimension_numbers<[1], [1], [0], [0], [0, 0, 1, 0], [], []>} : vector<8x8xf32>, vector<8x8xf32>, vector<8x8xf32> -> vector<8x8xf32>
    %cst_222 = arith.constant -1.000000e+10 : f32
    %480 = vector.broadcast %cst_222 : f32 to vector<8x8xf32>
    %481 = arith.select %13, %479, %480 : vector<8x8xi1>, vector<8x8xf32>
    %cst_223 = arith.constant dense<0xFF800000> : vector<8xf32>
    %482 = vector.multi_reduction <maximumf>, %481, %cst_223 [1] : vector<8x8xf32> to vector<8xf32>
    %483 = vector.shape_cast %482 : vector<8xf32> to vector<8x1xf32>
    %484 = vector.broadcast %483 : vector<8x1xf32> to vector<8x8xf32>
    %485 = arith.subf %481, %484 : vector<8x8xf32>
    %486 = math.exp %485 : vector<8x8xf32>
    %cst_224 = arith.constant dense<0.000000e+00> : vector<8xf32>
    %487 = vector.multi_reduction <add>, %486, %cst_224 [1] : vector<8x8xf32> to vector<8xf32>
    %488 = vector.shape_cast %487 : vector<8xf32> to vector<8x1xf32>
    %489 = tpu.reciprocal %488 {approx = true} : vector<8x1xf32> -> vector<8x1xf32>
    %490 = vector.broadcast %489 : vector<8x1xf32> to vector<8x8xf32>
    %491 = arith.mulf %486, %490 : vector<8x8xf32>
    %492 = vector.extract_strided_slice %423 {offsets = [0, 24], sizes = [8, 8], strides = [1, 1]} : vector<8x32xf32> to vector<8x8xf32>
    %cst_225 = arith.constant dense<0.000000e+00> : vector<8x8xf32>
    %493 = tpu.matmul %491, %492, %cst_225 {dimension_numbers = #tpu.dot_dimension_numbers<[1], [0], [0], [1], [0, 0, 1, 1], [], []>} : vector<8x8xf32>, vector<8x8xf32>, vector<8x8xf32> -> vector<8x8xf32>
    %494 = tpu.concatenate %442, %459, %476, %493 in 1 : vector<8x8xf32>, vector<8x8xf32>, vector<8x8xf32>, vector<8x8xf32> -> vector<8x32xf32>
    %c1_226 = arith.constant 1 : index
    %c0_227 = arith.constant 0 : index
    %c0_228 = arith.constant 0 : index
    %495 = vector.load %arg13[%c1_226, %c0_227, %c0_228] : memref<2x32x32xf32, #tpu.memory_space<vmem>>, vector<1x32x32xf32>
    %496 = vector.shape_cast %495 : vector<1x32x32xf32> to vector<32x32xf32>
    %cst_229 = arith.constant dense<0.000000e+00> : vector<8x32xf32>
    %497 = tpu.matmul %494, %496, %cst_229 {dimension_numbers = #tpu.dot_dimension_numbers<[1], [0], [0], [1], [0, 0, 1, 1], [], []>} : vector<8x32xf32>, vector<32x32xf32>, vector<8x32xf32> -> vector<8x32xf32>
    %c1_230 = arith.constant 1 : index
    %c0_231 = arith.constant 0 : index
    %c0_232 = arith.constant 0 : index
    %498 = vector.load %arg14[%c1_230, %c0_231, %c0_232] : memref<2x1x32xf32, #tpu.memory_space<vmem>>, vector<1x1x32xf32>
    %499 = vector.shape_cast %498 : vector<1x1x32xf32> to vector<1x32xf32>
    %500 = vector.broadcast %499 : vector<1x32xf32> to vector<8x32xf32>
    %501 = arith.addf %497, %500 : vector<8x32xf32>
    %c1_233 = arith.constant 1 : index
    %c1_234 = arith.constant 1 : index
    %c0_235 = arith.constant 0 : index
    %c0_236 = arith.constant 0 : index
    %502 = vector.load %arg15[%c1_233, %c1_234, %c0_235, %c0_236] : memref<2x3x1x32xf32, #tpu.memory_space<vmem>>, vector<1x1x1x32xf32>
    %503 = vector.shape_cast %502 : vector<1x1x1x32xf32> to vector<1x32xf32>
    %c1_237 = arith.constant 1 : index
    %c1_238 = arith.constant 1 : index
    %c0_239 = arith.constant 0 : index
    %c0_240 = arith.constant 0 : index
    %504 = vector.load %arg16[%c1_237, %c1_238, %c0_239, %c0_240] : memref<2x3x1x32xf32, #tpu.memory_space<vmem>>, vector<1x1x1x32xf32>
    %505 = vector.shape_cast %504 : vector<1x1x1x32xf32> to vector<1x32xf32>
    %506 = arith.addf %501, %407 : vector<8x32xf32>
    %cst_241 = arith.constant dense<0.000000e+00> : vector<8xf32>
    %507 = vector.multi_reduction <add>, %506, %cst_241 [1] : vector<8x32xf32> to vector<8xf32>
    %508 = vector.shape_cast %507 : vector<8xf32> to vector<8x1xf32>
    %cst_242 = arith.constant 3.200000e+01 : f32
    %509 = vector.broadcast %cst_242 : f32 to vector<8x1xf32>
    %510 = arith.divf %508, %509 : vector<8x1xf32>
    %511 = vector.broadcast %510 : vector<8x1xf32> to vector<8x32xf32>
    %512 = arith.subf %506, %511 : vector<8x32xf32>
    %513 = arith.mulf %512, %512 : vector<8x32xf32>
    %cst_243 = arith.constant dense<0.000000e+00> : vector<8xf32>
    %514 = vector.multi_reduction <add>, %513, %cst_243 [1] : vector<8x32xf32> to vector<8xf32>
    %515 = vector.shape_cast %514 : vector<8xf32> to vector<8x1xf32>
    %cst_244 = arith.constant 3.200000e+01 : f32
    %516 = vector.broadcast %cst_244 : f32 to vector<8x1xf32>
    %517 = arith.divf %515, %516 : vector<8x1xf32>
    %518 = vector.broadcast %510 : vector<8x1xf32> to vector<8x32xf32>
    %519 = arith.subf %506, %518 : vector<8x32xf32>
    %cst_245 = arith.constant 9.99999974E-6 : f32
    %520 = vector.broadcast %cst_245 : f32 to vector<8x1xf32>
    %521 = arith.addf %517, %520 : vector<8x1xf32>
    %522 = math.rsqrt %521 : vector<8x1xf32>
    %523 = vector.broadcast %522 : vector<8x1xf32> to vector<8x32xf32>
    %524 = arith.mulf %519, %523 : vector<8x32xf32>
    %525 = vector.broadcast %503 : vector<1x32xf32> to vector<8x32xf32>
    %526 = arith.mulf %524, %525 : vector<8x32xf32>
    %527 = vector.broadcast %505 : vector<1x32xf32> to vector<8x32xf32>
    %528 = arith.addf %526, %527 : vector<8x32xf32>
    %c1_246 = arith.constant 1 : index
    %c0_247 = arith.constant 0 : index
    %c0_248 = arith.constant 0 : index
    %529 = vector.load %arg17[%c1_246, %c0_247, %c0_248] : memref<2x32x64xf32, #tpu.memory_space<vmem>>, vector<1x32x64xf32>
    %530 = vector.shape_cast %529 : vector<1x32x64xf32> to vector<32x64xf32>
    %cst_249 = arith.constant dense<0.000000e+00> : vector<8x64xf32>
    %531 = tpu.matmul %528, %530, %cst_249 {dimension_numbers = #tpu.dot_dimension_numbers<[1], [0], [0], [1], [0, 0, 1, 1], [], []>} : vector<8x32xf32>, vector<32x64xf32>, vector<8x64xf32> -> vector<8x64xf32>
    %c1_250 = arith.constant 1 : index
    %c0_251 = arith.constant 0 : index
    %c0_252 = arith.constant 0 : index
    %532 = vector.load %arg18[%c1_250, %c0_251, %c0_252] : memref<2x1x64xf32, #tpu.memory_space<vmem>>, vector<1x1x64xf32>
    %533 = vector.shape_cast %532 : vector<1x1x64xf32> to vector<1x64xf32>
    %534 = vector.broadcast %533 : vector<1x64xf32> to vector<8x64xf32>
    %535 = arith.addf %531, %534 : vector<8x64xf32>
    %cst_253 = arith.constant 0.000000e+00 : f32
    %536 = vector.broadcast %cst_253 : f32 to vector<8x64xf32>
    %537 = arith.maximumf %535, %536 : vector<8x64xf32>
    %c1_254 = arith.constant 1 : index
    %c0_255 = arith.constant 0 : index
    %c0_256 = arith.constant 0 : index
    %538 = vector.load %arg19[%c1_254, %c0_255, %c0_256] : memref<2x64x32xf32, #tpu.memory_space<vmem>>, vector<1x64x32xf32>
    %539 = vector.shape_cast %538 : vector<1x64x32xf32> to vector<64x32xf32>
    %cst_257 = arith.constant dense<0.000000e+00> : vector<8x32xf32>
    %540 = tpu.matmul %537, %539, %cst_257 {dimension_numbers = #tpu.dot_dimension_numbers<[1], [0], [0], [1], [0, 0, 1, 1], [], []>} : vector<8x64xf32>, vector<64x32xf32>, vector<8x32xf32> -> vector<8x32xf32>
    %c1_258 = arith.constant 1 : index
    %c0_259 = arith.constant 0 : index
    %c0_260 = arith.constant 0 : index
    %541 = vector.load %arg20[%c1_258, %c0_259, %c0_260] : memref<2x1x32xf32, #tpu.memory_space<vmem>>, vector<1x1x32xf32>
    %542 = vector.shape_cast %541 : vector<1x1x32xf32> to vector<1x32xf32>
    %543 = vector.broadcast %542 : vector<1x32xf32> to vector<8x32xf32>
    %544 = arith.addf %540, %543 : vector<8x32xf32>
    %c1_261 = arith.constant 1 : index
    %c2_262 = arith.constant 2 : index
    %c0_263 = arith.constant 0 : index
    %c0_264 = arith.constant 0 : index
    %545 = vector.load %arg15[%c1_261, %c2_262, %c0_263, %c0_264] : memref<2x3x1x32xf32, #tpu.memory_space<vmem>>, vector<1x1x1x32xf32>
    %546 = vector.shape_cast %545 : vector<1x1x1x32xf32> to vector<1x32xf32>
    %c1_265 = arith.constant 1 : index
    %c2_266 = arith.constant 2 : index
    %c0_267 = arith.constant 0 : index
    %c0_268 = arith.constant 0 : index
    %547 = vector.load %arg16[%c1_265, %c2_266, %c0_267, %c0_268] : memref<2x3x1x32xf32, #tpu.memory_space<vmem>>, vector<1x1x1x32xf32>
    %548 = vector.shape_cast %547 : vector<1x1x1x32xf32> to vector<1x32xf32>
    %549 = arith.addf %544, %528 : vector<8x32xf32>
    %cst_269 = arith.constant dense<0.000000e+00> : vector<8xf32>
    %550 = vector.multi_reduction <add>, %549, %cst_269 [1] : vector<8x32xf32> to vector<8xf32>
    %551 = vector.shape_cast %550 : vector<8xf32> to vector<8x1xf32>
    %cst_270 = arith.constant 3.200000e+01 : f32
    %552 = vector.broadcast %cst_270 : f32 to vector<8x1xf32>
    %553 = arith.divf %551, %552 : vector<8x1xf32>
    %554 = vector.broadcast %553 : vector<8x1xf32> to vector<8x32xf32>
    %555 = arith.subf %549, %554 : vector<8x32xf32>
    %556 = arith.mulf %555, %555 : vector<8x32xf32>
    %cst_271 = arith.constant dense<0.000000e+00> : vector<8xf32>
    %557 = vector.multi_reduction <add>, %556, %cst_271 [1] : vector<8x32xf32> to vector<8xf32>
    %558 = vector.shape_cast %557 : vector<8xf32> to vector<8x1xf32>
    %cst_272 = arith.constant 3.200000e+01 : f32
    %559 = vector.broadcast %cst_272 : f32 to vector<8x1xf32>
    %560 = arith.divf %558, %559 : vector<8x1xf32>
    %561 = vector.broadcast %553 : vector<8x1xf32> to vector<8x32xf32>
    %562 = arith.subf %549, %561 : vector<8x32xf32>
    %cst_273 = arith.constant 9.99999974E-6 : f32
    %563 = vector.broadcast %cst_273 : f32 to vector<8x1xf32>
    %564 = arith.addf %560, %563 : vector<8x1xf32>
    %565 = math.rsqrt %564 : vector<8x1xf32>
    %566 = vector.broadcast %565 : vector<8x1xf32> to vector<8x32xf32>
    %567 = arith.mulf %562, %566 : vector<8x32xf32>
    %568 = vector.broadcast %546 : vector<1x32xf32> to vector<8x32xf32>
    %569 = arith.mulf %567, %568 : vector<8x32xf32>
    %570 = vector.broadcast %548 : vector<1x32xf32> to vector<8x32xf32>
    %571 = arith.addf %569, %570 : vector<8x32xf32>
    %c0_274 = arith.constant 0 : index
    %c0_275 = arith.constant 0 : index
    %c0_276 = arith.constant 0 : index
    %c0_277 = arith.constant 0 : index
    %572 = vector.load %arg24[%c0_274, %c0_275, %c0_276, %c0_277] : memref<1x4x8x8xf32, #tpu.memory_space<vmem>>, vector<1x1x8x8xf32>
    %573 = vector.shape_cast %572 : vector<1x1x8x8xf32> to vector<8x8xf32>
    %574 = vector.shape_cast %319 : vector<8x8xf32> to vector<1x1x8x8xf32>
    tpu.vector_store %arg24[%c0_274, %c0_275, %c0_276, %c0_277], %574 {strides = array<i32>} : memref<1x4x8x8xf32, #tpu.memory_space<vmem>>, vector<1x1x8x8xf32>,
    %c0_278 = arith.constant 0 : index
    %c0_279 = arith.constant 0 : index
    %c0_280 = arith.constant 0 : index
    %c0_281 = arith.constant 0 : index
    %575 = vector.load %arg25[%c0_278, %c0_279, %c0_280, %c0_281] : memref<1x4x8x8xf32, #tpu.memory_space<vmem>>, vector<1x1x8x8xf32>
    %576 = vector.shape_cast %575 : vector<1x1x8x8xf32> to vector<8x8xf32>
    %577 = vector.shape_cast %440 : vector<8x8xf32> to vector<1x1x8x8xf32>
    tpu.vector_store %arg25[%c0_278, %c0_279, %c0_280, %c0_281], %577 {strides = array<i32>} : memref<1x4x8x8xf32, #tpu.memory_space<vmem>>, vector<1x1x8x8xf32>,
    %c0_282 = arith.constant 0 : index
    %c1_283 = arith.constant 1 : index
    %c0_284 = arith.constant 0 : index
    %c0_285 = arith.constant 0 : index
    %578 = vector.load %arg24[%c0_282, %c1_283, %c0_284, %c0_285] : memref<1x4x8x8xf32, #tpu.memory_space<vmem>>, vector<1x1x8x8xf32>
    %579 = vector.shape_cast %578 : vector<1x1x8x8xf32> to vector<8x8xf32>
    %580 = vector.shape_cast %336 : vector<8x8xf32> to vector<1x1x8x8xf32>
    tpu.vector_store %arg24[%c0_282, %c1_283, %c0_284, %c0_285], %580 {strides = array<i32>} : memref<1x4x8x8xf32, #tpu.memory_space<vmem>>, vector<1x1x8x8xf32>,
    %c0_286 = arith.constant 0 : index
    %c1_287 = arith.constant 1 : index
    %c0_288 = arith.constant 0 : index
    %c0_289 = arith.constant 0 : index
    %581 = vector.load %arg25[%c0_286, %c1_287, %c0_288, %c0_289] : memref<1x4x8x8xf32, #tpu.memory_space<vmem>>, vector<1x1x8x8xf32>
    %582 = vector.shape_cast %581 : vector<1x1x8x8xf32> to vector<8x8xf32>
    %583 = vector.shape_cast %457 : vector<8x8xf32> to vector<1x1x8x8xf32>
    tpu.vector_store %arg25[%c0_286, %c1_287, %c0_288, %c0_289], %583 {strides = array<i32>} : memref<1x4x8x8xf32, #tpu.memory_space<vmem>>, vector<1x1x8x8xf32>,
    %c0_290 = arith.constant 0 : index
    %c2_291 = arith.constant 2 : index
    %c0_292 = arith.constant 0 : index
    %c0_293 = arith.constant 0 : index
    %584 = vector.load %arg24[%c0_290, %c2_291, %c0_292, %c0_293] : memref<1x4x8x8xf32, #tpu.memory_space<vmem>>, vector<1x1x8x8xf32>
    %585 = vector.shape_cast %584 : vector<1x1x8x8xf32> to vector<8x8xf32>
    %586 = vector.shape_cast %353 : vector<8x8xf32> to vector<1x1x8x8xf32>
    tpu.vector_store %arg24[%c0_290, %c2_291, %c0_292, %c0_293], %586 {strides = array<i32>} : memref<1x4x8x8xf32, #tpu.memory_space<vmem>>, vector<1x1x8x8xf32>,
    %c0_294 = arith.constant 0 : index
    %c2_295 = arith.constant 2 : index
    %c0_296 = arith.constant 0 : index
    %c0_297 = arith.constant 0 : index
    %587 = vector.load %arg25[%c0_294, %c2_295, %c0_296, %c0_297] : memref<1x4x8x8xf32, #tpu.memory_space<vmem>>, vector<1x1x8x8xf32>
    %588 = vector.shape_cast %587 : vector<1x1x8x8xf32> to vector<8x8xf32>
    %589 = vector.shape_cast %474 : vector<8x8xf32> to vector<1x1x8x8xf32>
    tpu.vector_store %arg25[%c0_294, %c2_295, %c0_296, %c0_297], %589 {strides = array<i32>} : memref<1x4x8x8xf32, #tpu.memory_space<vmem>>, vector<1x1x8x8xf32>,
    %c0_298 = arith.constant 0 : index
    %c3 = arith.constant 3 : index
    %c0_299 = arith.constant 0 : index
    %c0_300 = arith.constant 0 : index
    %590 = vector.load %arg24[%c0_298, %c3, %c0_299, %c0_300] : memref<1x4x8x8xf32, #tpu.memory_space<vmem>>, vector<1x1x8x8xf32>
    %591 = vector.shape_cast %590 : vector<1x1x8x8xf32> to vector<8x8xf32>
    %592 = vector.shape_cast %370 : vector<8x8xf32> to vector<1x1x8x8xf32>
    tpu.vector_store %arg24[%c0_298, %c3, %c0_299, %c0_300], %592 {strides = array<i32>} : memref<1x4x8x8xf32, #tpu.memory_space<vmem>>, vector<1x1x8x8xf32>,
    %c0_301 = arith.constant 0 : index
    %c3_302 = arith.constant 3 : index
    %c0_303 = arith.constant 0 : index
    %c0_304 = arith.constant 0 : index
    %593 = vector.load %arg25[%c0_301, %c3_302, %c0_303, %c0_304] : memref<1x4x8x8xf32, #tpu.memory_space<vmem>>, vector<1x1x8x8xf32>
    %594 = vector.shape_cast %593 : vector<1x1x8x8xf32> to vector<8x8xf32>
    %595 = vector.shape_cast %491 : vector<8x8xf32> to vector<1x1x8x8xf32>
    tpu.vector_store %arg25[%c0_301, %c3_302, %c0_303, %c0_304], %595 {strides = array<i32>} : memref<1x4x8x8xf32, #tpu.memory_space<vmem>>, vector<1x1x8x8xf32>,
    %c0_305 = arith.constant 0 : index
    %c0_306 = arith.constant 0 : index
    %596 = vector.load %arg21[%c0_305, %c0_306] : memref<32x128xf32, #tpu.memory_space<vmem>>, vector<32x128xf32>
    %cst_307 = arith.constant dense<0.000000e+00> : vector<8x128xf32>
    %597 = tpu.matmul %571, %596, %cst_307 {dimension_numbers = #tpu.dot_dimension_numbers<[1], [0], [0], [1], [0, 0, 1, 1], [], []>} : vector<8x32xf32>, vector<32x128xf32>, vector<8x128xf32> -> vector<8x128xf32>
    %c0_308 = arith.constant 0 : index
    %c0_309 = arith.constant 0 : index
    %598 = vector.load %arg22[%c0_308, %c0_309] : memref<1x128xf32, #tpu.memory_space<vmem>>, vector<1x128xf32>
    %599 = vector.broadcast %598 : vector<1x128xf32> to vector<8x128xf32>
    %600 = arith.addf %597, %599 : vector<8x128xf32>
    %c0_310 = arith.constant 0 : index
    %c0_311 = arith.constant 0 : index
    %c0_312 = arith.constant 0 : index
    %601 = vector.load %arg23[%c0_310, %c0_311, %c0_312] : memref<1x8x128xf32, #tpu.memory_space<vmem>>, vector<1x8x128xf32>
    %602 = vector.shape_cast %601 : vector<1x8x128xf32> to vector<8x128xf32>
    %603 = vector.shape_cast %600 : vector<8x128xf32> to vector<1x8x128xf32>
    tpu.vector_store %arg23[%c0_310, %c0_311, %c0_312], %603 {strides = array<i32>} : memref<1x8x128xf32, #tpu.memory_space<vmem>>, vector<1x8x128xf32>,
    return
  }
  func.func @transform_0(%arg0: i32) -> (i32, i32, i32) {
    %c0_i32 = arith.constant 0 : i32
    %c0_i32_0 = arith.constant 0 : i32
    %c0_i32_1 = arith.constant 0 : i32
    return %arg0, %c0_i32, %c0_i32_0 : i32, i32, i32
  }
  func.func @transform_1(%arg0: i32) -> (i32, i32, i32) {
    %c0_i32 = arith.constant 0 : i32
    %c0_i32_0 = arith.constant 0 : i32
    %c0_i32_1 = arith.constant 0 : i32
    return %arg0, %c0_i32, %c0_i32_0 : i32, i32, i32
  }
  func.func @transform_2(%arg0: i32) -> (i32, i32, i32, i32) {
    %c0_i32 = arith.constant 0 : i32
    %c0_i32_0 = arith.constant 0 : i32
    %c0_i32_1 = arith.constant 0 : i32
    %c0_i32_2 = arith.constant 0 : i32
    return %arg0, %c0_i32, %c0_i32_0, %c0_i32_1 : i32, i32, i32, i32
  }
  func.func @transform_3(%arg0: i32) -> (i32, i32, i32, i32) {
    %c0_i32 = arith.constant 0 : i32
    %c0_i32_0 = arith.constant 0 : i32
    %c0_i32_1 = arith.constant 0 : i32
    %c0_i32_2 = arith.constant 0 : i32
    return %arg0, %c0_i32, %c0_i32_0, %c0_i32_1 : i32, i32, i32, i32
  }
  func.func @transform_4(%arg0: i32) -> (i32, i32, i32) {
    %c0_i32 = arith.constant 0 : i32
    %c0_i32_0 = arith.constant 0 : i32
    %c0_i32_1 = arith.constant 0 : i32
    %c0_i32_2 = arith.constant 0 : i32
    return %c0_i32, %c0_i32_0, %c0_i32_1 : i32, i32, i32
  }
  func.func @transform_5(%arg0: i32) -> (i32, i32, i32) {
    %c0_i32 = arith.constant 0 : i32
    %c0_i32_0 = arith.constant 0 : i32
    %c0_i32_1 = arith.constant 0 : i32
    %c0_i32_2 = arith.constant 0 : i32
    return %c0_i32, %c0_i32_0, %c0_i32_1 : i32, i32, i32
  }
  func.func @transform_6(%arg0: i32) -> (i32, i32, i32) {
    %c0_i32 = arith.constant 0 : i32
    %c0_i32_0 = arith.constant 0 : i32
    %c0_i32_1 = arith.constant 0 : i32
    %c0_i32_2 = arith.constant 0 : i32
    return %c0_i32, %c0_i32_0, %c0_i32_1 : i32, i32, i32
  }
  func.func @transform_7(%arg0: i32) -> (i32, i32, i32) {
    %c0_i32 = arith.constant 0 : i32
    %c0_i32_0 = arith.constant 0 : i32
    %c0_i32_1 = arith.constant 0 : i32
    %c0_i32_2 = arith.constant 0 : i32
    return %c0_i32, %c0_i32_0, %c0_i32_1 : i32, i32, i32
  }
  func.func @transform_8(%arg0: i32) -> (i32, i32, i32) {
    %c0_i32 = arith.constant 0 : i32
    %c0_i32_0 = arith.constant 0 : i32
    %c0_i32_1 = arith.constant 0 : i32
    %c0_i32_2 = arith.constant 0 : i32
    return %c0_i32, %c0_i32_0, %c0_i32_1 : i32, i32, i32
  }
  func.func @transform_9(%arg0: i32) -> (i32, i32, i32) {
    %c0_i32 = arith.constant 0 : i32
    %c0_i32_0 = arith.constant 0 : i32
    %c0_i32_1 = arith.constant 0 : i32
    %c0_i32_2 = arith.constant 0 : i32
    return %c0_i32, %c0_i32_0, %c0_i32_1 : i32, i32, i32
  }
  func.func @transform_10(%arg0: i32) -> (i32, i32, i32) {
    %c0_i32 = arith.constant 0 : i32
    %c0_i32_0 = arith.constant 0 : i32
    %c0_i32_1 = arith.constant 0 : i32
    %c0_i32_2 = arith.constant 0 : i32
    return %c0_i32, %c0_i32_0, %c0_i32_1 : i32, i32, i32
  }
  func.func @transform_11(%arg0: i32) -> (i32, i32, i32) {
    %c0_i32 = arith.constant 0 : i32
    %c0_i32_0 = arith.constant 0 : i32
    %c0_i32_1 = arith.constant 0 : i32
    %c0_i32_2 = arith.constant 0 : i32
    return %c0_i32, %c0_i32_0, %c0_i32_1 : i32, i32, i32
  }
  func.func @transform_12(%arg0: i32) -> (i32, i32, i32) {
    %c0_i32 = arith.constant 0 : i32
    %c0_i32_0 = arith.constant 0 : i32
    %c0_i32_1 = arith.constant 0 : i32
    %c0_i32_2 = arith.constant 0 : i32
    return %c0_i32, %c0_i32_0, %c0_i32_1 : i32, i32, i32
  }
  func.func @transform_13(%arg0: i32) -> (i32, i32, i32) {
    %c0_i32 = arith.constant 0 : i32
    %c0_i32_0 = arith.constant 0 : i32
    %c0_i32_1 = arith.constant 0 : i32
    %c0_i32_2 = arith.constant 0 : i32
    return %c0_i32, %c0_i32_0, %c0_i32_1 : i32, i32, i32
  }
  func.func @transform_14(%arg0: i32) -> (i32, i32, i32, i32) {
    %c0_i32 = arith.constant 0 : i32
    %c0_i32_0 = arith.constant 0 : i32
    %c0_i32_1 = arith.constant 0 : i32
    %c0_i32_2 = arith.constant 0 : i32
    %c0_i32_3 = arith.constant 0 : i32
    return %c0_i32, %c0_i32_0, %c0_i32_1, %c0_i32_2 : i32, i32, i32, i32
  }
  func.func @transform_15(%arg0: i32) -> (i32, i32, i32, i32) {
    %c0_i32 = arith.constant 0 : i32
    %c0_i32_0 = arith.constant 0 : i32
    %c0_i32_1 = arith.constant 0 : i32
    %c0_i32_2 = arith.constant 0 : i32
    %c0_i32_3 = arith.constant 0 : i32
    return %c0_i32, %c0_i32_0, %c0_i32_1, %c0_i32_2 : i32, i32, i32, i32
  }
  func.func @transform_16(%arg0: i32) -> (i32, i32, i32) {
    %c0_i32 = arith.constant 0 : i32
    %c0_i32_0 = arith.constant 0 : i32
    %c0_i32_1 = arith.constant 0 : i32
    %c0_i32_2 = arith.constant 0 : i32
    return %c0_i32, %c0_i32_0, %c0_i32_1 : i32, i32, i32
  }
  func.func @transform_17(%arg0: i32) -> (i32, i32, i32) {
    %c0_i32 = arith.constant 0 : i32
    %c0_i32_0 = arith.constant 0 : i32
    %c0_i32_1 = arith.constant 0 : i32
    %c0_i32_2 = arith.constant 0 : i32
    return %c0_i32, %c0_i32_0, %c0_i32_1 : i32, i32, i32
  }
  func.func @transform_18(%arg0: i32) -> (i32, i32, i32) {
    %c0_i32 = arith.constant 0 : i32
    %c0_i32_0 = arith.constant 0 : i32
    %c0_i32_1 = arith.constant 0 : i32
    %c0_i32_2 = arith.constant 0 : i32
    return %c0_i32, %c0_i32_0, %c0_i32_1 : i32, i32, i32
  }
  func.func @transform_19(%arg0: i32) -> (i32, i32, i32) {
    %c0_i32 = arith.constant 0 : i32
    %c0_i32_0 = arith.constant 0 : i32
    %c0_i32_1 = arith.constant 0 : i32
    %c0_i32_2 = arith.constant 0 : i32
    return %c0_i32, %c0_i32_0, %c0_i32_1 : i32, i32, i32
  }
  func.func @transform_20(%arg0: i32) -> (i32, i32) {
    %c0_i32 = arith.constant 0 : i32
    %c0_i32_0 = arith.constant 0 : i32
    %c0_i32_1 = arith.constant 0 : i32
    return %c0_i32, %c0_i32_0 : i32, i32
  }
  func.func @transform_21(%arg0: i32) -> (i32, i32) {
    %c0_i32 = arith.constant 0 : i32
    %c0_i32_0 = arith.constant 0 : i32
    %c0_i32_1 = arith.constant 0 : i32
    return %c0_i32, %c0_i32_0 : i32, i32
  }
  func.func @transform_22(%arg0: i32) -> (i32, i32, i32) {
    %c0_i32 = arith.constant 0 : i32
    %c0_i32_0 = arith.constant 0 : i32
    %c0_i32_1 = arith.constant 0 : i32
    return %arg0, %c0_i32, %c0_i32_0 : i32, i32, i32
  }
  func.func @transform_23(%arg0: i32) -> (i32, i32, i32, i32) {
    %c0_i32 = arith.constant 0 : i32
    %c0_i32_0 = arith.constant 0 : i32
    %c0_i32_1 = arith.constant 0 : i32
    %c0_i32_2 = arith.constant 0 : i32
    return %arg0, %c0_i32, %c0_i32_0, %c0_i32_1 : i32, i32, i32, i32
  }
  func.func @transform_24(%arg0: i32) -> (i32, i32, i32, i32) {
    %c0_i32 = arith.constant 0 : i32
    %c0_i32_0 = arith.constant 0 : i32
    %c0_i32_1 = arith.constant 0 : i32
    %c0_i32_2 = arith.constant 0 : i32
    return %arg0, %c0_i32, %c0_i32_0, %c0_i32_1 : i32, i32, i32, i32
  }
}

</mosaic_0001>

<bundles_post_ra>
// kernel: decoder_forward.1
= control target key start
LH: loop header
LB: loop body
LE: loop exit
PB: predicated region body
PF: predicated region fallthrough
CT: control target
= control target key end

     0   :  { %s8442_s0 = inlined_call_operand.hbm [shape: f32[2,8,32], index: 0, kind: input, shape index: {}]   ;;  %s8443_s1 = inlined_call_operand.hbm [shape: f32[2,8,32], index: 1, kind: input, shape index: {}]   ;;  %s8444_s2 = inlined_call_operand.hbm [shape: f32[2,1,8,8], index: 2, kind: input, shape index: {}]   ;;  %s8445_s3 = inlined_call_operand.hbm [shape: f32[2,1,1,8], index: 3, kind: input, shape index: {}]   ;;  %s8446_s4 = inlined_call_operand.vmem [shape: f32[2,32,96], index: 4, kind: input, shape index: {}]   ;;  %s8447_s5 = inlined_call_operand.vmem [shape: f32[2,1,96], index: 5, kind: input, shape index: {}]   ;;  %s8448_s6 = inlined_call_operand.vmem [shape: f32[2,32,32], index: 6, kind: input, shape index: {}]   ;;  %s8449_s7 = inlined_call_operand.vmem [shape: f32[2,1,32], index: 7, kind: input, shape index: {}]   ;;  %s8450_s8 = inlined_call_operand.vmem [shape: f32[2,32,32], index: 8, kind: input, shape index: {}]   ;;  %s8451_s9 = inlined_call_operand.hbm [shape: f32[2,1,32], index: 9, kind: input, shape index: {}]   ;;  %s8452_s10 = inlined_call_operand.hbm [shape: f32[2,32,64], index: 10, kind: input, shape index: {}]   ;;  %s8453_s11 = inlined_call_operand.hbm [shape: f32[2,1,64], index: 11, kind: input, shape index: {}]   ;;  %s8454_s12 = inlined_call_operand.hbm [shape: f32[2,32,32], index: 12, kind: input, shape index: {}]   ;;  %s8455_s13 = inlined_call_operand.hbm [shape: f32[2,1,32], index: 13, kind: input, shape index: {}]   ;;  %s8456_s14 = inlined_call_operand.vmem [shape: f32[2,3,1,32], index: 14, kind: input, shape index: {}]   ;;  %s8457_s15 = inlined_call_operand.vmem [shape: f32[2,3,1,32], index: 15, kind: input, shape index: {}]   ;;  %s8458_s16 = inlined_call_operand.hbm [shape: f32[2,32,64], index: 16, kind: input, shape index: {}]   ;;  %s8459_s17 = inlined_call_operand.hbm [shape: f32[2,1,64], index: 17, kind: input, shape index: {}]   ;;  %s8460_s18 = inlined_call_operand.vmem [shape: f32[2,64,32], index: 18, kind: input, shape index: {}]   ;;  %s8461_s19 = inlined_call_operand.hbm [shape: f32[2,1,32], index: 19, kind: input, shape index: {}]   ;;  %s8462_s20 = inlined_call_operand.vmem [shape: f32[32,128], index: 20, kind: input, shape index: {}]   ;;  %s8463_s21 = inlined_call_operand.vmem [shape: f32[1,128], index: 21, kind: input, shape index: {}]   ;;  %s8464_s22 = inlined_call_operand.hbm [shape: f32[2,8,128], index: 22, kind: output, shape index: {0}]   ;;  %s8465_s23 = inlined_call_operand.hbm [shape: f32[2,4,8,8], index: 23, kind: output, shape index: {1}]   ;;  %s8466_s24 = inlined_call_operand.hbm [shape: f32[2,4,8,8], index: 24, kind: output, shape index: {2}]  }
   0x1   :  { %8539 = sst [smem:[#allocation42_spill]] %s8442_s0 }
   0x2   :  { %8540 = sst [smem:[#allocation43_spill]] %s8443_s1 }
   0x3   :  { %8541 = sst [smem:[#allocation44_spill]] %s8444_s2 }
   0x4   :  { %8542 = sst [smem:[#allocation45_spill]] %s8445_s3 }
   0x5   :  { %8543 = sst [smem:[#allocation46_spill]] %s8446_s4 }
   0x6   :  { %8544 = sst [smem:[#allocation47_spill]] %s8447_s5 }
   0x7   :  { %8545 = sst [smem:[#allocation48_spill]] %s8448_s6 }
   0x8   :  { %8546 = sst [smem:[#allocation49_spill]] %s8449_s7 }
   0x9   :  { %8547 = sst [smem:[#allocation50_spill]] %s8450_s8 }
   0xa   :  { %8548 = sst [smem:[#allocation51_spill]] %s8451_s9 }
   0xb   :  { %8549 = sst [smem:[#allocation52_spill]] %s8452_s10 }
   0xc   :  { %8550 = sst [smem:[#allocation53_spill]] %s8453_s11 }
   0xd   :  { %8551 = sst [smem:[#allocation54_spill]] %s8454_s12 }
   0xe   :  { %8552 = sst [smem:[#allocation55_spill]] %s8455_s13 }
   0xf   :  { %8553 = sst [smem:[#allocation56_spill]] %s8456_s14 }
  0x10   :  { %8554 = sst [smem:[#allocation57_spill]] %s8457_s15 }
  0x11   :  { %8555 = sst [smem:[#allocation58_spill]] %s8458_s16 }
  0x12   :  { %8556 = sst [smem:[#allocation59_spill]] %s8459_s17 }
  0x13   :  { %8557 = sst [smem:[#allocation60_spill]] %s8460_s18 }
  0x14   :  { %8558 = sst [smem:[#allocation61_spill]] %s8461_s19 }
  0x15   :  { %8559 = sst [smem:[#allocation62_spill]] %s8462_s20 }
  0x16   :  { %8560 = sst [smem:[#allocation63_spill]] %s8463_s21 }
  0x17   :  { %8561 = sst [smem:[#allocation64_spill]] %s8464_s22 }
  0x18   :  { %8562 = sst [smem:[#allocation65_spill]] %s8465_s23 }
  0x19   :  { %8563 = sst [smem:[#allocation66_spill]] %s8466_s24 }
  0x1a   :  { %30 = vsyncpa [#allocation3], 0 }
  0x1b   :  { %32 = vsyncpa [#allocation3 + $0x1], 0 }
  0x1c   :  { %33 = vsyncpa [#allocation6], 0 }
  0x1d   :  { %35 = vsyncpa [#allocation6 + $0x1], 0 }
  0x1e   :  { %36 = vsyncpa [#allocation9], 0 }
  0x1f   :  { %38 = vsyncpa [#allocation9 + $0x1], 0 }
  0x20   :  { %39 = vsyncpa [#allocation12], 0 }
  0x21   :  { %40 = vsyncpa [#allocation15], 0 }
  0x22   :  { %41 = vsyncpa [#allocation18], 0 }
  0x23   :  { %42 = vsyncpa [#allocation21], 0 }
  0x24   :  { %43 = vsyncpa [#allocation4], 0 }
  0x25   :  { %45 = vsyncpa [#allocation4 + $0x1], 0 }
  0x26   :  { %46 = vsyncpa [#allocation24], 0 }
  0x27   :  { %48 = vsyncpa [#allocation24 + $0x1], 0  ;;  %s7215_s5 = smov 0   ;;  %s7217_s26 = smov 0  }
  0x28   :  { %s7219_s27 = smov 0   ;;  %s7221_s28 = smov 0  }
  0x29 LB: > { %8564 = sst [smem:[#allocation36_spill]] %s7038_s5  ;;  %s7052_s6 = smov [#allocation10]   ;;  %s7050_s28 = sphi %s7221_s28, %s8649_s28   ;;  %s7046_s27 = sphi %s7219_s27, %s8651_s27   ;;  %s7042_s26 = sphi %s7217_s26, %s8653_s26   ;;  %s7038_s5 = sphi %s7215_s5, %s8652_s5  }
  0x2a   : > { %8565 = sst [smem:[#allocation37_spill]] %s7046_s27  ;;  %s646_s2 = sshll.u32 %s7052_s6, 4  ;;  %s7241_s2 = int_to_ptr.vmem [resolvable:$true] %s646_s2 }
  0x2b   : > { %s7236_s29 = sadd.s32 4294967295, %s7050_s28   ;;  %p5539_p0 = scmp.ge.s32.totalorder %s7050_s28, 1 }
  0x2c   : > { %p8484_p1 = scmp.eq.s32.totalorder %s7236_s29, 0  ;;  %p619_p2 = scmp.lt.s32.totalorder %s7050_s28, 3 }
  0x2d   : > { %s7053_s7 = smov [#allocation11]   ;;  %s7054_s25 = smov [#allocation14]  }
  0x2e   : > { %p7243_p3 = pnand %p5539_p0, %p619_p2  ;;  %s659_s30 = sshll.u32 %s7053_s7, 4  ;;  %s7256_s30 = int_to_ptr.vmem [resolvable:$true] %s659_s30 }
  0x2f   : > { %s7258_s8 = sshll.u32 %s7054_s25, 4  ;;  %s8568_s9 = sld [smem:[#allocation51_spill]]  ;;  %s686_s8 = int_to_ptr.vmem [resolvable:$true] %s7258_s8 }
  0x30   : > { %s8566_s0 = scalar_select %p7243_p3, 1, 0 }
  0x31   : > { %p6347_p5 = pneg %p7243_p3 }
  0x33   : > { %p7252_p6 = pnand %p6347_p5, %p8484_p1 }
  0x35   : > { %s8567_s3 = scalar_select %p7252_p6, 1, 0 }
  0x36   : > { %s6552_s6 = scalar_lea.hbm %s8568_s9, 32  ;;  %p7268_p8 = pneg %p7252_p6 }
  0x37   : > { %p6553_p7 = scmp.ne.s32.totalorder %s8568_s9, %s6552_s6  ;;  %p6559_p11 = scmp.lt.u32.totalorder %s6552_s6, %s8568_s9 }
  0x38   : > { %s8569_s7 = scalar_select %p7268_p8, 1, 0 }
  0x39   : > { %p6555_p9 = pnand %p7268_p8, %p6553_p7 }
  0x3b   : > { %p6556_p10 = pneg %p6555_p9 }
  0x3d   : > { %p6561_p12 = pnand %p6559_p11, %p6556_p10 }
  0x3f   : > { %6564 = shalt.err (!%p6561_p12)
}
  0x40   : > { %s6565_s21 = scalar_lea.vmem %s7241_s2, 32  ;;  %p6573_p5 = scmp.lt.s32.totalorder %s7241_s2, %s7241_s2 }
  0x41   : > { %p6566_p13 = scmp.ne.s32.totalorder %s7241_s2, %s6565_s21  ;;  %p6574_p4 = scmp.lt.s32.totalorder %s6565_s21, %s6565_s21 }
  0x43   : > { %p6568_p0 = pnand %p6566_p13, %p7268_p8  ;;  %p6575_p7 = por %p6574_p4, %p6573_p5 }
  0x45   : > { %p6569_p2 = pneg %p6568_p0 }
  0x47   : > { %p6576_p9 = pnand %p6575_p7, %p6569_p2 }
  0x49   : > { %6579 = shalt.err (!%p6576_p9)
}
  0x4a   : > { %s8482_s22 = smov 16   ;;  %s8486_s24 = smov 1  }
  0x4b   : > { %6350 = dma.hbm_to_vmem [thread:$0]  (!%p7252_p6), %s8568_s9, 32, %s7241_s2, [#allocation9], %s8482_s22, %s8482_s22, %s8486_s24  }
  0x4c   : > { %s8570_s10 = sld [smem:[#allocation52_spill]] }
  0x52   : > { %s6580_s21 = scalar_lea.hbm %s8570_s10, 1024 }
  0x53   : > { %p6581_p4 = scmp.ne.s32.totalorder %s8570_s10, %s6580_s21  ;;  %p6587_p12 = scmp.lt.u32.totalorder %s6580_s21, %s8570_s10 }
  0x55   : > { %p6583_p10 = pnand %p6581_p4, %p7268_p8 }
  0x57   : > { %p6584_p11 = pneg %p6583_p10 }
  0x59   : > { %p6589_p13 = pnand %p6587_p12, %p6584_p11 }
  0x5b   : > { %6592 = shalt.err (!%p6589_p13)
}
  0x5c   : > { %s6593_s2 = scalar_lea.vmem %s7256_s30, 1024  ;;  %p6601_p7 = scmp.lt.s32.totalorder %s7256_s30, %s7256_s30 }
  0x5d   : > { %p6594_p0 = scmp.ne.s32.totalorder %s7256_s30, %s6593_s2  ;;  %p6602_p9 = scmp.lt.s32.totalorder %s6593_s2, %s6593_s2 }
  0x5f   : > { %p6596_p2 = pnand %p6594_p0, %p7268_p8  ;;  %p6603_p4 = por %p6602_p9, %p6601_p7 }
  0x61   : > { %p6597_p5 = pneg %p6596_p2 }
  0x63   : > { %p6604_p10 = pnand %p6603_p4, %p6597_p5 }
  0x65   : > { %6607 = shalt.err (!%p6604_p10)
}
  0x66   : > { %s7057_s20 = smov 128   ;;  %s7058_s15 = smov 8  }
  0x67   : > { %6353 = dma.hbm_to_vmem [thread:$0]  (!%p7252_p6), %s8570_s10, 1024, %s7256_s30, [#allocation12], %s7057_s20, %s7057_s20, %s7058_s15  }
  0x68   : > { %s8571_s12 = sld [smem:[#allocation54_spill]] }
  0x6e   : > { %s6608_s6 = scalar_lea.hbm %s8571_s12, 1024 }
  0x6f   : > { %p6609_p11 = scmp.ne.s32.totalorder %s8571_s12, %s6608_s6  ;;  %p6615_p0 = scmp.lt.u32.totalorder %s6608_s6, %s8571_s12 }
  0x71   : > { %p6611_p12 = pnand %p6609_p11, %p7268_p8 }
  0x73   : > { %p6612_p13 = pneg %p6611_p12 }
  0x75   : > { %p6617_p2 = pnand %p6615_p0, %p6612_p13 }
  0x77   : > { %6620 = shalt.err (!%p6617_p2)
}
  0x78   : > { %s6621_s18 = scalar_lea.vmem %s686_s8, 1024  ;;  %p6629_p4 = scmp.lt.s32.totalorder %s686_s8, %s686_s8 }
  0x79   : > { %p6622_p5 = scmp.ne.s32.totalorder %s686_s8, %s6621_s18  ;;  %p6630_p10 = scmp.lt.s32.totalorder %s6621_s18, %s6621_s18 }
  0x7b   : > { %p6624_p7 = pnand %p6622_p5, %p7268_p8  ;;  %p6631_p1 = por %p6630_p10, %p6629_p4 }
  0x7d   : > { %p6625_p9 = pneg %p6624_p7 }
  0x7f   : > { %p6632_p3 = pnand %p6631_p1, %p6625_p9 }
  0x81   : > { %6635 = shalt.err (!%p6632_p3)
}
  0x82   : > { %6359 = dma.hbm_to_vmem [thread:$0]  (!%p7252_p6), %s8571_s12, 1024, %s686_s8, [#allocation15], %s7057_s20, %s7057_s20, %s7058_s15  }
  0x83   : > { %s7059_s23 = smov [#allocation17]   ;;  %s8572_s16 = sld [smem:[#allocation58_spill]] }
  0x84   : > { %s717_s4 = sshll.u32 %s7059_s23, 4  ;;  %s718_s4 = int_to_ptr.vmem [resolvable:$true] %s717_s4 }
  0x89   : > { %s6636_s25 = scalar_lea.hbm %s8572_s16, 1024 }
  0x8a   : > { %p6637_p1 = scmp.ne.s32.totalorder %s8572_s16, %s6636_s25  ;;  %p6643_p12 = scmp.lt.u32.totalorder %s6636_s25, %s8572_s16 }
  0x8c   : > { %p6639_p3 = pnand %p6637_p1, %p7268_p8 }
  0x8e   : > { %p6640_p11 = pneg %p6639_p3 }
  0x90   : > { %p6645_p13 = pnand %p6643_p12, %p6640_p11 }
  0x92   : > { %6648 = shalt.err (!%p6645_p13)
}
  0x93   : > { %s6649_s8 = scalar_lea.vmem %s718_s4, 1024  ;;  %p6657_p7 = scmp.lt.s32.totalorder %s718_s4, %s718_s4 }
  0x94   : > { %p6650_p0 = scmp.ne.s32.totalorder %s718_s4, %s6649_s8  ;;  %p6658_p9 = scmp.lt.s32.totalorder %s6649_s8, %s6649_s8 }
  0x96   : > { %p6652_p2 = pnand %p6650_p0, %p7268_p8  ;;  %p6659_p4 = por %p6658_p9, %p6657_p7 }
  0x98   : > { %p6653_p5 = pneg %p6652_p2 }
  0x9a   : > { %p6660_p10 = pnand %p6659_p4, %p6653_p5 }
  0x9c   : > { %6663 = shalt.err (!%p6660_p10)
}
  0x9d   : > { %6365 = dma.hbm_to_vmem [thread:$0]  (!%p7252_p6), %s8572_s16, 1024, %s718_s4, [#allocation18], %s7057_s20, %s7057_s20, %s7058_s15  }
  0x9e   : > { %s8488_s22 = sadd.s32 4294967294, %s7050_s28   ;;  %s7363_s23 = sadd.s32 1, %s7050_s28  }
  0x9f   : > { %8573 = sst [smem:[#allocation38_spill]] %s7363_s23  ;;  %s58_s1 = ssub.s32 %s7050_s28, %s7363_s23 }
  0xa0   : > { %s61_s6 = sadd.s32 1, %s7046_s27  ;;  %p59_p1 = scmp.eq.s32.totalorder %s58_s1, 0 }
  0xa1   : > { %p68_p3 = scmp.ne.s32.totalorder %s7046_s27, %s7042_s26  ;;  %p69_p11 = scmp.eq.s32.totalorder %s7050_s28, 0 }
  0xa2   : > { %p74_p12 = scmp.ne.s32.totalorder %s7042_s26, %s7038_s5  ;;  %p8575_p0 = scmp.eq.s32.totalorder %s7236_s29, 0 }
  0xa3   : > { %s7374_s25 = scalar_select %p59_p1, %s7046_s27, %s61_s6  }
  0xa4   : > { %p70_p13 = por %p69_p11, %p68_p3  ;;  %p7378_p2 = por %p8575_p0, %p74_p12 }
  0xa5   : > { %8574 = sst [smem:[#allocation39_spill]] %s7374_s25  ;;  %p554_p5 = scmp.eq.s32.totalorder %s7236_s29, 1 }
  0xa6   : > { %s8576_s21 = scalar_select %p7378_p2, 1, 0 }
  0xa7   : > { %p560_p7 = scmp.eq.s32.totalorder %s8488_s22, 1  ;;  %p6403_p9 = scmp.lt.s32.totalorder %s7050_s28, 2 }
  0xa8   : > { %s7387_s20 = sand.u32 1, %s7046_s27   ;;  %p7389_p4 = por %p554_p5, %p68_p3 }
  0xa9   : > { %p7393_p10 = por %p560_p7, %p74_p12  ;;  %s7398_s2 = sshll.u32 %s7387_s20, 3 }
  0xaa   : > { %s8577_s15 = scalar_select %p7389_p4, 1, 0 }
  0xab   : > { %s8579_s4 = scalar_select %p7393_p10, 1, 0 }
  0xac   : > { %8578 = sst [smem:[#allocation40_spill]] %s8577_s15  ;;  %s7401_s18 = sshll.u32 %s7050_s28, 7 }
  0xad   : > { %8580 = sst [smem:[#allocation41_spill]] %s8579_s4  ;;  %p7403_p1 = pnand %p6403_p9, %p70_p13 }
  0xae   : > { %s8493_s24 = sand.u32 1, %s7050_s28   ;;  %s8582_s6 = sld [smem:[#allocation43_spill]] }
  0xaf   : > { %s8581_s8 = scalar_select %p7403_p1, 1, 0 }
  0xb0   : > { %s788_s9 = scalar_lea.vmem [#allocation5], %s7398_s2  ;;  %s7419_s12 = scalar_lea.sflag [#allocation6], %s8493_s24 }
  0xb1   : > { %s795_s10 = sshll.u32 %s788_s9, 4  ;;  %p7425_p11 = pneg %p7403_p1  ;;  %s7415_s10 = int_to_ptr.vmem [resolvable:$true] %s795_s10 }
  0xb3   : > { %s8583_s25 = scalar_select %p7425_p11, 1, 0 }
  0xb4   : > { %s7412_s22 = scalar_lea.hbm %s8582_s6, %s7401_s18  ;;  %s6669_s9 = scalar_lea.hbm %s8582_s6, 256 }
  0xb5   : > { %s6664_s16 = scalar_lea.hbm %s7412_s22, 128  ;;  %p6670_p0 = scmp.lt.u32.totalorder %s7412_s22, %s8582_s6 }
  0xb6   : > { %p6665_p3 = scmp.ne.s32.totalorder %s7412_s22, %s6664_s16  ;;  %p6671_p5 = scmp.lt.u32.totalorder %s6669_s9, %s6664_s16 }
  0xb7   : > { %p6673_p9 = scmp.lt.u32.totalorder %s6664_s16, %s7412_s22 }
  0xb8   : > { %p6667_p12 = pnand %p7425_p11, %p6665_p3  ;;  %p6672_p7 = por %p6671_p5, %p6670_p0 }
  0xba   : > { %p6668_p13 = pneg %p6667_p12  ;;  %p6674_p10 = por %p6673_p9, %p6672_p7 }
  0xbc   : > { %p6675_p4 = pnand %p6674_p10, %p6668_p13 }
  0xbe   : > { %6678 = shalt.err (!%p6675_p4)
}
  0xbf   : > { %s6679_s24 = scalar_lea.vmem %s7415_s10, 128  ;;  %s7060_s30 = smov [#allocation5]  }
  0xc0   : > { %p6680_p3 = scmp.ne.s32.totalorder %s7415_s10, %s6679_s24  ;;  %s6684_s1 = sshll.u32 %s7060_s30, 4  ;;  %s6685_s1 = int_to_ptr.vmem [resolvable:$false] %s6684_s1 }
  0xc1   : > { %s6686_s27 = scalar_lea.vmem %s6685_s1, 256  ;;  %p6687_p6 = scmp.lt.s32.totalorder %s7415_s10, %s6685_s1 }
  0xc2   : > { %p6682_p12 = pnand %p6680_p3, %p7425_p11  ;;  %p6688_p8 = scmp.lt.s32.totalorder %s6686_s27, %s6679_s24 }
  0xc4   : > { %p6683_p2 = pneg %p6682_p12  ;;  %p6689_p0 = por %p6688_p8, %p6687_p6 }
  0xc6   : > { %p6690_p5 = pnand %p6689_p0, %p6683_p2 }
  0xc8   : > { %6693 = shalt.err (!%p6690_p5)
}
  0xc9   : > { %6378 = dma.hbm_to_vmem [thread:$0]  (!%p7403_p1), %s7412_s22, 128, %s7415_s10, %s7419_s12  }
  0xca   : > { %s7061_s16 = smov [#allocation13]   ;;  %s7062_s9 = smov [#allocation16]  }
  0xcb   : > { %s672_s23 = sshll.u32 %s7061_s16, 4  ;;  %s698_s6 = sshll.u32 %s7062_s9, 4  ;;  %s673_s23 = int_to_ptr.vmem [resolvable:$true] %s672_s23  ;;  %s699_s6 = int_to_ptr.vmem [resolvable:$true] %s698_s6 }
  0xcc   : > { %s8584_s11 = sld [smem:[#allocation53_spill]]  ;;  %p8585_p8 = scmp.ne.s32.totalorder %s8569_s7, 0 }
  0xd2   : > { %s6694_s1 = scalar_lea.hbm %s8584_s11, 32 }
  0xd3   : > { %p6695_p6 = scmp.ne.s32.totalorder %s8584_s11, %s6694_s1  ;;  %p6701_p10 = scmp.lt.u32.totalorder %s6694_s1, %s8584_s11 }
  0xd5   : > { %p6697_p2 = pnand %p6695_p6, %p8585_p8 }
  0xd7   : > { %p6698_p4 = pneg %p6697_p2 }
  0xd9   : > { %p6703_p13 = pnand %p6701_p10, %p6698_p4 }
  0xdb   : > { %6706 = shalt.err (!%p6703_p13)
}
  0xdc   : > { %s6707_s10 = scalar_lea.vmem %s673_s23, 32  ;;  %p6715_p12 = scmp.lt.s32.totalorder %s673_s23, %s673_s23 }
  0xdd   : > { %p6708_p7 = scmp.ne.s32.totalorder %s673_s23, %s6707_s10  ;;  %p6716_p0 = scmp.lt.s32.totalorder %s6707_s10, %s6707_s10 }
  0xdf   : > { %p6710_p9 = pnand %p6708_p7, %p8585_p8  ;;  %p6717_p5 = por %p6716_p0, %p6715_p12 }
  0xe1   : > { %p6711_p3 = pneg %p6710_p9 }
  0xe3   : > { %p6718_p1 = pnand %p6717_p5, %p6711_p3 }
  0xe5   : > { %6721 = shalt.err (!%p6718_p1)
}
  0xe6   : > { %p8586_p6 = scmp.ne.s32.totalorder %s8567_s3, 0  ;;  %s8587_s22 = smov 1  }
  0xe7   : > { %s8588_s4 = smov 16   ;;  %s8589_s13 = sld [smem:[#allocation55_spill]] }
  0xe8   : > { %6356 = dma.hbm_to_vmem [thread:$0]  (!%p8586_p6), %s8584_s11, 32, %s673_s23, [#allocation12], %s8588_s4, %s8588_s4, %s8587_s22  }
  0xed   : > { %s6722_s30 = scalar_lea.hbm %s8589_s13, 32 }
  0xee   : > { %p6723_p2 = scmp.ne.s32.totalorder %s8589_s13, %s6722_s30  ;;  %p6729_p10 = scmp.lt.u32.totalorder %s6722_s30, %s8589_s13 }
  0xf0   : > { %p6725_p1 = pnand %p6723_p2, %p8585_p8 }
  0xf2   : > { %p6726_p4 = pneg %p6725_p1 }
  0xf4   : > { %p6731_p13 = pnand %p6729_p10, %p6726_p4 }
  0xf6   : > { %6734 = shalt.err (!%p6731_p13)
}
  0xf7   : > { %s6735_s5 = scalar_lea.vmem %s699_s6, 32  ;;  %p6743_p12 = scmp.lt.s32.totalorder %s699_s6, %s699_s6 }
  0xf8   : > { %p6736_p7 = scmp.ne.s32.totalorder %s699_s6, %s6735_s5  ;;  %p6744_p0 = scmp.lt.s32.totalorder %s6735_s5, %s6735_s5 }
  0xfa   : > { %p6738_p9 = pnand %p6736_p7, %p8585_p8  ;;  %p6745_p5 = por %p6744_p0, %p6743_p12 }
  0xfc   : > { %p6739_p3 = pneg %p6738_p9 }
  0xfe   : > { %p6746_p11 = pnand %p6745_p5, %p6739_p3 }
 0x100   : > { %6749 = shalt.err (!%p6746_p11)
}
 0x101   : > { %6362 = dma.hbm_to_vmem [thread:$0]  (!%p8586_p6), %s8589_s13, 32, %s699_s6, [#allocation15], %s8588_s4, %s8588_s4, %s8587_s22  }
 0x102   : > { %s7063_s16 = smov [#allocation19]   ;;  %s7064_s30 = smov [#allocation20]  }
 0x103   : > { %s730_s9 = sshll.u32 %s7063_s16, 4  ;;  %s746_s1 = sshll.u32 %s7064_s30, 4  ;;  %s731_s9 = int_to_ptr.vmem [resolvable:$true] %s730_s9  ;;  %s747_s1 = int_to_ptr.vmem [resolvable:$true] %s746_s1 }
 0x104   : > { %s8590_s17 = sld [smem:[#allocation59_spill]] }
 0x10a   : > { %s6750_s10 = scalar_lea.hbm %s8590_s17, 32 }
 0x10b   : > { %p6751_p11 = scmp.ne.s32.totalorder %s8590_s17, %s6750_s10  ;;  %p6757_p4 = scmp.lt.u32.totalorder %s6750_s10, %s8590_s17 }
 0x10d   : > { %p6753_p2 = pnand %p6751_p11, %p8585_p8 }
 0x10f   : > { %p6754_p1 = pneg %p6753_p2 }
 0x111   : > { %p6759_p10 = pnand %p6757_p4, %p6754_p1 }
 0x113   : > { %6762 = shalt.err (!%p6759_p10)
}
 0x114   : > { %s6763_s6 = scalar_lea.vmem %s731_s9, 32  ;;  %p6771_p3 = scmp.lt.s32.totalorder %s731_s9, %s731_s9 }
 0x115   : > { %p6764_p13 = scmp.ne.s32.totalorder %s731_s9, %s6763_s6  ;;  %p6772_p12 = scmp.lt.s32.totalorder %s6763_s6, %s6763_s6 }
 0x117   : > { %p6766_p7 = pnand %p6764_p13, %p8585_p8  ;;  %p6773_p0 = por %p6772_p12, %p6771_p3 }
 0x119   : > { %p6767_p9 = pneg %p6766_p7 }
 0x11b   : > { %p6774_p5 = pnand %p6773_p0, %p6767_p9 }
 0x11d   : > { %6777 = shalt.err (!%p6774_p5)
}
 0x11e   : > { %6368 = dma.hbm_to_vmem [thread:$0]  (!%p8586_p6), %s8590_s17, 32, %s731_s9, [#allocation18], %s8588_s4, %s8588_s4, %s8587_s22  }
 0x11f   : > { %s8591_s19 = sld [smem:[#allocation61_spill]] }
 0x125   : > { %s6778_s30 = scalar_lea.hbm %s8591_s19, 32 }
 0x126   : > { %p6779_p11 = scmp.ne.s32.totalorder %s8591_s19, %s6778_s30  ;;  %p6785_p4 = scmp.lt.u32.totalorder %s6778_s30, %s8591_s19 }
 0x128   : > { %p6781_p2 = pnand %p6779_p11, %p8585_p8 }
 0x12a   : > { %p6782_p1 = pneg %p6781_p2 }
 0x12c   : > { %p6787_p10 = pnand %p6785_p4, %p6782_p1 }
 0x12e   : > { %6790 = shalt.err (!%p6787_p10)
}
 0x12f   : > { %s6791_s23 = scalar_lea.vmem %s747_s1, 32  ;;  %p6799_p3 = scmp.lt.s32.totalorder %s747_s1, %s747_s1 }
 0x130   : > { %p6792_p13 = scmp.ne.s32.totalorder %s747_s1, %s6791_s23  ;;  %p6800_p12 = scmp.lt.s32.totalorder %s6791_s23, %s6791_s23 }
 0x132   : > { %p6794_p7 = pnand %p6792_p13, %p8585_p8  ;;  %p6801_p0 = por %p6800_p12, %p6799_p3 }
 0x134   : > { %p6795_p9 = pneg %p6794_p7 }
 0x136   : > { %p6802_p5 = pnand %p6801_p0, %p6795_p9 }
 0x138   : > { %6805 = shalt.err (!%p6802_p5)
}
 0x139   : > { %6371 = dma.hbm_to_vmem [thread:$0]  (!%p8586_p6), %s8591_s19, 32, %s747_s1, [#allocation21], %s8588_s4, %s8588_s4, %s8587_s22  }
 0x13a   : > { %s8592_s14 = sld [smem:[#allocation42_spill]]  ;;  %s770_s3 = scalar_lea.vmem [#allocation2], %s7398_s2 }
 0x13b   : > { %s777_s16 = sshll.u32 %s770_s3, 4  ;;  %s8593_s27 = sld [smem:[#allocation44_spill]]  ;;  %s7540_s16 = int_to_ptr.vmem [resolvable:$true] %s777_s16 }
 0x13c   : > { %s767_s23 = scalar_lea.sflag [#allocation3], %s7387_s20  ;;  %p8595_p6 = scmp.ne.s32.totalorder %s8583_s25, 0 }
 0x140   : > { %s7537_s15 = scalar_lea.hbm %s8592_s14, %s7401_s18  ;;  %s6811_s9 = scalar_lea.hbm %s8592_s14, 256 }
 0x141   : > { %s8594_s10 = smov %s8593_s27  ;;  %s7546_s5 = scalar_lea.hbm %s8593_s27, %s7401_s18 }
 0x142   : > { %s6806_s22 = scalar_lea.hbm %s7537_s15, 128  ;;  %p6812_p1 = scmp.lt.u32.totalorder %s7537_s15, %s8592_s14 }
 0x143   : > { %p6807_p8 = scmp.ne.s32.totalorder %s7537_s15, %s6806_s22  ;;  %p6813_p4 = scmp.lt.u32.totalorder %s6811_s9, %s6806_s22 }
 0x144   : > { %p6815_p13 = scmp.lt.u32.totalorder %s6806_s22, %s7537_s15 }
 0x145   : > { %p6809_p11 = pnand %p6807_p8, %p8595_p6  ;;  %p6814_p10 = por %p6813_p4, %p6812_p1 }
 0x147   : > { %p6810_p2 = pneg %p6809_p11  ;;  %p6816_p7 = por %p6815_p13, %p6814_p10 }
 0x149   : > { %p6817_p9 = pnand %p6816_p7, %p6810_p2 }
 0x14b   : > { %6820 = shalt.err (!%p6817_p9)
}
 0x14c   : > { %s6821_s18 = scalar_lea.vmem %s7540_s16, 128  ;;  %s7065_s11 = smov [#allocation2]  }
 0x14d   : > { %p6822_p3 = scmp.ne.s32.totalorder %s7540_s16, %s6821_s18  ;;  %s6826_s3 = sshll.u32 %s7065_s11, 4  ;;  %s6827_s3 = int_to_ptr.vmem [resolvable:$false] %s6826_s3 }
 0x14e   : > { %s6828_s30 = scalar_lea.vmem %s6827_s3, 256  ;;  %p6829_p5 = scmp.lt.s32.totalorder %s7540_s16, %s6827_s3 }
 0x14f   : > { %p6824_p12 = pnand %p6822_p3, %p8595_p6  ;;  %p6830_p8 = scmp.lt.s32.totalorder %s6828_s30, %s6821_s18 }
 0x151   : > { %p6825_p0 = pneg %p6824_p12  ;;  %p6831_p11 = por %p6830_p8, %p6829_p5 }
 0x153   : > { %p6832_p1 = pnand %p6831_p11, %p6825_p0 }
 0x155   : > { %6835 = shalt.err (!%p6832_p1)
}
 0x156   : > { %p8596_p2 = scmp.ne.s32.totalorder %s8581_s8, 0  ;;  %s806_s24 = scalar_lea.vmem [#allocation7], %s7398_s2 }
 0x157   : > { %s813_s27 = sshll.u32 %s806_s24, 4  ;;  %s5555_s22 = sshll.u32 %s7050_s28, 4  ;;  %s814_s27 = int_to_ptr.vmem [resolvable:$true] %s813_s27 }
 0x158   : > { %6375 = dma.hbm_to_vmem [thread:$0]  (!%p8596_p2), %s7537_s15, 128, %s7540_s16, %s767_s23  }
 0x159   : > { %s6836_s4 = scalar_lea.hbm %s7546_s5, 128  ;;  %s6841_s6 = scalar_lea.hbm %s8594_s10, 256 }
 0x15a   : > { %p6837_p4 = scmp.ne.s32.totalorder %s7546_s5, %s6836_s4  ;;  %p6842_p7 = scmp.lt.u32.totalorder %s7546_s5, %s8594_s10 }
 0x15b   : > { %p6843_p9 = scmp.lt.u32.totalorder %s6841_s6, %s6836_s4  ;;  %p6845_p12 = scmp.lt.u32.totalorder %s6836_s4, %s7546_s5 }
 0x15c   : > { %p6839_p10 = pnand %p6837_p4, %p8595_p6 }
 0x15d   : > { %p6844_p3 = por %p6843_p9, %p6842_p7 }
 0x15e   : > { %p6840_p13 = pneg %p6839_p10 }
 0x15f   : > { %p6846_p0 = por %p6845_p12, %p6844_p3 }
 0x161   : > { %p6847_p5 = pnand %p6846_p0, %p6840_p13 }
 0x163   : > { %6850 = shalt.err (!%p6847_p5)
}
 0x164   : > { %s6851_s2 = scalar_lea.vmem %s814_s27, 128  ;;  %s7066_s15 = smov [#allocation7]  }
 0x165   : > { %p6852_p8 = scmp.ne.s32.totalorder %s814_s27, %s6851_s2  ;;  %s6856_s16 = sshll.u32 %s7066_s15, 4  ;;  %s6857_s16 = int_to_ptr.vmem [resolvable:$false] %s6856_s16 }
 0x166   : > { %s6858_s23 = scalar_lea.vmem %s6857_s16, 256  ;;  %p6859_p4 = scmp.lt.s32.totalorder %s814_s27, %s6857_s16 }
 0x167   : > { %p6854_p11 = pnand %p6852_p8, %p8595_p6  ;;  %p6860_p10 = scmp.lt.s32.totalorder %s6858_s23, %s6851_s2 }
 0x169   : > { %p6855_p1 = pneg %p6854_p11  ;;  %p6861_p2 = por %p6860_p10, %p6859_p4 }
 0x16b   : > { %p6862_p7 = pnand %p6861_p2, %p6855_p1 }
 0x16d   : > { %6865 = shalt.err (!%p6862_p7)
}
 0x16e   : > { %p8597_p9 = scmp.ne.s32.totalorder %s8581_s8, 0  ;;  %s8598_s30 = sld [smem:[#allocation45_spill]] }
 0x16f   : > { %s823_s4 = scalar_lea.vmem [#allocation8], %s7387_s20  ;;  %s8599_s9 = sand.u32 1, %s7050_s28  }
 0x170   : > { %6381 = dma.hbm_to_vmem [thread:$0]  (!%p8597_p9), %s7546_s5, 128, %s814_s27, %s7419_s12  }
 0x171   : > { %s830_s1 = sshll.u32 %s823_s4, 4  ;;  %s821_s6 = scalar_lea.sflag [#allocation9], %s8599_s9  ;;  %s831_s1 = int_to_ptr.vmem [resolvable:$true] %s830_s1 }
 0x174   : > { %s7593_s24 = scalar_lea.hbm %s8598_s30, %s5555_s22  ;;  %s6871_s27 = scalar_lea.hbm %s8598_s30, 32 }
 0x175   : > { %s6866_s7 = scalar_lea.hbm %s7593_s24, 16  ;;  %p6872_p12 = scmp.lt.u32.totalorder %s7593_s24, %s8598_s30 }
 0x176   : > { %p6867_p2 = scmp.ne.s32.totalorder %s7593_s24, %s6866_s7  ;;  %p6873_p0 = scmp.lt.u32.totalorder %s6871_s27, %s6866_s7 }
 0x177   : > { %p6875_p8 = scmp.lt.u32.totalorder %s6866_s7, %s7593_s24 }
 0x178   : > { %p6869_p13 = pnand %p6867_p2, %p8595_p6  ;;  %p6874_p5 = por %p6873_p0, %p6872_p12 }
 0x17a   : > { %p6870_p3 = pneg %p6869_p13  ;;  %p6876_p11 = por %p6875_p8, %p6874_p5 }
 0x17c   : > { %p6877_p1 = pnand %p6876_p11, %p6870_p3 }
 0x17e   : > { %6880 = shalt.err (!%p6877_p1)
}
 0x17f   : > { %s6881_s20 = scalar_lea.vmem %s831_s1, 16  ;;  %s7067_s2 = smov [#allocation8]  }
 0x180   : > { %p6882_p4 = scmp.ne.s32.totalorder %s831_s1, %s6881_s20  ;;  %s6886_s15 = sshll.u32 %s7067_s2, 4  ;;  %s6887_s15 = int_to_ptr.vmem [resolvable:$false] %s6886_s15 }
 0x181   : > { %s6888_s16 = scalar_lea.vmem %s6887_s15, 32  ;;  %p6889_p2 = scmp.lt.s32.totalorder %s831_s1, %s6887_s15 }
 0x182   : > { %p6884_p10 = pnand %p6882_p4, %p8595_p6  ;;  %p6890_p13 = scmp.lt.s32.totalorder %s6888_s16, %s6881_s20 }
 0x184   : > { %p6885_p7 = pneg %p6884_p10  ;;  %p6891_p9 = por %p6890_p13, %p6889_p2 }
 0x186   : > { %p6892_p0 = pnand %p6891_p9, %p6885_p7 }
 0x188   : > { %6895 = shalt.err (!%p6892_p0)
}
 0x189   : > { %p8600_p12 = scmp.ne.s32.totalorder %s8581_s8, 0  ;;  %p8601_p3 = scmp.ne.s32.totalorder %s8566_s0, 0 }
 0x18a   : > { %s7618_s25 = sand.u32 (!%p8601_p3), 1, %s7042_s26   ;;  %p8602_p6 = scmp.ne.s32.totalorder (!%p8601_p3), %s8576_s21, 0 }
 0x18b   : > { %6384 = dma.hbm_to_vmem [thread:$0]  (!%p8600_p12), %s7593_s24, 16, %s831_s1, %s821_s6  }
 0x18c   : > { %839 = sbr.rel (%p8601_p3) target bundleno = 9632 (0x25a0), region = 108  ;;  %s7621_s23 = sshll.u32 (!%p8601_p3), %s7618_s25, 3 }
 0x18d   : > { %s842_s11 = scalar_lea.sflag (!%p8601_p3), [#allocation3], %s7618_s25  ;;  %s845_s3 = scalar_lea.vmem (!%p8601_p3), [#allocation2], %s7621_s23 }
 0x193   : > { %6997 = dma.done.wait (%p8602_p6), %s842_s11, 128  }
 0x194   : > { %6999 = vsyncadd (%p8602_p6), %s842_s11, 4294967168  ;;  %s7630_s0 = sand.u32 1, %s7236_s29   ;;  %s854_s24 = scalar_lea.vmem [#allocation5], %s7621_s23 }
 0x195   : > { %s851_s8 = scalar_lea.sflag [#allocation6], %s7630_s0 }
 0x196   : > { %7001 = dma.done.wait (%p8602_p6), %s851_s8, 256  }
 0x197   : > { %7003 = vsyncadd (%p8602_p6), %s851_s8, 4294967040  ;;  %s863_s4 = scalar_lea.vmem [#allocation7], %s7621_s23  ;;  %s869_s1 = scalar_lea.sflag [#allocation9], %s7630_s0 }
 0x198   : > { %s871_s9 = scalar_lea.vmem [#allocation8], %s7618_s25 }
 0x199   : > { %7005 = dma.done.wait (%p8602_p6), %s869_s1, 16  }
 0x19a   : > { %7007 = vsyncadd (%p8602_p6), %s869_s1, 4294967280  ;;  %p8603_p9 = scmp.eq.s32.totalorder %s7236_s29, 0 }
 0x19c   : > { %7009 = dma.done.wait (%p8603_p9), [#allocation9], 32   ;;  %p8604_p5 = pmov %p8603_p9 }
 0x19e   : > { %7011 = vsyncadd (%p8604_p5), [#allocation9], 4294967264  ;;  %p8605_p8 = pmov %p8604_p5 }
 0x19f   : > { %p8606_p11 = pmov %p8604_p5 }
 0x1a0   : > { %7013 = dma.done.wait (%p8605_p8), [#allocation12], 1056  }
 0x1a1   : > { %7015 = vsyncadd (%p8606_p11), [#allocation12], 4294966240  ;;  %p8607_p1 = pmov %p8604_p5 }
 0x1a3   : > { %7017 = dma.done.wait (%p8607_p1), [#allocation15], 1056   ;;  %p8608_p4 = pmov %p8607_p1 }
 0x1a4   : > { %p8609_p10 = pmov %p8607_p1 }
 0x1a5   : > { %7019 = vsyncadd (%p8608_p4), [#allocation15], 4294966240 }
 0x1a6   : > { %7021 = dma.done.wait (%p8609_p10), [#allocation18], 1056   ;;  %p8610_p7 = pmov %p8607_p1 }
 0x1a7   : > { %p8611_p2 = pmov %p8607_p1 }
 0x1a8   : > { %7023 = vsyncadd (%p8610_p7), [#allocation18], 4294966240 }
 0x1a9   : > { %7025 = dma.done.wait (%p8611_p2), [#allocation21], 32   ;;  %p8612_p13 = pmov %p8607_p1 }
 0x1aa   : > { %v7068_v0 = vmov 0.0|0.0   ;;  %vm7069_vm0 = vmmov 0   ;;  %v7070_v1 = vmov 0.0   ;;  %s8613_s7 = sld [smem:[#allocation46_spill]]  ;;  %v7686_v8 = vld [vmem:[%s845_s3] sm:$0xff]  ;;  %vm1015_vm1 = vcmask 261120  }
 0x1ab   : > { %7027 = vsyncadd (%p8612_p13), [#allocation21], 4294967264  ;;  %6199 = vmatprep.subr.bf16.mxu0 %v7068_v0  ;;  %5866 = vmatprep.mubr.msk.f32.mxu0 %vm7069_vm0, %v7070_v1  ;;  %s8614_s16 = sld [smem:[#allocation47_spill]]  ;;  %s8512_s11 = smov 64   ;;  %vm1093_vm2 = vcmask 64512   ;;  %v7718_v19 = vld [vmem:[%s863_s4] sm:$0xff] }
 0x1ac   : > { %5869 = vmatprep.subr.mxu1 %v7070_v1  ;;  %5871 = vmatprep.mubr.msk.f32.mxu1 %vm7069_vm0, %v7070_v1  ;;  %s8531_s3 = smov 96   ;;  %s8513_s8 = smov 88   ;;  %vm995_vm3 = vcmp.gt.f32.partialorder %v7718_v19, 0.0  ;;  %vm1768_vm4 = vcmask 130048   ;;  %vm1770_vm5 = vcmask 195584   ;;  %vm2949_vm8 = vcmask 523264  }
 0x1ad   : > { %s8527_s1 = smov 120   ;;  %s8529_s21 = smov 80  }
 0x1ae   : > { %s8521_s6 = smov 72   ;;  %s8525_s4 = smov 112  }
 0x1af   : > { %s8523_s12 = smov 104   ;;  %s8509_s5 = smov 56  }
 0x1b0   : > { %v1004_v2 = vld [vmem:[%s8613_s7] sm:$0xff]  ;;  %v1005_v3 = vld [vmem:[%s8613_s7 + $0x8] sm:$0xff]  ;;  %v1006_v4 = vld [vmem:[%s8613_s7 + $0x10] sm:$0xff]  ;;  %s8511_s27 = smov 48   ;;  %s8510_s22 = smov 40  }
 0x1b1   : > { %v6200_v5 = vpack.c.bf16 %v1005_v3, %v1004_v2  ;;  %v1007_v6 = vld [vmem:[%s8613_s7 + $0x18] sm:$0xff]  ;;  %v5571_v9 = vld [vmem:[%s8614_s16] ss:$0 sm:$0xff]  ;;  %s8615_s2 = sld [smem:[#allocation48_spill]]  ;;  %s8519_s18 = smov 8  }
 0x1b2   : > { %v6203_v7 = vpack.c.bf16 %v1007_v6, %v1006_v4  ;;  %s8618_s15 = sld [smem:[#allocation56_spill]]  ;;  %s8624_s20 = smov 24  }
 0x1b3   : > { %6201 = vmatpush3.bf16.msra.mxu0 %v6200_v5  ;;  %s8631_s13 = smov 64   ;;  %s8632_s10 = smov 48  }
 0x1b4   : > { %6202 = vmatprep.subr.bf16.mxu0 %v7068_v0  ;;  %s8633_s14 = smov 40   ;;  %s5218_s19 = scalar_lea.sflag [#allocation24], %s7630_s0 }
 0x1b7   : > { %6204 = vmatpush3.bf16.msra.mxu0 %v6203_v7 }
 0x1b8   : > { %5889 = vmatprep.subr.mxu0 %v7070_v1 }
 0x1ba   : > { %5867 = vmatmul.mubr.msk.f32.vlgmr.msra.gmra.mrb[0].mxu0 %vm1015_vm1, %v7686_v8 }
 0x1bb   : > { %5891 = vmatprep.mubr.msk.f32.mxu0 %vm7069_vm0, %v7070_v1 }
 0x28d   : > { %v1085_v10 = vpop.f32.mrb[0].mxu0 }
 0x28e   : > { %v7696_v11 = vadd.f32 %v5571_v9, %v1085_v10  ;;  %v5868_v12 = vpop.f32.mrb[1].mxu0 }
 0x290   : > { %1181 = vrot.lane.b32.xlu1 %v7696_v11, %s8512_s11  ;;  %1091 = vrot.lane.b32.xlu0 %v7696_v11, %s8531_s3  ;;  %v1089_v13 = vmul.f32 0.35355338, %v7696_v11  ;;  %s8617_s11 = sld [smem:[#allocation50_spill]] }
 0x294   : > { %1259 = vrot.lane.b32.xlu1 %v7696_v11, %s8513_s8  ;;  %s8621_s8 = smov 88  }
 0x298   : > { %1257 = vrot.lane.b32.xlu1 %v1089_v13, %s8527_s1 }
 0x29c   : > { %1425 = vrot.lane.b32.xlu1 %v7696_v11, %s8529_s21 }
 0x302   : > { %v1182_v14 = vpop.permute.xlu1 %1181  ;;  %v1092_v15 = vpop.permute.xlu0 %1091 }
 0x303   : > { %5870 = vmatpush3.xpose.msk.msra.mxu1 %vm1093_vm2, %v1092_v15  ;;  %v1772_v15 = vld [vmem:[%s8615_s2] sm:$0xff] }
 0x304   : > { %5874 = vmatprep.subr.mxu1 %v7070_v1 }
 0x306   : > { %v1260_v16 = vpop.permute.xlu1 %1259  ;;  %5872 = vmatmul.mubr.msk.f32.vlgmr.msra.gmra.mrb[0].mxu1 %vm1093_vm2, %v1089_v13 }
 0x307   : > { %5875 = vmatpush3.msra.mxu1 %v1182_v14  ;;  %5876 = vmatprep.mubr.msk.f32.mxu1 %vm7069_vm0, %v7070_v1 }
 0x308   : > { %5879 = vmatprep.subr.mxu1 %v7070_v1 }
 0x30a   : > { %v1258_v17 = vpop.permute.xlu1 %1257 }
 0x30e   : > { %v1426_v18 = vpop.permute.xlu1 %1425 }
 0x30f   : > { %5890 = vmatpush3.xpose.msk.msra.mxu0 %vm1093_vm2, %v1426_v18  ;;  %v1774_v18 = vld [vmem:[%s8615_s2 + $0x10] sm:$0xff] }
 0x310   : > { %5899 = vmatprep.subr.mxu0 %v7070_v1 }
 0x3d9   : > { %v1165_v20 = vpop.f32.mrb[0].mxu1 }
 0x3da   : > { %v1169_v21 = vsel %vm995_vm3, %v1165_v20, -1e+10  ;;  %v5873_v22 = vpop.f32.mrb[1].mxu1  ;;  %v1775_v20 = vld [vmem:[%s8615_s2 + $0x18] sm:$0xff] }
 0x3db   : > { %v1170_v23 = vsel %vm1093_vm2, %v1169_v21, -inf }
 0x3dc   : > { %1171 = vmax.xlane.f32.xlu0 %v1170_v23 }
 0x3f2   : > { %1591 = vrot.lane.b32.xlu0 %v7696_v11, %s8521_s6  ;;  %s8619_s6 = sld [smem:[#allocation57_spill]] }
 0x469   : > { %v1172_v24 = vpop.xlane.xlu0 %1171 }
 0x46a   : > { %v1173_v25 = vsub.f32 %v1169_v21, %v1172_v24  ;;  %v6209_v21 = vpack.c.bf16 %v1775_v20, %v1774_v18 }
 0x46c   : > { %v1174_v26 = vmul.f32 1.442695, %v1173_v25 }
 0x46d   : > { %v1592_v31 = vpop.permute.xlu0 %1591 }
 0x46e   : > { %6476 = vpow2.f32 %v1174_v26 }
 0x478   : > { %v6477_v27 = vpop.eup %6476 }
 0x479   : > { %v1176_v28 = vsel %vm1093_vm2, %v6477_v27, 0.0 }
 0x47a   : > { %1177 = vadd.xlane.f32.xlu1 %v1176_v28 }
 0x48b   : > { %1423 = vrot.lane.b32.xlu1 %v1089_v13, %s8525_s4 }
 0x48f   : > { %1589 = vrot.lane.b32.xlu1 %v1089_v13, %s8523_s12 }
 0x507   : > { %v1178_v29 = vpop.xlane.xlu1 %1177 }
 0x508   : > { %6478 = vrcp.f32 %v1178_v29 }
 0x50b   : > { %v1424_v30 = vpop.permute.xlu1 %1423 }
 0x50c   : > { %5892 = vmatmul.mubr.msk.f32.vlgmr.msra.gmra.mrb[2].mxu0 %vm1093_vm2, %v1424_v30 }
 0x50d   : > { %5900 = vmatpush3.xpose.msk.msra.mxu0 %vm1093_vm2, %v1592_v31  ;;  %5901 = vmatprep.mubr.msk.f32.mxu0 %vm7069_vm0, %v7070_v1 }
 0x50e   : > { %6205 = vmatprep.subr.bf16.mxu0 %v7068_v0 }
 0x50f   : > { %v1590_v32 = vpop.permute.xlu1 %1589 }
 0x510   : > { %5902 = vmatmul.mubr.msk.f32.vlgmr.msra.gmra.mrb[4].mxu0 %vm1093_vm2, %v1590_v32 }
 0x511   : > { %5917 = vmatprep.mubr.msk.f32.mxu0 %vm7069_vm0, %v7070_v1 }
 0x512   : > { %v6479_v33 = vpop.eup %6478 }
 0x513   : > { %v1180_v34 = vmul.f32 %v6479_v33, %v6477_v27 }
 0x515   : > { %5877 = vmatmul.mubr.msk.f32.vlgmr.msra.gmra.mrb[2].mxu1 %vm1093_vm2, %v1180_v34 }
 0x516   : > { %5880 = vmatpush3.xpose.msk.msra.mxu1 %vm1093_vm2, %v1260_v16  ;;  %5881 = vmatprep.mubr.msk.f32.mxu1 %vm7069_vm0, %v7070_v1  ;;  %v1773_v16 = vld [vmem:[%s8615_s2 + $0x8] sm:$0xff] }
 0x517   : > { %5884 = vmatprep.subr.mxu1 %v7070_v1 }
 0x519   : > { %5882 = vmatmul.mubr.msk.f32.vlgmr.msra.gmra.mrb[4].mxu1 %vm1093_vm2, %v1258_v17  ;;  %v6206_v17 = vpack.c.bf16 %v1773_v16, %v1772_v15 }
 0x51a   : > { %5886 = vmatprep.mubr.msk.f32.mxu1 %vm7069_vm0, %v7070_v1 }
 0x51b   : > { %6207 = vmatpush3.bf16.msra.mxu0 %v6206_v17 }
 0x51c   : > { %6208 = vmatprep.subr.bf16.mxu0 %v7068_v0 }
 0x51f   : > { %6210 = vmatpush3.bf16.msra.mxu0 %v6209_v21  ;;  %v999_v21 = vlaneseq }
 0x520   : > { %6217 = vmatprep.subr.bf16.mxu0 %v7068_v0 }
 0x5df   : > { %v1497_v35 = vpop.f32.mrb[2].mxu0 }
 0x5e0   : > { %v1501_v36 = vsel %vm995_vm3, %v1497_v35, -1e+10  ;;  %v5893_v37 = vpop.f32.mrb[3].mxu0 }
 0x5e1   : > { %v1502_v38 = vsel %vm1093_vm2, %v1501_v36, -inf }
 0x5e2   : > { %1503 = vmax.xlane.f32.xlu0 %v1502_v38 }
 0x5e3   : > { %v1663_v39 = vpop.f32.mrb[4].mxu0 }
 0x5e4   : > { %v5903_v40 = vpop.f32.mrb[5].mxu0  ;;  %v1667_v47 = vsel %vm995_vm3, %v1663_v39, -1e+10 }
 0x5e5   : > { %v1668_v48 = vsel %vm1093_vm2, %v1667_v47, -inf }
 0x5e8   : > { %v7748_v41 = vpop.f32.mrb[2].mxu1 }
 0x5e9   : > { %v5878_v42 = vpop.f32.mrb[3].mxu1 }
 0x5ec   : > { %v1331_v43 = vpop.f32.mrb[4].mxu1 }
 0x5ed   : > { %v1335_v44 = vsel %vm995_vm3, %v1331_v43, -1e+10  ;;  %v5883_v45 = vpop.f32.mrb[5].mxu1 }
 0x5ee   : > { %v1336_v46 = vsel %vm1093_vm2, %v1335_v44, -inf  ;;  %v1971_v45 = vld [vmem:[#allocation11] sm:$0xff] }
 0x5ef   : > { %1337 = vmax.xlane.f32.xlu1 %v1336_v46  ;;  %v1972_v46 = vld [vmem:[#allocation11 + $0x8] sm:$0xff] }
 0x5f3   : > { %1669 = vmax.xlane.f32.xlu1 %v1668_v48  ;;  %v1973_v48 = vld [vmem:[#allocation11 + $0x10] sm:$0xff] }
 0x66f   : > { %v1504_v49 = vpop.xlane.xlu0 %1503 }
 0x670   : > { %v1505_v50 = vsub.f32 %v1501_v36, %v1504_v49  ;;  %v1974_v49 = vld [vmem:[#allocation11 + $0x18] sm:$0xff] }
 0x672   : > { %v1506_v51 = vmul.f32 1.442695, %v1505_v50  ;;  %v7811_v50 = vld [vmem:[%s854_s24] sm:$0xff]  ;;  %s8622_s24 = smov 8  }
 0x674   : > { %6480 = vpow2.f32 %v1506_v51  ;;  %v1887_v51 = vld [vmem:[%s8617_s11] sm:$0xff] }
 0x67c   : > { %v1338_v52 = vpop.xlane.xlu1 %1337 }
 0x67d   : > { %v1339_v60 = vsub.f32 %v1335_v44, %v1338_v52  ;;  %v1888_v52 = vld [vmem:[%s8617_s11 + $0x8] sm:$0xff] }
 0x67e   : > { %v6481_v53 = vpop.eup %6480 }
 0x67f   : > { %v1508_v54 = vsel %vm1093_vm2, %v6481_v53, 0.0  ;;  %v1340_v61 = vmul.f32 1.442695, %v1339_v60 }
 0x680   : > { %1509 = vadd.xlane.f32.xlu1 %v1508_v54  ;;  %v1670_v55 = vpop.xlane.xlu1 %1669  ;;  %v1889_v54 = vld [vmem:[%s8617_s11 + $0x10] sm:$0xff] }
 0x681   : > { %v1671_v56 = vsub.f32 %v1667_v47, %v1670_v55  ;;  %v6218_v47 = vpack.c.bf16 %v1972_v46, %v1971_v45  ;;  %v1890_v55 = vld [vmem:[%s8617_s11 + $0x18] sm:$0xff] }
 0x683   : > { %v1672_v57 = vmul.f32 1.442695, %v1671_v56  ;;  %v6215_v56 = vpack.c.bf16 %v1890_v55, %v1889_v54 }
 0x685   : > { %6482 = vpow2.f32 %v1672_v57 }
 0x686   : > { %6484 = vpow2.f32 %v1340_v61  ;;  %v5587_v61 = vld [vmem:[%s8618_s15] ss:$0 sm:$0xff] }
 0x68f   : > { %v6483_v58 = vpop.eup %6482 }
 0x690   : > { %v1674_v59 = vsel %vm1093_vm2, %v6483_v58, 0.0  ;;  %v6485_v62 = vpop.eup %6484 }
 0x691   : > { %1347 = vrot.lane.b32.xlu1 %v7696_v11, %s8509_s5  ;;  %1675 = vadd.xlane.f32.xlu0 %v1674_v59  ;;  %v1342_v63 = vsel %vm1093_vm2, %v6485_v62, 0.0  ;;  %s8517_s5 = smov 16  }
 0x6a7   : > { %1513 = vrot.lane.b32.xlu0 %v7696_v11, %s8511_s27  ;;  %s8515_s27 = smov 24  }
 0x6b5   : > { %1343 = vadd.xlane.f32.xlu1 %v1342_v63  ;;  %v5588_v63 = vld [vmem:[%s8619_s6] ss:$0 sm:$0xff] }
 0x6c6   : > { %1679 = vrot.lane.b32.xlu1 %v7696_v11, %s8510_s22  ;;  %s8616_s22 = sld [smem:[#allocation49_spill]] }
 0x6cc   : > { %v5585_v34 = vld [vmem:[%s8616_s22] ss:$0 sm:$0xff] }
 0x70d   : > { %v1510_v2 = vpop.xlane.xlu1 %1509 }
 0x711   : > { %v1348_v3 = vpop.permute.xlu1 %1347 }
 0x712   : > { %5885 = vmatpush3.msra.mxu1 %v1348_v3 }
 0x713   : > { %5894 = vmatprep.subr.mxu1 %v7070_v1 }
 0x71e   : > { %v1676_v5 = vpop.xlane.xlu0 %1675 }
 0x722   : > { %v1514_v10 = vpop.permute.xlu0 %1513 }
 0x742   : > { %v1344_v4 = vpop.xlane.xlu1 %1343 }
 0x743   : > { %6486 = vrcp.f32 %v1344_v4  ;;  %v5591_v4 = vld [vmem:[#allocation13] ss:$0 sm:$0xff] }
 0x744   : > { %6488 = vrcp.f32 %v1510_v2 }
 0x745   : > { %6490 = vrcp.f32 %v1676_v5 }
 0x746   : > { %v1680_v13 = vpop.permute.xlu1 %1679 }
 0x74d   : > { %v6487_v6 = vpop.eup %6486 }
 0x74e   : > { %v1346_v7 = vmul.f32 %v6487_v6, %v6485_v62  ;;  %v6489_v9 = vpop.eup %6488 }
 0x74f   : > { %v1512_v11 = vmul.f32 %v6489_v9, %v6481_v53  ;;  %v6491_v12 = vpop.eup %6490  ;;  %v6212_v53 = vpack.c.bf16 %v1888_v52, %v1887_v51 }
 0x750   : > { %5887 = vmatmul.mubr.msk.f32.vlgmr.msra.gmra.mrb[6].mxu1 %vm1093_vm2, %v1346_v7  ;;  %v1678_v14 = vmul.f32 %v6491_v12, %v6483_v58 }
 0x751   : > { %5895 = vmatpush3.msra.mxu1 %v1514_v10  ;;  %5896 = vmatprep.mubr.msk.f32.mxu1 %vm7069_vm0, %v7070_v1  ;;  %v5589_v10 = vld [vmem:[#allocation10] ss:$0 sm:$0xff] }
 0x752   : > { %5904 = vmatprep.subr.mxu1 %v7070_v1 }
 0x754   : > { %5897 = vmatmul.mubr.msk.f32.vlgmr.msra.gmra.mrb[8].mxu1 %vm1093_vm2, %v1512_v11 }
 0x755   : > { %5905 = vmatpush3.msra.mxu1 %v1680_v13  ;;  %5906 = vmatprep.mubr.msk.f32.mxu1 %vm7069_vm0, %v7070_v1 }
 0x756   : > { %6211 = vmatprep.subr.bf16.mxu1 %v7068_v0 }
 0x758   : > { %5907 = vmatmul.mubr.msk.f32.vlgmr.msra.gmra.mrb[10].mxu1 %vm1093_vm2, %v1678_v14 }
 0x759   : > { %5928 = vmatprep.mubr.msk.f32.mxu1 %vm7069_vm0, %v7070_v1  ;;  %6213 = vmatpush3.bf16.msra.mxu1 %v6212_v53 }
 0x75a   : > { %6214 = vmatprep.subr.bf16.mxu1 %v7068_v0 }
 0x75d   : > { %6216 = vmatpush3.bf16.msra.mxu1 %v6215_v56 }
 0x75e   : > { %5942 = vmatprep.subr.mxu1 %v7070_v1 }
 0x823   : > { %v1419_v22 = vpop.f32.mrb[6].mxu1 }
 0x824   : > { %1756 = vrot.lane.b32.xlu1 %v1419_v22, %s8519_s18  ;;  %v5888_v23 = vpop.f32.mrb[7].mxu1  ;;  %v996_v22 = vld [vmem:[%s871_s9] sm:$0x1]  ;;  %s8620_s9 = smov 72   ;;  %s8628_s18 = smov 120  }
 0x825   : > { %v1000_v23 = vshrl.u32 %v999_v21, 7  ;;  %vm997_vm6 = vcmp.gt.f32.partialorder %v996_v22, 0.0 }
 0x827   : > { %v1585_v24 = vpop.f32.mrb[8].mxu1 }
 0x828   : > { %1760 = vrot.lane.b32.xlu0 %v1585_v24, %s8517_s5  ;;  %v5898_v25 = vpop.f32.mrb[9].mxu1  ;;  %v1001_v24 = vsub.s32 0, %v1000_v23  ;;  %v2733_v23 = vld [vmem:[#allocation14] sm:$0xff]  ;;  %s8629_s5 = smov 112  }
 0x829   : > { %v7085_v25 = vmov 0  }
 0x82b   : > { %v1751_v26 = vpop.f32.mrb[10].mxu1 }
 0x82c   : > { %1764 = vrot.lane.b32.xlu1 %v1751_v26, %s8515_s27  ;;  %v5908_v27 = vpop.f32.mrb[11].mxu1  ;;  %v998_v26 = vsel %vm997_vm6, 1, %v7085_v25  ;;  %s8623_s27 = smov 16  }
 0x82d   : > { %v7877_v27 = vrot.slane %v998_v26, %v1001_v24  ;;  %v2734_v24 = vld [vmem:[#allocation14 + $0x8] sm:$0xff]  ;;  %v2735_v26 = vld [vmem:[#allocation14 + $0x10] sm:$0xff] }
 0x82e   : > { %v6224_v25 = vpack.c.bf16 %v2734_v24, %v2733_v23 }
 0x82f   : > { %vm1003_vm7 = vcmp.eq.s32.totalorder %v7877_v27, 1 }
 0x896   : > { %v1757_v28 = vpop.permute.xlu1 %1756 }
 0x897   : > { %v1767_v30 = vsel %vm1093_vm2, %v7748_v41, %v1757_v28 }
 0x89a   : > { %v1761_v29 = vpop.permute.xlu0 %1760 }
 0x89b   : > { %v1769_v31 = vsel %vm1768_vm4, %v1767_v30, %v1761_v29 }
 0x89e   : > { %v1765_v32 = vpop.permute.xlu1 %1764 }
 0x89f   : > { %v1771_v33 = vsel %vm1770_vm5, %v1769_v31, %v1765_v32 }
 0x8a0   : > { %5918 = vmatmul.mubr.msk.f32.vlgmr.msra.gmra.mrb[6].mxu0 %vm1015_vm1, %v1771_v33 }
 0x8a1   : > { %5939 = vmatprep.mubr.msk.f32.mxu0 %vm7069_vm0, %v7070_v1  ;;  %6219 = vmatpush3.bf16.msra.mxu0 %v6218_v47 }
 0x8a2   : > { %6220 = vmatprep.subr.bf16.mxu0 %v7068_v0 }
 0x973   : > { %v1852_v35 = vpop.f32.mrb[6].mxu0 }
 0x974   : > { %v1853_v36 = vadd.f32 %v5585_v34, %v1852_v35  ;;  %v5919_v37 = vpop.f32.mrb[7].mxu0 }
 0x976   : > { %v1858_v38 = vadd.f32 %v1853_v36, %v7686_v8  ;;  %v6221_v8 = vpack.c.bf16 %v1974_v49, %v1973_v48 }
 0x978   : > { %v1859_v39 = vsel %vm1015_vm1, %v1858_v38, 0.0  ;;  %6222 = vmatpush3.bf16.msra.mxu0 %v6221_v8 }
 0x979   : > { %1860 = vadd.xlane.f32.xlu0 %v1859_v39  ;;  %5952 = vmatprep.subr.mxu0 %v7070_v1 }
 0x97b   : > { %5940 = vmatmul.mubr.msk.f32.vlgmr.msra.gmra.mrb[8].mxu0 %vm1015_vm1, %v7811_v50 }
 0x97c   : > { %5954 = vmatprep.mubr.msk.f32.mxu0 %vm7069_vm0, %v7070_v1 }
 0xa06   : > { %v1861_v40 = vpop.xlane.xlu0 %1860 }
 0xa07   : > { %v1863_v41 = vmul.f32 0.03125, %v1861_v40 }
 0xa09   : > { %v1864_v42 = vsub.f32 %v1858_v38, %v1863_v41 }
 0xa0b   : > { %v1865_v43 = vmul.f32 %v1864_v42, %v1864_v42 }
 0xa0d   : > { %v1866_v44 = vsel %vm1015_vm1, %v1865_v43, 0.0 }
 0xa0e   : > { %1867 = vadd.xlane.f32.xlu1 %v1866_v44 }
 0xa4e   : > { %v2051_v5 = vpop.f32.mrb[8].mxu0 }
 0xa4f   : > { %v7843_v6 = vadd.f32 %v5591_v4, %v2051_v5  ;;  %v5941_v7 = vpop.f32.mrb[9].mxu0 }
 0xa51   : > { %2222 = vrot.lane.b32.xlu0 %v7843_v6, %s8527_s1 }
 0xa55   : > { %2388 = vrot.lane.b32.xlu0 %v7843_v6, %s8525_s4 }
 0xa59   : > { %2554 = vrot.lane.b32.xlu0 %v7843_v6, %s8523_s12 }
 0xa9b   : > { %v1868_v57 = vpop.xlane.xlu1 %1867 }
 0xa9c   : > { %v1869_v58 = vmul.f32 0.03125, %v1868_v57 }
 0xa9e   : > { %v1870_v59 = vadd.f32 1e-05, %v1869_v58 }
 0xaa0   : > { %6492 = vrsqrt.f32 %v1870_v59 }
 0xaaa   : > { %v6493_v60 = vpop.eup %6492 }
 0xaab   : > { %v1872_v62 = vmul.f32 %v6493_v60, %v1864_v42 }
 0xaad   : > { %v1879_v2 = vmul.f32 %v5587_v61, %v1872_v62 }
 0xaaf   : > { %v7837_v3 = vadd.f32 %v5588_v63, %v1879_v2 }
 0xab1   : > { %5929 = vmatmul.mubr.msk.f32.vlgmr.msra.gmra.mrb[12].mxu1 %vm1015_vm1, %v7837_v3 }
 0xab2   : > { %5944 = vmatprep.mubr.msk.f32.mxu1 %vm7069_vm0, %v7070_v1  ;;  %5943 = vmatpush3.xpose.msk.msra.mxu1 %vm1093_vm2, %v7843_v6 }
 0xab3   : > { %5947 = vmatprep.subr.mxu1 %v7070_v1 }
 0xac3   : > { %v2223_v9 = vpop.permute.xlu0 %2222 }
 0xac4   : > { %5953 = vmatpush3.xpose.msk.msra.mxu0 %vm1093_vm2, %v2223_v9 }
 0xac5   : > { %5962 = vmatprep.subr.mxu0 %v7070_v1 }
 0xac7   : > { %v2389_v15 = vpop.permute.xlu0 %2388 }
 0xacb   : > { %v2555_v18 = vpop.permute.xlu0 %2554 }
 0xb84   : > { %v1967_v11 = vpop.f32.mrb[12].mxu1 }
 0xb85   : > { %v1968_v12 = vadd.f32 %v5589_v10, %v1967_v11  ;;  %v5930_v13 = vpop.f32.mrb[13].mxu1 }
 0xb87   : > { %v2055_v14 = vmul.f32 0.35355338, %v1968_v12 }
 0xb89   : > { %2220 = vrot.lane.b32.xlu1 %v2055_v14, %s8527_s1  ;;  %5945 = vmatmul.mubr.msk.f32.vlgmr.msra.gmra.mrb[14].mxu1 %vm1093_vm2, %v2055_v14  ;;  %s8630_s1 = smov 104  }
 0xb8a   : > { %5949 = vmatprep.mubr.msk.f32.mxu1 %vm7069_vm0, %v7070_v1 }
 0xb8d   : > { %2386 = vrot.lane.b32.xlu1 %v2055_v14, %s8525_s4  ;;  %s8627_s4 = smov 80  }
 0xb91   : > { %2552 = vrot.lane.b32.xlu1 %v2055_v14, %s8523_s12  ;;  %s8625_s12 = sld [smem:[#allocation60_spill]] }
 0xbfb   : > { %v2221_v16 = vpop.permute.xlu1 %2220 }
 0xbfc   : > { %5955 = vmatmul.mubr.msk.f32.vlgmr.msra.gmra.mrb[10].mxu0 %vm1093_vm2, %v2221_v16 }
 0xbfd   : > { %5963 = vmatpush3.xpose.msk.msra.mxu0 %vm1093_vm2, %v2389_v15  ;;  %5964 = vmatprep.mubr.msk.f32.mxu0 %vm7069_vm0, %v7070_v1 }
 0xbfe   : > { %5972 = vmatprep.subr.mxu0 %v7070_v1 }
 0xbff   : > { %v2387_v17 = vpop.permute.xlu1 %2386 }
 0xc00   : > { %5965 = vmatmul.mubr.msk.f32.vlgmr.msra.gmra.mrb[12].mxu0 %vm1093_vm2, %v2387_v17 }
 0xc01   : > { %5973 = vmatpush3.xpose.msk.msra.mxu0 %vm1093_vm2, %v2555_v18  ;;  %5974 = vmatprep.mubr.msk.f32.mxu0 %vm7069_vm0, %v7070_v1 }
 0xc02   : > { %6223 = vmatprep.subr.bf16.mxu0 %v7068_v0 }
 0xc03   : > { %v2553_v20 = vpop.permute.xlu1 %2552 }
 0xc04   : > { %5975 = vmatmul.mubr.msk.f32.vlgmr.msra.gmra.mrb[14].mxu0 %vm1093_vm2, %v2553_v20 }
 0xc05   : > { %5990 = vmatprep.mubr.msk.f32.mxu0 %vm7069_vm0, %v7070_v1  ;;  %6225 = vmatpush3.bf16.msra.mxu0 %v6224_v25  ;;  %v5613_v25 = vld [vmem:[#allocation20] ss:$0 sm:$0xff] }
 0xc06   : > { %6226 = vmatprep.subr.bf16.mxu0 %v7068_v0 }
 0xc5c   : > { %v2128_v28 = vpop.f32.mrb[14].mxu1 }
 0xc5d   : > { %v2132_v29 = vsel %vm1003_vm7, %v2128_v28, -1e+10  ;;  %v5946_v30 = vpop.f32.mrb[15].mxu1  ;;  %v2736_v28 = vld [vmem:[#allocation14 + $0x18] sm:$0xff] }
 0xc5e   : > { %v2133_v31 = vsel %vm1093_vm2, %v2132_v29, -inf }
 0xc5f   : > { %2134 = vmax.xlane.f32.xlu0 %v2133_v31 }
 0xccf   : > { %v2294_v32 = vpop.f32.mrb[10].mxu0 }
 0xcd0   : > { %v2298_v33 = vsel %vm1003_vm7, %v2294_v32, -1e+10  ;;  %v5956_v34 = vpop.f32.mrb[11].mxu0 }
 0xcd1   : > { %v2299_v35 = vsel %vm1093_vm2, %v2298_v33, -inf }
 0xcd2   : > { %2300 = vmax.xlane.f32.xlu1 %v2299_v35 }
 0xcd3   : > { %v2460_v36 = vpop.f32.mrb[12].mxu0 }
 0xcd4   : > { %v2464_v37 = vsel %vm1003_vm7, %v2460_v36, -1e+10  ;;  %v5966_v38 = vpop.f32.mrb[13].mxu0 }
 0xcd5   : > { %v2465_v39 = vsel %vm1093_vm2, %v2464_v37, -inf }
 0xcd6   : > { %2466 = vmax.xlane.f32.xlu0 %v2465_v39 }
 0xcd7   : > { %v2626_v40 = vpop.f32.mrb[14].mxu0 }
 0xcd8   : > { %v2630_v41 = vsel %vm1003_vm7, %v2626_v40, -1e+10  ;;  %v5976_v42 = vpop.f32.mrb[15].mxu0 }
 0xcd9   : > { %v2631_v43 = vsel %vm1093_vm2, %v2630_v41, -inf  ;;  %v5605_v42 = vld [vmem:[#allocation16] ss:$0 sm:$0xff] }
 0xcda   : > { %2632 = vmax.xlane.f32.xlu0 %v2631_v43 }
 0xce3   : > { %2144 = vrot.lane.b32.xlu1 %v7843_v6, %s8531_s3  ;;  %s8634_s3 = smov 56  }
 0xcec   : > { %v2135_v44 = vpop.xlane.xlu0 %2134 }
 0xced   : > { %v2136_v45 = vsub.f32 %v2132_v29, %v2135_v44  ;;  %v6227_v29 = vpack.c.bf16 %v2736_v28, %v2735_v26 }
 0xcef   : > { %v2137_v46 = vmul.f32 1.442695, %v2136_v45  ;;  %6228 = vmatpush3.bf16.msra.mxu0 %v6227_v29 }
 0xcf0   : > { %6235 = vmatprep.subr.bf16.mxu0 %v7068_v0 }
 0xcf1   : > { %6494 = vpow2.f32 %v2137_v46 }
 0xcfb   : > { %v6495_v47 = vpop.eup %6494 }
 0xcfc   : > { %v2139_v48 = vsel %vm1093_vm2, %v6495_v47, 0.0 }
 0xd07   : > { %2140 = vadd.xlane.f32.xlu1 %v2139_v48 }
 0xd5f   : > { %v2301_v49 = vpop.xlane.xlu1 %2300 }
 0xd60   : > { %v2302_v8 = vsub.f32 %v2298_v33, %v2301_v49 }
 0xd62   : > { %v2303_v51 = vmul.f32 1.442695, %v2302_v8 }
 0xd63   : > { %v2145_v52 = vpop.permute.xlu1 %2144  ;;  %v2467_v53 = vpop.xlane.xlu0 %2466 }
 0xd64   : > { %6496 = vpow2.f32 %v2303_v51  ;;  %v2468_v54 = vsub.f32 %v2464_v37, %v2467_v53  ;;  %5948 = vmatpush3.msra.mxu1 %v2145_v52  ;;  %v2849_v53 = vld [vmem:[#allocation17] sm:$0xff] }
 0xd65   : > { %5957 = vmatprep.subr.mxu1 %v7070_v1 }
 0xd66   : > { %v2469_v55 = vmul.f32 1.442695, %v2468_v54  ;;  %v2850_v54 = vld [vmem:[#allocation17 + $0x8] sm:$0xff] }
 0xd67   : > { %v2633_v56 = vpop.xlane.xlu0 %2632 }
 0xd68   : > { %6498 = vpow2.f32 %v2469_v55  ;;  %v2634_v57 = vsub.f32 %v2630_v41, %v2633_v56  ;;  %v6230_v55 = vpack.c.bf16 %v2850_v54, %v2849_v53  ;;  %v2851_v56 = vld [vmem:[#allocation17 + $0x10] sm:$0xff] }
 0xd6a   : > { %v2635_v58 = vmul.f32 1.442695, %v2634_v57  ;;  %v2852_v57 = vld [vmem:[#allocation17 + $0x18] sm:$0xff] }
 0xd6c   : > { %6500 = vpow2.f32 %v2635_v58  ;;  %v6233_v58 = vpack.c.bf16 %v2852_v57, %v2851_v56 }
 0xd6e   : > { %v6497_v59 = vpop.eup %6496 }
 0xd6f   : > { %v2305_v60 = vsel %vm1093_vm2, %v6497_v59, 0.0 }
 0xd70   : > { %2306 = vadd.xlane.f32.xlu0 %v2305_v60  ;;  %v2936_v60 = vld [vmem:[%s8625_s12 + $0x10] sm:$0xff] }
 0xd72   : > { %v6499_v61 = vpop.eup %6498 }
 0xd73   : > { %v2471_v62 = vsel %vm1093_vm2, %v6499_v61, 0.0 }
 0xd74   : > { %2472 = vadd.xlane.f32.xlu1 %v2471_v62  ;;  %v2937_v62 = vld [vmem:[%s8625_s12 + $0x18] sm:$0xff] }
 0xd76   : > { %v6501_v63 = vpop.eup %6500 }
 0xd77   : > { %v2637_v2 = vsel %vm1093_vm2, %v6501_v63, 0.0 }
 0xd78   : > { %2638 = vadd.xlane.f32.xlu0 %v2637_v2  ;;  %v2938_v2 = vld [vmem:[%s8625_s12 + $0x20] sm:$0xff] }
 0xd85   : > { %2476 = vrot.lane.b32.xlu1 %v7843_v6, %s8529_s21  ;;  %s8626_s21 = smov 96  }
 0xd89   : > { %2642 = vrot.lane.b32.xlu1 %v7843_v6, %s8620_s9 }
 0xd8e   : > { %2310 = vrot.lane.b32.xlu0 %v7843_v6, %s8621_s8 }
 0xd94   : > { %v2141_v4 = vpop.xlane.xlu1 %2140 }
 0xd95   : > { %6502 = vrcp.f32 %v2141_v4  ;;  %v2939_v4 = vld [vmem:[%s8625_s12 + $0x28] sm:$0xff] }
 0xd9f   : > { %v6503_v5 = vpop.eup %6502 }
 0xda0   : > { %v2143_v7 = vmul.f32 %v6503_v5, %v6495_v47  ;;  %v6242_v5 = vpack.c.bf16 %v2939_v4, %v2938_v2 }
 0xda2   : > { %5950 = vmatmul.mubr.msk.f32.vlgmr.msra.gmra.mrb[16].mxu1 %vm1093_vm2, %v2143_v7 }
 0xda3   : > { %5959 = vmatprep.mubr.msk.f32.mxu1 %vm7069_vm0, %v7070_v1 }
 0xdfd   : > { %v2307_v9 = vpop.xlane.xlu0 %2306 }
 0xdfe   : > { %6504 = vrcp.f32 %v2307_v9 }
 0xe01   : > { %v2473_v10 = vpop.xlane.xlu1 %2472 }
 0xe02   : > { %6506 = vrcp.f32 %v2473_v10 }
 0xe05   : > { %v2639_v11 = vpop.xlane.xlu0 %2638  ;;  %v2477_v14 = vpop.permute.xlu1 %2476 }
 0xe06   : > { %6508 = vrcp.f32 %v2639_v11 }
 0xe08   : > { %v6505_v12 = vpop.eup %6504 }
 0xe09   : > { %v2309_v13 = vmul.f32 %v6505_v12, %v6497_v59  ;;  %v2311_v15 = vpop.permute.xlu0 %2310  ;;  %v2643_v17 = vpop.permute.xlu1 %2642  ;;  %v2935_v59 = vld [vmem:[%s8625_s12 + $0x8] sm:$0xff]  ;;  %v5609_v12 = vld [vmem:[%s8618_s15 + $0x1] ss:$0 sm:$0xff] }
 0xe0a   : > { %5958 = vmatpush3.msra.mxu1 %v2311_v15 }
 0xe0b   : > { %5960 = vmatmul.mubr.msk.f32.vlgmr.msra.gmra.mrb[18].mxu1 %vm1093_vm2, %v2309_v13  ;;  %5967 = vmatprep.subr.mxu1 %v7070_v1 }
 0xe0c   : > { %v6507_v6 = vpop.eup %6506  ;;  %5968 = vmatpush3.msra.mxu1 %v2477_v14  ;;  %5969 = vmatprep.mubr.msk.f32.mxu1 %vm7069_vm0, %v7070_v1  ;;  %v5610_v14 = vld [vmem:[%s8619_s6 + $0x1] ss:$0 sm:$0xff] }
 0xe0d   : > { %v2475_v16 = vmul.f32 %v6507_v6, %v6499_v61  ;;  %5977 = vmatprep.subr.mxu1 %v7070_v1 }
 0xe0f   : > { %5970 = vmatmul.mubr.msk.f32.vlgmr.msra.gmra.mrb[20].mxu1 %vm1093_vm2, %v2475_v16  ;;  %v2940_v16 = vld [vmem:[%s8625_s12 + $0x30] sm:$0xff] }
 0xe10   : > { %v6509_v18 = vpop.eup %6508  ;;  %5978 = vmatpush3.msra.mxu1 %v2643_v17  ;;  %5979 = vmatprep.mubr.msk.f32.mxu1 %vm7069_vm0, %v7070_v1  ;;  %v2941_v17 = vld [vmem:[%s8625_s12 + $0x38] sm:$0xff] }
 0xe11   : > { %v2641_v20 = vmul.f32 %v6509_v18, %v6501_v63  ;;  %6229 = vmatprep.subr.bf16.mxu1 %v7068_v0  ;;  %v6239_v63 = vpack.c.bf16 %v2937_v62, %v2936_v60  ;;  %v6245_v18 = vpack.c.bf16 %v2941_v17, %v2940_v16 }
 0xe13   : > { %5980 = vmatmul.mubr.msk.f32.vlgmr.msra.gmra.mrb[22].mxu1 %vm1093_vm2, %v2641_v20  ;;  %v5611_v20 = vld [vmem:[#allocation19] ss:$0 sm:$0xff] }
 0xe14   : > { %6001 = vmatprep.mubr.msk.f32.mxu1 %vm7069_vm0, %v7070_v1  ;;  %6231 = vmatpush3.bf16.msra.mxu1 %v6230_v55 }
 0xe15   : > { %6232 = vmatprep.subr.bf16.mxu1 %v7068_v0 }
 0xe18   : > { %6234 = vmatpush3.bf16.msra.mxu1 %v6233_v58 }
 0xe19   : > { %6247 = vmatprep.subr.bf16.mxu1 %v7068_v0 }
 0xe75   : > { %v2216_v21 = vpop.f32.mrb[16].mxu1 }
 0xe76   : > { %v5951_v22 = vpop.f32.mrb[17].mxu1 }
 0xede   : > { %v2382_v30 = vpop.f32.mrb[18].mxu1 }
 0xedf   : > { %2719 = vrot.lane.b32.xlu0 %v2382_v30, %s8622_s24  ;;  %v5961_v31 = vpop.f32.mrb[19].mxu1 }
 0xee2   : > { %v2548_v32 = vpop.f32.mrb[20].mxu1 }
 0xee3   : > { %2723 = vrot.lane.b32.xlu1 %v2548_v32, %s8623_s27  ;;  %v5971_v33 = vpop.f32.mrb[21].mxu1 }
 0xee6   : > { %v2714_v34 = vpop.f32.mrb[22].mxu1 }
 0xee7   : > { %2727 = vrot.lane.b32.xlu0 %v2714_v34, %s8624_s20  ;;  %v5981_v35 = vpop.f32.mrb[23].mxu1 }
 0xf51   : > { %v2720_v36 = vpop.permute.xlu0 %2719 }
 0xf52   : > { %v2730_v38 = vsel %vm1093_vm2, %v2216_v21, %v2720_v36 }
 0xf55   : > { %v2724_v37 = vpop.permute.xlu1 %2723 }
 0xf56   : > { %v2731_v39 = vsel %vm1768_vm4, %v2730_v38, %v2724_v37  ;;  %v5619_v37 = vld [vmem:[%s8613_s7 + $0x20] sm:$0xff]  ;;  %v5620_v38 = vld [vmem:[%s8613_s7 + $0x28] sm:$0xff] }
 0xf59   : > { %v2728_v40 = vpop.permute.xlu0 %2727 }
 0xf5a   : > { %v2732_v41 = vsel %vm1770_vm5, %v2731_v39, %v2728_v40  ;;  %v6248_v39 = vpack.c.bf16 %v5620_v38, %v5619_v37  ;;  %v5621_v40 = vld [vmem:[%s8613_s7 + $0x30] sm:$0xff] }
 0xf5b   : > { %5991 = vmatmul.mubr.msk.f32.vlgmr.msra.gmra.mrb[16].mxu0 %vm1015_vm1, %v2732_v41  ;;  %v5622_v41 = vld [vmem:[%s8613_s7 + $0x38] sm:$0xff]  ;;  %s7086_s7 = smov [#allocation23]  }
 0xf5c   : > { %6020 = vmatprep.mubr.msk.f32.mxu0 %vm7069_vm0, %v7070_v1 }
0x102e   : > { %v2813_v43 = vpop.f32.mrb[16].mxu0 }
0x102f   : > { %v2814_v44 = vadd.f32 %v5605_v42, %v2813_v43  ;;  %v5992_v45 = vpop.f32.mrb[17].mxu0  ;;  %v6251_v42 = vpack.c.bf16 %v5622_v41, %v5621_v40 }
0x1031   : > { %v2821_v46 = vadd.f32 %v2814_v44, %v7837_v3  ;;  %v2934_v3 = vld [vmem:[%s8625_s12] sm:$0xff] }
0x1032   : > { %v6236_v61 = vpack.c.bf16 %v2935_v59, %v2934_v3 }
0x1033   : > { %v2822_v47 = vsel %vm1015_vm1, %v2821_v46, 0.0 }
0x1034   : > { %2823 = vadd.xlane.f32.xlu1 %v2822_v47  ;;  %6237 = vmatpush3.bf16.msra.mxu0 %v6236_v61  ;;  %v5617_v47 = vld [vmem:[%s8618_s15 + $0x2] ss:$0 sm:$0xff] }
0x1035   : > { %6238 = vmatprep.subr.bf16.mxu0 %v7068_v0 }
0x1038   : > { %6240 = vmatpush3.bf16.msra.mxu0 %v6239_v63 }
0x1039   : > { %6241 = vmatprep.subr.bf16.mxu0 %v7068_v0 }
0x103c   : > { %6243 = vmatpush3.bf16.msra.mxu0 %v6242_v5 }
0x103d   : > { %6244 = vmatprep.subr.bf16.mxu0 %v7068_v0 }
0x1040   : > { %6246 = vmatpush3.bf16.msra.mxu0 %v6245_v18 }
0x1041   : > { %6044 = vmatprep.subr.mxu0 %v7070_v1 }
0x10c1   : > { %v2824_v48 = vpop.xlane.xlu1 %2823 }
0x10c2   : > { %v2825_v49 = vmul.f32 0.03125, %v2824_v48 }
0x10c4   : > { %v2826_v8 = vsub.f32 %v2821_v46, %v2825_v49  ;;  %v5618_v49 = vld [vmem:[%s8619_s6 + $0x2] ss:$0 sm:$0xff] }
0x10c6   : > { %v2827_v51 = vmul.f32 %v2826_v8, %v2826_v8 }
0x10c8   : > { %v2828_v52 = vsel %vm1015_vm1, %v2827_v51, 0.0 }
0x10c9   : > { %2829 = vadd.xlane.f32.xlu0 %v2828_v52  ;;  %v5624_v52 = vld [vmem:[%s8614_s16 + $0x1] ss:$0 sm:$0xff]  ;;  %s8637_s16 = sld [smem:[#allocation40_spill]] }
0x10cf   : > { %p8640_p12 = scmp.ne.s32.totalorder %s8637_s16, 0 }
0x1156   : > { %v2830_v7 = vpop.xlane.xlu0 %2829 }
0x1157   : > { %v2831_v9 = vmul.f32 0.03125, %v2830_v7 }
0x1159   : > { %v2832_v10 = vadd.f32 1e-05, %v2831_v9 }
0x115b   : > { %6510 = vrsqrt.f32 %v2832_v10 }
0x1165   : > { %v6511_v11 = vpop.eup %6510 }
0x1166   : > { %v2834_v13 = vmul.f32 %v6511_v11, %v2826_v8 }
0x1168   : > { %v2841_v15 = vmul.f32 %v5609_v12, %v2834_v13 }
0x116a   : > { %v2848_v6 = vadd.f32 %v5610_v14, %v2841_v15 }
0x116c   : > { %6002 = vmatmul.mubr.msk.f32.vlgmr.msra.gmra.mrb[24].mxu1 %vm1015_vm1, %v2848_v6 }
0x116d   : > { %6031 = vmatprep.mubr.msk.f32.mxu1 %vm7069_vm0, %v7070_v1  ;;  %6249 = vmatpush3.bf16.msra.mxu1 %v6248_v39 }
0x116e   : > { %6250 = vmatprep.subr.bf16.mxu1 %v7068_v0 }
0x1171   : > { %6252 = vmatpush3.bf16.msra.mxu1 %v6251_v42 }
0x1172   : > { %6034 = vmatprep.subr.mxu1 %v7070_v1 }
0x123f   : > { %v2929_v21 = vpop.f32.mrb[24].mxu1 }
0x1240   : > { %v2930_v22 = vadd.f32 %v5611_v20, %v2929_v21  ;;  %v6003_v23 = vpop.f32.mrb[25].mxu1 }
0x1242   : > { %v2933_v24 = vmax.f32 %v2930_v22, 0.0 }
0x1244   : > { %6021 = vmatmul.mubr.msk.f32.vlgmr.msra.gmra.mrb[18].mxu0 %vm2949_vm8, %v2933_v24 }
0x1245   : > { %6046 = vmatprep.mubr.msk.f32.mxu0 %vm7069_vm0, %v7070_v1 }
0x1317   : > { %v3019_v26 = vpop.f32.mrb[18].mxu0 }
0x1318   : > { %v3020_v28 = vadd.f32 %v5613_v25, %v3019_v26  ;;  %v6022_v29 = vpop.f32.mrb[19].mxu0 }
0x131a   : > { %v3027_v30 = vadd.f32 %v3020_v28, %v2848_v6 }
0x131c   : > { %v3028_v31 = vsel %vm1015_vm1, %v3027_v30, 0.0 }
0x131d   : > { %3029 = vadd.xlane.f32.xlu0 %v3028_v31 }
0x13aa   : > { %v3030_v32 = vpop.xlane.xlu0 %3029 }
0x13ab   : > { %v3031_v33 = vmul.f32 0.03125, %v3030_v32 }
0x13ad   : > { %v3032_v34 = vsub.f32 %v3027_v30, %v3031_v33 }
0x13af   : > { %v3033_v35 = vmul.f32 %v3032_v34, %v3032_v34 }
0x13b1   : > { %v3034_v36 = vsel %vm1015_vm1, %v3033_v35, 0.0 }
0x13b2   : > { %3035 = vadd.xlane.f32.xlu1 %v3034_v36 }
0x143f   : > { %v3036_v43 = vpop.xlane.xlu1 %3035 }
0x1440   : > { %v3037_v44 = vmul.f32 0.03125, %v3036_v43 }
0x1442   : > { %v3038_v45 = vadd.f32 1e-05, %v3037_v44 }
0x1444   : > { %6512 = vrsqrt.f32 %v3038_v45 }
0x144e   : > { %v6513_v46 = vpop.eup %6512 }
0x144f   : > { %v3040_v48 = vmul.f32 %v6513_v46, %v3032_v34 }
0x1451   : > { %v3047_v8 = vmul.f32 %v5617_v47, %v3040_v48 }
0x1453   : > { %v7998_v51 = vadd.f32 %v5618_v49, %v3047_v8 }
0x1455   : > { %6032 = vmatmul.mubr.msk.f32.vlgmr.msra.gmra.mrb[26].mxu1 %vm1015_vm1, %v7998_v51 }
0x1456   : > { %6036 = vmatprep.mubr.msk.f32.mxu1 %vm7069_vm0, %v7070_v1 }
0x1528   : > { %v3137_v53 = vpop.f32.mrb[26].mxu1 }
0x1529   : > { %v8007_v54 = vadd.f32 %v5624_v52, %v3137_v53  ;;  %v6033_v55 = vpop.f32.mrb[27].mxu1 }
0x152b   : > { %3310 = vrot.lane.b32.xlu1 %v8007_v54, %s8621_s8  ;;  %3143 = vrot.lane.b32.xlu0 %v8007_v54, %s8626_s21  ;;  %v3141_v56 = vmul.f32 0.35355338, %v8007_v54 }
0x152f   : > { %3476 = vrot.lane.b32.xlu0 %v8007_v54, %s8627_s4  ;;  %3308 = vrot.lane.b32.xlu1 %v3141_v56, %s8628_s18 }
0x1533   : > { %3642 = vrot.lane.b32.xlu0 %v8007_v54, %s8620_s9  ;;  %3474 = vrot.lane.b32.xlu1 %v3141_v56, %s8629_s5 }
0x1537   : > { %3640 = vrot.lane.b32.xlu1 %v3141_v56, %s8630_s1 }
0x159d   : > { %v3311_v57 = vpop.permute.xlu1 %3310  ;;  %v3144_v58 = vpop.permute.xlu0 %3143 }
0x159e   : > { %6035 = vmatpush3.xpose.msk.msra.mxu1 %vm1093_vm2, %v3144_v58  ;;  %6045 = vmatpush3.xpose.msk.msra.mxu0 %vm1093_vm2, %v3311_v57  ;;  %v5638_v57 = vld [vmem:[%s8615_s2 + $0x20] sm:$0xff]  ;;  %v5639_v58 = vld [vmem:[%s8615_s2 + $0x28] sm:$0xff] }
0x159f   : > { %6054 = vmatprep.subr.mxu0 %v7070_v1  ;;  %6039 = vmatprep.subr.mxu1 %v7070_v1 }
0x15a1   : > { %v3477_v3 = vpop.permute.xlu0 %3476  ;;  %v3309_v59 = vpop.permute.xlu1 %3308  ;;  %6037 = vmatmul.mubr.msk.f32.vlgmr.msra.gmra.mrb[28].mxu1 %vm1093_vm2, %v3141_v56 }
0x15a2   : > { %6047 = vmatmul.mubr.msk.f32.vlgmr.msra.gmra.mrb[20].mxu0 %vm1093_vm2, %v3309_v59  ;;  %6041 = vmatprep.mubr.msk.f32.mxu1 %vm7069_vm0, %v7070_v1  ;;  %v5640_v59 = vld [vmem:[%s8615_s2 + $0x30] sm:$0xff] }
0x15a3   : > { %6055 = vmatpush3.xpose.msk.msra.mxu0 %vm1093_vm2, %v3477_v3  ;;  %6056 = vmatprep.mubr.msk.f32.mxu0 %vm7069_vm0, %v7070_v1  ;;  %v6254_v3 = vpack.c.bf16 %v5639_v58, %v5638_v57 }
0x15a4   : > { %6064 = vmatprep.subr.mxu0 %v7070_v1 }
0x15a5   : > { %v3643_v60 = vpop.permute.xlu0 %3642  ;;  %v3475_v61 = vpop.permute.xlu1 %3474 }
0x15a6   : > { %6057 = vmatmul.mubr.msk.f32.vlgmr.msra.gmra.mrb[22].mxu0 %vm1093_vm2, %v3475_v61 }
0x15a7   : > { %6065 = vmatpush3.xpose.msk.msra.mxu0 %vm1093_vm2, %v3643_v60  ;;  %6066 = vmatprep.mubr.msk.f32.mxu0 %vm7069_vm0, %v7070_v1  ;;  %v5641_v60 = vld [vmem:[%s8615_s2 + $0x38] sm:$0xff] }
0x15a8   : > { %6253 = vmatprep.subr.bf16.mxu0 %v7068_v0  ;;  %v6257_v61 = vpack.c.bf16 %v5641_v60, %v5640_v59 }
0x15a9   : > { %v3641_v62 = vpop.permute.xlu1 %3640 }
0x15aa   : > { %6067 = vmatmul.mubr.msk.f32.vlgmr.msra.gmra.mrb[24].mxu0 %vm1093_vm2, %v3641_v62 }
0x15ab   : > { %6082 = vmatprep.mubr.msk.f32.mxu0 %vm7069_vm0, %v7070_v1  ;;  %6255 = vmatpush3.bf16.msra.mxu0 %v6254_v3 }
0x15ac   : > { %6256 = vmatprep.subr.bf16.mxu0 %v7068_v0 }
0x15af   : > { %6258 = vmatpush3.bf16.msra.mxu0 %v6257_v61 }
0x15b0   : > { %6265 = vmatprep.subr.bf16.mxu0 %v7068_v0 }
0x1674   : > { %v3216_v63 = vpop.f32.mrb[28].mxu1 }
0x1675   : > { %v3220_v2 = vsel %vm995_vm3, %v3216_v63, -1e+10  ;;  %v6038_v4 = vpop.f32.mrb[29].mxu1  ;;  %v3382_v5 = vpop.f32.mrb[20].mxu0 }
0x1676   : > { %v3386_v7 = vsel %vm995_vm3, %v3382_v5, -1e+10  ;;  %v6048_v9 = vpop.f32.mrb[21].mxu0  ;;  %v3221_v10 = vsel %vm1093_vm2, %v3220_v2, -inf }
0x1677   : > { %3222 = vmax.xlane.f32.xlu0 %v3221_v10  ;;  %v3387_v11 = vsel %vm1093_vm2, %v3386_v7, -inf }
0x1678   : > { %3388 = vmax.xlane.f32.xlu1 %v3387_v11 }
0x1679   : > { %v3548_v12 = vpop.f32.mrb[22].mxu0 }
0x167a   : > { %v3552_v13 = vsel %vm995_vm3, %v3548_v12, -1e+10  ;;  %v6058_v14 = vpop.f32.mrb[23].mxu0 }
0x167b   : > { %v3553_v15 = vsel %vm1093_vm2, %v3552_v13, -inf }
0x167c   : > { %3554 = vmax.xlane.f32.xlu0 %v3553_v15 }
0x167d   : > { %v3714_v6 = vpop.f32.mrb[24].mxu0 }
0x167e   : > { %v3718_v16 = vsel %vm995_vm3, %v3714_v6, -1e+10  ;;  %v6068_v17 = vpop.f32.mrb[25].mxu0 }
0x167f   : > { %v3719_v18 = vsel %vm1093_vm2, %v3718_v16, -inf }
0x1680   : > { %3720 = vmax.xlane.f32.xlu0 %v3719_v18 }
0x1689   : > { %3232 = vrot.lane.b32.xlu1 %v8007_v54, %s8631_s13  ;;  %s8535_s13 = sshll.u32 %s7618_s25, 5 }
0x1704   : > { %v3223_v20 = vpop.xlane.xlu0 %3222 }
0x1705   : > { %v3224_v21 = vsub.f32 %v3220_v2, %v3223_v20  ;;  %v3389_v22 = vpop.xlane.xlu1 %3388 }
0x1706   : > { %v3390_v23 = vsub.f32 %v3386_v7, %v3389_v22 }
0x1707   : > { %v3225_v24 = vmul.f32 1.442695, %v3224_v21 }
0x1708   : > { %v3391_v25 = vmul.f32 1.442695, %v3390_v23 }
0x1709   : > { %6514 = vpow2.f32 %v3225_v24  ;;  %v3233_v26 = vpop.permute.xlu1 %3232  ;;  %v3555_v28 = vpop.xlane.xlu0 %3554 }
0x170a   : > { %6516 = vpow2.f32 %v3391_v25  ;;  %v3556_v29 = vsub.f32 %v3552_v13, %v3555_v28  ;;  %6040 = vmatpush3.msra.mxu1 %v3233_v26 }
0x170b   : > { %6049 = vmatprep.subr.mxu1 %v7070_v1 }
0x170c   : > { %v3557_v19 = vmul.f32 1.442695, %v3556_v29  ;;  %v4026_v29 = vld [vmem:[#allocation11 + $0x20] sm:$0xff] }
0x170d   : > { %v3721_v30 = vpop.xlane.xlu0 %3720 }
0x170e   : > { %6518 = vpow2.f32 %v3557_v19  ;;  %v3722_v31 = vsub.f32 %v3718_v16, %v3721_v30  ;;  %v5643_v16 = vld [vmem:[%s8616_s22 + $0x1] ss:$0 sm:$0xff] }
0x170f   : > { %v4027_v19 = vld [vmem:[#allocation11 + $0x28] sm:$0xff] }
0x1710   : > { %v3723_v32 = vmul.f32 1.442695, %v3722_v31  ;;  %v6266_v30 = vpack.c.bf16 %v4027_v19, %v4026_v29  ;;  %v5649_v31 = vld [vmem:[%s8617_s11 + $0x20] sm:$0xff] }
0x1712   : > { %6520 = vpow2.f32 %v3723_v32 }
0x1713   : > { %v6515_v33 = vpop.eup %6514 }
0x1714   : > { %v6517_v34 = vpop.eup %6516  ;;  %v3227_v35 = vsel %vm1093_vm2, %v6515_v33, 0.0 }
0x1715   : > { %3228 = vadd.xlane.f32.xlu1 %v3227_v35  ;;  %v3393_v36 = vsel %vm1093_vm2, %v6517_v34, 0.0 }
0x1716   : > { %3394 = vadd.xlane.f32.xlu0 %v3393_v36  ;;  %v5651_v36 = vld [vmem:[%s8617_s11 + $0x30] sm:$0xff] }
0x1718   : > { %v6519_v37 = vpop.eup %6518 }
0x1719   : > { %v3559_v38 = vsel %vm1093_vm2, %v6519_v37, 0.0 }
0x171a   : > { %3560 = vadd.xlane.f32.xlu1 %v3559_v38 }
0x171c   : > { %v6521_v39 = vpop.eup %6520 }
0x171d   : > { %v3725_v40 = vsel %vm1093_vm2, %v6521_v39, 0.0 }
0x171e   : > { %3726 = vadd.xlane.f32.xlu0 %v3725_v40 }
0x172b   : > { %3564 = vrot.lane.b32.xlu1 %v8007_v54, %s8632_s10  ;;  %s8069_s10 = scalar_lea.vmem [#allocation23], %s8535_s13  ;;  %s6900_s13 = sshll.u32 %s7086_s7, 4  ;;  %s6901_s13 = int_to_ptr.vmem [resolvable:$false] %s6900_s13 }
0x172c   : > { %s5249_s17 = sshll.u32 %s8069_s10, 4  ;;  %s8323_s17 = int_to_ptr.vmem [resolvable:$true] %s5249_s17 }
0x172d   : > { %s6896_s30 = scalar_lea.vmem %s8323_s17, 512  ;;  %p6903_p9 = scmp.lt.s32.totalorder %s8323_s17, %s6901_s13 }
0x172e   : > { %p6897_p0 = scmp.ne.s32.totalorder %s8323_s17, %s6896_s30 }
0x172f   : > { %3730 = vrot.lane.b32.xlu1 %v8007_v54, %s8633_s14 }
0x1730   : > { %p6898_p3 = pnand %p6897_p0, %p8640_p12 }
0x1732   : > { %p6899_p6 = pneg %p6898_p3 }
0x1734   : > { %3398 = vrot.lane.b32.xlu0 %v8007_v54, %s8634_s3 }
0x17a2   : > { %v3229_v41 = vpop.xlane.xlu1 %3228 }
0x17a3   : > { %6522 = vrcp.f32 %v3229_v41  ;;  %v3395_v42 = vpop.xlane.xlu0 %3394 }
0x17a4   : > { %6524 = vrcp.f32 %v3395_v42 }
0x17a7   : > { %v3561_v43 = vpop.xlane.xlu1 %3560 }
0x17a8   : > { %6526 = vrcp.f32 %v3561_v43  ;;  %v5647_v43 = vld [vmem:[%s8618_s15 + $0x3] ss:$0 sm:$0xff] }
0x17ab   : > { %v3727_v44 = vpop.xlane.xlu0 %3726  ;;  %v3565_v52 = vpop.permute.xlu1 %3564 }
0x17ac   : > { %6528 = vrcp.f32 %v3727_v44 }
0x17ad   : > { %v6523_v45 = vpop.eup %6522 }
0x17ae   : > { %v6525_v46 = vpop.eup %6524  ;;  %v3231_v47 = vmul.f32 %v6523_v45, %v6515_v33  ;;  %v4028_v33 = vld [vmem:[#allocation11 + $0x30] sm:$0xff]  ;;  %v5648_v45 = vld [vmem:[%s8619_s6 + $0x3] ss:$0 sm:$0xff] }
0x17af   : > { %v3397_v48 = vmul.f32 %v6525_v46, %v6517_v34  ;;  %v3399_v49 = vpop.permute.xlu0 %3398  ;;  %v3731_v56 = vpop.permute.xlu1 %3730  ;;  %v4029_v34 = vld [vmem:[#allocation11 + $0x38] sm:$0xff] }
0x17b0   : > { %5113 = vst.msk [vmem:[%s8069_s10] sm:$0xff] %vm1093_vm2, %v3231_v47  ;;  %6042 = vmatmul.mubr.msk.f32.vlgmr.msra.gmra.mrb[30].mxu1 %vm1093_vm2, %v3231_v47  ;;  %v6269_v35 = vpack.c.bf16 %v4029_v34, %v4028_v33  ;;  %v5655_v47 = vld [vmem:[#allocation13 + $0x1] ss:$0 sm:$0xff] }
0x17b1   : > { %5691 = vst.msk [vmem:[%s8069_s10 + $0x8] sm:$0xff] %vm1093_vm2, %v3397_v48  ;;  %6050 = vmatpush3.msra.mxu1 %v3399_v49  ;;  %6051 = vmatprep.mubr.msk.f32.mxu1 %vm7069_vm0, %v7070_v1 }
0x17b2   : > { %v6527_v8 = vpop.eup %6526  ;;  %6059 = vmatprep.subr.mxu1 %v7070_v1 }
0x17b3   : > { %v3563_v53 = vmul.f32 %v6527_v8, %v6519_v37  ;;  %v5652_v37 = vld [vmem:[%s8617_s11 + $0x38] sm:$0xff] }
0x17b4   : > { %6052 = vmatmul.mubr.msk.f32.vlgmr.msra.gmra.mrb[32].mxu1 %vm1093_vm2, %v3397_v48  ;;  %v6263_v38 = vpack.c.bf16 %v5652_v37, %v5651_v36 }
0x17b5   : > { %5693 = vst.msk [vmem:[%s8069_s10 + $0x10] sm:$0xff] %vm1093_vm2, %v3563_v53  ;;  %6060 = vmatpush3.msra.mxu1 %v3565_v52  ;;  %6061 = vmatprep.mubr.msk.f32.mxu1 %vm7069_vm0, %v7070_v1 }
0x17b6   : > { %v6529_v54 = vpop.eup %6528  ;;  %6069 = vmatprep.subr.mxu1 %v7070_v1 }
0x17b7   : > { %v3729_v55 = vmul.f32 %v6529_v54, %v6521_v39 }
0x17b8   : > { %6062 = vmatmul.mubr.msk.f32.vlgmr.msra.gmra.mrb[34].mxu1 %vm1093_vm2, %v3563_v53  ;;  %v5653_v53 = vld [vmem:[#allocation10 + $0x1] ss:$0 sm:$0xff] }
0x17b9   : > { %5695 = vst.msk [vmem:[%s8069_s10 + $0x18] sm:$0xff] %vm1093_vm2, %v3729_v55  ;;  %6070 = vmatpush3.msra.mxu1 %v3731_v56  ;;  %6071 = vmatprep.mubr.msk.f32.mxu1 %vm7069_vm0, %v7070_v1 }
0x17ba   : > { %6259 = vmatprep.subr.bf16.mxu1 %v7068_v0 }
0x17bc   : > { %6072 = vmatmul.mubr.msk.f32.vlgmr.msra.gmra.mrb[36].mxu1 %vm1093_vm2, %v3729_v55 }
0x17bd   : > { %6093 = vmatprep.mubr.msk.f32.mxu1 %vm7069_vm0, %v7070_v1 }
0x1883   : > { %v3304_v62 = vpop.f32.mrb[30].mxu1 }
0x1884   : > { %v6043_v63 = vpop.f32.mrb[31].mxu1 }
0x1887   : > { %v3470_v2 = vpop.f32.mrb[32].mxu1 }
0x1888   : > { %3807 = vrot.lane.b32.xlu0 %v3470_v2, %s8622_s24  ;;  %v6053_v4 = vpop.f32.mrb[33].mxu1 }
0x188b   : > { %v3636_v5 = vpop.f32.mrb[34].mxu1 }
0x188c   : > { %3811 = vrot.lane.b32.xlu1 %v3636_v5, %s8623_s27  ;;  %v6063_v7 = vpop.f32.mrb[35].mxu1 }
0x188f   : > { %v3802_v9 = vpop.f32.mrb[36].mxu1 }
0x1890   : > { %3815 = vrot.lane.b32.xlu0 %v3802_v9, %s8624_s20  ;;  %v6073_v10 = vpop.f32.mrb[37].mxu1 }
0x18fa   : > { %v3808_v11 = vpop.permute.xlu0 %3807 }
0x18fb   : > { %v3818_v13 = vsel %vm1093_vm2, %v3304_v62, %v3808_v11 }
0x18fe   : > { %v3812_v12 = vpop.permute.xlu1 %3811 }
0x18ff   : > { %v3819_v14 = vsel %vm1768_vm4, %v3818_v13, %v3812_v12 }
0x1902   : > { %v3816_v15 = vpop.permute.xlu0 %3815 }
0x1903   : > { %v3820_v6 = vsel %vm1770_vm5, %v3819_v14, %v3816_v15 }
0x1904   : > { %6083 = vmatmul.mubr.msk.f32.vlgmr.msra.gmra.mrb[26].mxu0 %vm1015_vm1, %v3820_v6 }
0x1905   : > { %6104 = vmatprep.mubr.msk.f32.mxu0 %vm7069_vm0, %v7070_v1  ;;  %6267 = vmatpush3.bf16.msra.mxu0 %v6266_v30 }
0x1906   : > { %6268 = vmatprep.subr.bf16.mxu0 %v7068_v0 }
0x1909   : > { %6270 = vmatpush3.bf16.msra.mxu0 %v6269_v35 }
0x190a   : > { %6117 = vmatprep.subr.mxu0 %v7070_v1 }
0x190c   : > { %6105 = vmatmul.mubr.msk.f32.vlgmr.msra.gmra.mrb[28].mxu0 %vm1015_vm1, %v7811_v50 }
0x190d   : > { %6119 = vmatprep.mubr.msk.f32.mxu0 %vm7069_vm0, %v7070_v1 }
0x19d7   : > { %v3903_v17 = vpop.f32.mrb[26].mxu0 }
0x19d8   : > { %v3904_v18 = vadd.f32 %v5643_v16, %v3903_v17  ;;  %v6084_v20 = vpop.f32.mrb[27].mxu0 }
0x19da   : > { %v3911_v21 = vadd.f32 %v3904_v18, %v7998_v51  ;;  %v5650_v51 = vld [vmem:[%s8617_s11 + $0x28] sm:$0xff] }
0x19db   : > { %v6260_v32 = vpack.c.bf16 %v5650_v51, %v5649_v31 }
0x19dc   : > { %v3912_v22 = vsel %vm1015_vm1, %v3911_v21, 0.0 }
0x19dd   : > { %3913 = vadd.xlane.f32.xlu1 %v3912_v22  ;;  %6261 = vmatpush3.bf16.msra.mxu1 %v6260_v32 }
0x19de   : > { %6262 = vmatprep.subr.bf16.mxu1 %v7068_v0 }
0x19df   : > { %v4104_v48 = vpop.f32.mrb[28].mxu0 }
0x19e0   : > { %v8155_v49 = vadd.f32 %v5655_v47, %v4104_v48  ;;  %v6106_v8 = vpop.f32.mrb[29].mxu0 }
0x19e1   : > { %6264 = vmatpush3.bf16.msra.mxu1 %v6263_v38 }
0x19e2   : > { %6107 = vmatprep.subr.mxu1 %v7070_v1 }
0x1a6a   : > { %v3914_v23 = vpop.xlane.xlu1 %3913 }
0x1a6b   : > { %v3915_v24 = vmul.f32 0.03125, %v3914_v23 }
0x1a6d   : > { %v3916_v25 = vsub.f32 %v3911_v21, %v3915_v24 }
0x1a6f   : > { %v3917_v26 = vmul.f32 %v3916_v25, %v3916_v25 }
0x1a71   : > { %v3918_v28 = vsel %vm1015_vm1, %v3917_v26, 0.0 }
0x1a72   : > { %3919 = vadd.xlane.f32.xlu0 %v3918_v28 }
0x1a88   : > { %4275 = vrot.lane.b32.xlu0 %v8155_v49, %s8628_s18 }
0x1aff   : > { %v3920_v39 = vpop.xlane.xlu0 %3919 }
0x1b00   : > { %v3921_v40 = vmul.f32 0.03125, %v3920_v39 }
0x1b02   : > { %v3922_v41 = vadd.f32 1e-05, %v3921_v40 }
0x1b03   : > { %v4276_v52 = vpop.permute.xlu0 %4275 }
0x1b04   : > { %6530 = vrsqrt.f32 %v3922_v41  ;;  %6118 = vmatpush3.xpose.msk.msra.mxu0 %vm1093_vm2, %v4276_v52 }
0x1b05   : > { %6127 = vmatprep.subr.mxu0 %v7070_v1 }
0x1b0e   : > { %v6531_v42 = vpop.eup %6530 }
0x1b0f   : > { %v3924_v44 = vmul.f32 %v6531_v42, %v3916_v25 }
0x1b11   : > { %v3931_v50 = vmul.f32 %v5647_v43, %v3924_v44 }
0x1b13   : > { %v8149_v46 = vadd.f32 %v5648_v45, %v3931_v50 }
0x1b15   : > { %6094 = vmatmul.mubr.msk.f32.vlgmr.msra.gmra.mrb[38].mxu1 %vm1015_vm1, %v8149_v46 }
0x1b16   : > { %6109 = vmatprep.mubr.msk.f32.mxu1 %vm7069_vm0, %v7070_v1  ;;  %6108 = vmatpush3.xpose.msk.msra.mxu1 %vm1093_vm2, %v8155_v49 }
0x1b17   : > { %6112 = vmatprep.subr.mxu1 %v7070_v1 }
0x1be8   : > { %v4021_v54 = vpop.f32.mrb[38].mxu1 }
0x1be9   : > { %v4022_v55 = vadd.f32 %v5653_v53, %v4021_v54  ;;  %v6095_v56 = vpop.f32.mrb[39].mxu1 }
0x1bea   : > { %v4787_v56 = vld [vmem:[#allocation14 + $0x20] sm:$0xff] }
0x1beb   : > { %v4108_v57 = vmul.f32 0.35355338, %v4022_v55 }
0x1bed   : > { %4273 = vrot.lane.b32.xlu1 %v4108_v57, %s8628_s18  ;;  %4439 = vrot.lane.b32.xlu0 %v4108_v57, %s8629_s5 }
0x1bee   : > { %6110 = vmatmul.mubr.msk.f32.vlgmr.msra.gmra.mrb[40].mxu1 %vm1093_vm2, %v4108_v57 }
0x1bef   : > { %6114 = vmatprep.mubr.msk.f32.mxu1 %vm7069_vm0, %v7070_v1 }
0x1bf1   : > { %4441 = vrot.lane.b32.xlu1 %v8155_v49, %s8629_s5  ;;  %4605 = vrot.lane.b32.xlu0 %v4108_v57, %s8630_s1  ;;  %v4788_v57 = vld [vmem:[#allocation14 + $0x28] sm:$0xff]  ;;  %s8638_s5 = sld [smem:[#allocation65_spill]] }
0x1bf5   : > { %4607 = vrot.lane.b32.xlu1 %v8155_v49, %s8630_s1  ;;  %s8636_s1 = sld [smem:[#allocation62_spill]] }
0x1bf7   : > { %s8639_s14 = smov %s8638_s5 }
0x1c5f   : > { %v4274_v58 = vpop.permute.xlu1 %4273  ;;  %v4440_v59 = vpop.permute.xlu0 %4439 }
0x1c60   : > { %6120 = vmatmul.mubr.msk.f32.vlgmr.msra.gmra.mrb[30].mxu0 %vm1093_vm2, %v4274_v58  ;;  %v6272_v58 = vpack.c.bf16 %v4788_v57, %v4787_v56 }
0x1c61   : > { %6129 = vmatprep.mubr.msk.f32.mxu0 %vm7069_vm0, %v7070_v1 }
0x1c63   : > { %v4442_v3 = vpop.permute.xlu1 %4441  ;;  %v4606_v61 = vpop.permute.xlu0 %4605 }
0x1c64   : > { %6128 = vmatpush3.xpose.msk.msra.mxu0 %vm1093_vm2, %v4442_v3  ;;  %v4789_v3 = vld [vmem:[#allocation14 + $0x30] sm:$0xff] }
0x1c65   : > { %6137 = vmatprep.subr.mxu0 %v7070_v1 }
0x1c67   : > { %v4608_v60 = vpop.permute.xlu1 %4607  ;;  %6130 = vmatmul.mubr.msk.f32.vlgmr.msra.gmra.mrb[32].mxu0 %vm1093_vm2, %v4440_v59  ;;  %v4790_v59 = vld [vmem:[#allocation14 + $0x38] sm:$0xff] }
0x1c68   : > { %6138 = vmatpush3.xpose.msk.msra.mxu0 %vm1093_vm2, %v4608_v60  ;;  %6139 = vmatprep.mubr.msk.f32.mxu0 %vm7069_vm0, %v7070_v1  ;;  %v6275_v60 = vpack.c.bf16 %v4790_v59, %v4789_v3 }
0x1c69   : > { %6271 = vmatprep.subr.bf16.mxu0 %v7068_v0 }
0x1c6b   : > { %6140 = vmatmul.mubr.msk.f32.vlgmr.msra.gmra.mrb[34].mxu0 %vm1093_vm2, %v4606_v61 }
0x1c6c   : > { %6155 = vmatprep.mubr.msk.f32.mxu0 %vm7069_vm0, %v7070_v1  ;;  %6273 = vmatpush3.bf16.msra.mxu0 %v6272_v58 }
0x1c6d   : > { %6274 = vmatprep.subr.bf16.mxu0 %v7068_v0 }
0x1c70   : > { %6276 = vmatpush3.bf16.msra.mxu0 %v6275_v60 }
0x1c71   : > { %6283 = vmatprep.subr.bf16.mxu0 %v7068_v0 }
0x1cc1   : > { %v4181_v62 = vpop.f32.mrb[40].mxu1 }
0x1cc2   : > { %v4185_v63 = vsel %vm1003_vm7, %v4181_v62, -1e+10  ;;  %v6111_v2 = vpop.f32.mrb[41].mxu1 }
0x1cc3   : > { %v4186_v4 = vsel %vm1093_vm2, %v4185_v63, -inf }
0x1cc4   : > { %4187 = vmax.xlane.f32.xlu1 %v4186_v4 }
0x1d33   : > { %v4347_v5 = vpop.f32.mrb[30].mxu0 }
0x1d34   : > { %v4351_v7 = vsel %vm1003_vm7, %v4347_v5, -1e+10  ;;  %v6121_v9 = vpop.f32.mrb[31].mxu0 }
0x1d35   : > { %v4352_v10 = vsel %vm1093_vm2, %v4351_v7, -inf }
0x1d36   : > { %4353 = vmax.xlane.f32.xlu0 %v4352_v10 }
0x1d3a   : > { %v4513_v11 = vpop.f32.mrb[32].mxu0 }
0x1d3b   : > { %v4517_v12 = vsel %vm1003_vm7, %v4513_v11, -1e+10  ;;  %v6131_v13 = vpop.f32.mrb[33].mxu0 }
0x1d3c   : > { %v4518_v14 = vsel %vm1093_vm2, %v4517_v12, -inf }
0x1d3d   : > { %4519 = vmax.xlane.f32.xlu0 %v4518_v14  ;;  %v5669_v14 = vld [vmem:[#allocation16 + $0x1] ss:$0 sm:$0xff] }
0x1d3e   : > { %v4679_v15 = vpop.f32.mrb[34].mxu0 }
0x1d3f   : > { %v4683_v6 = vsel %vm1003_vm7, %v4679_v15, -1e+10  ;;  %v6141_v16 = vpop.f32.mrb[35].mxu0 }
0x1d40   : > { %v4684_v17 = vsel %vm1093_vm2, %v4683_v6, -inf }
0x1d41   : > { %4685 = vmax.xlane.f32.xlu1 %v4684_v17 }
0x1d51   : > { %v4188_v18 = vpop.xlane.xlu1 %4187 }
0x1d52   : > { %v4189_v20 = vsub.f32 %v4185_v63, %v4188_v18  ;;  %4363 = vrot.lane.b32.xlu1 %v8155_v49, %s8621_s8  ;;  %s8635_s8 = sshll.u32 %s7618_s25, 5 }
0x1d54   : > { %v4190_v21 = vmul.f32 1.442695, %v4189_v20 }
0x1d56   : > { %6532 = vpow2.f32 %v4190_v21 }
0x1d60   : > { %v6533_v22 = vpop.eup %6532 }
0x1d61   : > { %v4192_v23 = vsel %vm1093_vm2, %v6533_v22, 0.0 }
0x1d62   : > { %4193 = vadd.xlane.f32.xlu0 %v4192_v23 }
0x1d78   : > { %4197 = vrot.lane.b32.xlu0 %v8155_v49, %s8626_s21  ;;  %s8214_s21 = scalar_lea.vmem [#allocation25], %s8635_s8  ;;  %s6902_s8 = scalar_lea.vmem %s6901_s13, 1024 }
0x1d79   : > { %p6904_p5 = scmp.lt.s32.totalorder %s6902_s8, %s6896_s30 }
0x1d7b   : > { %p6905_p8 = por %p6904_p5, %p6903_p9 }
0x1d7d   : > { %p6906_p11 = pnand %p6905_p8, %p6899_p6 }
0x1dc3   : > { %v4354_v27 = vpop.xlane.xlu0 %4353 }
0x1dc4   : > { %v4355_v24 = vsub.f32 %v4351_v7, %v4354_v27 }
0x1dc6   : > { %v4356_v25 = vmul.f32 1.442695, %v4355_v24  ;;  %v4905_v24 = vld [vmem:[#allocation17 + $0x20] sm:$0xff] }
0x1dc8   : > { %6534 = vpow2.f32 %v4356_v25  ;;  %v4906_v25 = vld [vmem:[#allocation17 + $0x28] sm:$0xff] }
0x1dca   : > { %v4520_v26 = vpop.xlane.xlu0 %4519 }
0x1dcb   : > { %v4521_v28 = vsub.f32 %v4517_v12, %v4520_v26  ;;  %v6278_v26 = vpack.c.bf16 %v4906_v25, %v4905_v24 }
0x1dcd   : > { %v4522_v29 = vmul.f32 1.442695, %v4521_v28  ;;  %v4907_v28 = vld [vmem:[#allocation17 + $0x30] sm:$0xff] }
0x1dce   : > { %v4686_v19 = vpop.xlane.xlu1 %4685 }
0x1dcf   : > { %6536 = vpow2.f32 %v4522_v29  ;;  %v4687_v30 = vsub.f32 %v4683_v6, %v4686_v19  ;;  %v4908_v29 = vld [vmem:[#allocation17 + $0x38] sm:$0xff] }
0x1dd0   : > { %v6281_v19 = vpack.c.bf16 %v4908_v29, %v4907_v28 }
0x1dd1   : > { %v4688_v31 = vmul.f32 1.442695, %v4687_v30  ;;  %v5678_v30 = vld [vmem:[%s8625_s12 + $0x48] sm:$0xff] }
0x1dd2   : > { %v6535_v51 = vpop.eup %6534  ;;  %v4364_v41 = vpop.permute.xlu1 %4363 }
0x1dd3   : > { %6538 = vpow2.f32 %v4688_v31  ;;  %v4358_v32 = vsel %vm1093_vm2, %v6535_v51, 0.0  ;;  %v5679_v31 = vld [vmem:[%s8625_s12 + $0x50] sm:$0xff] }
0x1dd4   : > { %4359 = vadd.xlane.f32.xlu1 %v4358_v32  ;;  %v5680_v32 = vld [vmem:[%s8625_s12 + $0x58] sm:$0xff] }
0x1dd9   : > { %v6537_v33 = vpop.eup %6536 }
0x1dda   : > { %v4524_v34 = vsel %vm1093_vm2, %v6537_v33, 0.0 }
0x1ddb   : > { %4525 = vadd.xlane.f32.xlu0 %v4524_v34  ;;  %v5681_v34 = vld [vmem:[%s8625_s12 + $0x60] sm:$0xff] }
0x1ddd   : > { %v6539_v35 = vpop.eup %6538 }
0x1dde   : > { %v4690_v36 = vsel %vm1093_vm2, %v6539_v35, 0.0 }
0x1ddf   : > { %4691 = vadd.xlane.f32.xlu1 %v4690_v36 }
0x1def   : > { %v4194_v37 = vpop.xlane.xlu0 %4193 }
0x1df0   : > { %6540 = vrcp.f32 %v4194_v37  ;;  %4529 = vrot.lane.b32.xlu1 %v8155_v49, %s8627_s4 }
0x1df1   : > { %4695 = vrot.lane.b32.xlu0 %v8155_v49, %s8620_s9 }
0x1df3   : > { %v4198_v38 = vpop.permute.xlu0 %4197 }
0x1df4   : > { %6113 = vmatpush3.msra.mxu1 %v4198_v38 }
0x1df5   : > { %6122 = vmatprep.subr.mxu1 %v7070_v1 }
0x1dfa   : > { %v6541_v39 = vpop.eup %6540 }
0x1dfb   : > { %v4196_v40 = vmul.f32 %v6541_v39, %v6533_v22 }
0x1dfd   : > { %5114 = vst.msk [vmem:[%s8214_s21] sm:$0xff] %vm1093_vm2, %v4196_v40  ;;  %6115 = vmatmul.mubr.msk.f32.vlgmr.msra.gmra.mrb[42].mxu1 %vm1093_vm2, %v4196_v40 }
0x1dfe   : > { %6123 = vmatpush3.msra.mxu1 %v4364_v41  ;;  %6124 = vmatprep.mubr.msk.f32.mxu1 %vm7069_vm0, %v7070_v1  ;;  %v5673_v41 = vld [vmem:[%s8618_s15 + $0x4] ss:$0 sm:$0xff] }
0x1dff   : > { %6132 = vmatprep.subr.mxu1 %v7070_v1 }
0x1e61   : > { %v4360_v42 = vpop.xlane.xlu1 %4359 }
0x1e62   : > { %6542 = vrcp.f32 %v4360_v42 }
0x1e68   : > { %v4526_v43 = vpop.xlane.xlu0 %4525 }
0x1e69   : > { %6544 = vrcp.f32 %v4526_v43  ;;  %v5674_v43 = vld [vmem:[%s8619_s6 + $0x4] ss:$0 sm:$0xff] }
0x1e6c   : > { %v6543_v44 = vpop.eup %6542  ;;  %v4692_v45 = vpop.xlane.xlu1 %4691 }
0x1e6d   : > { %v4362_v50 = vmul.f32 %v6543_v44, %v6535_v51  ;;  %6546 = vrcp.f32 %v4692_v45  ;;  %v4696_v8 = vpop.permute.xlu0 %4695 }
0x1e6f   : > { %5692 = vst.msk [vmem:[%s8214_s21 + $0x8] sm:$0xff] %vm1093_vm2, %v4362_v50  ;;  %6125 = vmatmul.mubr.msk.f32.vlgmr.msra.gmra.mrb[44].mxu1 %vm1093_vm2, %v4362_v50  ;;  %v5683_v50 = vld [vmem:[%s8625_s12 + $0x70] sm:$0xff] }
0x1e70   : > { %v4530_v47 = vpop.permute.xlu1 %4529  ;;  %6134 = vmatprep.mubr.msk.f32.mxu1 %vm7069_vm0, %v7070_v1 }
0x1e71   : > { %6133 = vmatpush3.msra.mxu1 %v4530_v47  ;;  %v5684_v47 = vld [vmem:[%s8625_s12 + $0x78] sm:$0xff] }
0x1e72   : > { %6142 = vmatprep.subr.mxu1 %v7070_v1 }
0x1e73   : > { %v6545_v48 = vpop.eup %6544 }
0x1e74   : > { %v4528_v49 = vmul.f32 %v6545_v48, %v6537_v33  ;;  %v6287_v33 = vpack.c.bf16 %v5680_v32, %v5679_v31  ;;  %v6293_v48 = vpack.c.bf16 %v5684_v47, %v5683_v50 }
0x1e76   : > { %5694 = vst.msk [vmem:[%s8214_s21 + $0x10] sm:$0xff] %vm1093_vm2, %v4528_v49  ;;  %6135 = vmatmul.mubr.msk.f32.vlgmr.msra.gmra.mrb[46].mxu1 %vm1093_vm2, %v4528_v49  ;;  %v5675_v49 = vld [vmem:[#allocation19 + $0x1] ss:$0 sm:$0xff] }
0x1e77   : > { %v6547_v52 = vpop.eup %6546  ;;  %6143 = vmatpush3.msra.mxu1 %v4696_v8  ;;  %6144 = vmatprep.mubr.msk.f32.mxu1 %vm7069_vm0, %v7070_v1 }
0x1e78   : > { %v4694_v53 = vmul.f32 %v6547_v52, %v6539_v35  ;;  %6277 = vmatprep.subr.bf16.mxu1 %v7068_v0  ;;  %v5682_v35 = vld [vmem:[%s8625_s12 + $0x68] sm:$0xff] }
0x1e79   : > { %v6290_v36 = vpack.c.bf16 %v5682_v35, %v5681_v34 }
0x1e7a   : > { %5696 = vst.msk [vmem:[%s8214_s21 + $0x18] sm:$0xff] %vm1093_vm2, %v4694_v53  ;;  %6145 = vmatmul.mubr.msk.f32.vlgmr.msra.gmra.mrb[48].mxu1 %vm1093_vm2, %v4694_v53 }
0x1e7b   : > { %6166 = vmatprep.mubr.msk.f32.mxu1 %vm7069_vm0, %v7070_v1  ;;  %6279 = vmatpush3.bf16.msra.mxu1 %v6278_v26 }
0x1e7c   : > { %6280 = vmatprep.subr.bf16.mxu1 %v7068_v0 }
0x1e7f   : > { %6282 = vmatpush3.bf16.msra.mxu1 %v6281_v19 }
0x1e80   : > { %6295 = vmatprep.subr.bf16.mxu1 %v7068_v0 }
0x1ed0   : > { %v4269_v54 = vpop.f32.mrb[42].mxu1 }
0x1ed1   : > { %v6116_v55 = vpop.f32.mrb[43].mxu1 }
0x1ed2   : > { %v5685_v55 = vld [vmem:[#allocation20 + $0x1] ss:$0 sm:$0xff] }
0x1f42   : > { %v4435_v61 = vpop.f32.mrb[44].mxu1 }
0x1f43   : > { %4772 = vrot.lane.b32.xlu1 %v4435_v61, %s8622_s24  ;;  %v6126_v62 = vpop.f32.mrb[45].mxu1 }
0x1f49   : > { %v4601_v63 = vpop.f32.mrb[46].mxu1 }
0x1f4a   : > { %4776 = vrot.lane.b32.xlu0 %v4601_v63, %s8623_s27  ;;  %v6136_v2 = vpop.f32.mrb[47].mxu1 }
0x1f4b   : > { %v5127_v2 = vld [vmem:[%s8636_s1] sm:$0xff] }
0x1f4d   : > { %v4767_v4 = vpop.f32.mrb[48].mxu1 }
0x1f4e   : > { %4780 = vrot.lane.b32.xlu1 %v4767_v4, %s8624_s20  ;;  %v6146_v5 = vpop.f32.mrb[49].mxu1  ;;  %v5128_v4 = vld [vmem:[%s8636_s1 + $0x8] sm:$0xff]  ;;  %s5709_s20 = sshll.u32 %s7236_s29, 9 }
0x1f4f   : > { %v6296_v5 = vpack.c.bf16 %v5128_v4, %v5127_v2  ;;  %s8320_s3 = scalar_lea.hbm %s8638_s5, %s5709_s20 }
0x1fb5   : > { %v4773_v7 = vpop.permute.xlu1 %4772 }
0x1fb6   : > { %v4783_v10 = vsel %vm1093_vm2, %v4269_v54, %v4773_v7  ;;  %v5129_v7 = vld [vmem:[%s8636_s1 + $0x10] sm:$0xff] }
0x1fbc   : > { %v4777_v9 = vpop.permute.xlu0 %4776 }
0x1fbd   : > { %v4784_v11 = vsel %vm1768_vm4, %v4783_v10, %v4777_v9  ;;  %v5130_v9 = vld [vmem:[%s8636_s1 + $0x18] sm:$0xff] }
0x1fbe   : > { %v6299_v10 = vpack.c.bf16 %v5130_v9, %v5129_v7 }
0x1fc0   : > { %v4781_v12 = vpop.permute.xlu1 %4780 }
0x1fc1   : > { %v4785_v13 = vsel %vm1770_vm5, %v4784_v11, %v4781_v12 }
0x1fc2   : > { %6156 = vmatmul.mubr.msk.f32.vlgmr.msra.gmra.mrb[36].mxu0 %vm1015_vm1, %v4785_v13 }
0x1fc3   : > { %6185 = vmatprep.mubr.msk.f32.mxu0 %vm7069_vm0, %v7070_v1 }
0x2095   : > { %v4868_v15 = vpop.f32.mrb[36].mxu0 }
0x2096   : > { %v4869_v6 = vadd.f32 %v5669_v14, %v4868_v15  ;;  %v6157_v16 = vpop.f32.mrb[37].mxu0  ;;  %v5689_v14 = vld [vmem:[%s8618_s15 + $0x5] ss:$0 sm:$0xff] }
0x2098   : > { %v4876_v17 = vadd.f32 %v4869_v6, %v8149_v46  ;;  %v5677_v46 = vld [vmem:[%s8625_s12 + $0x40] sm:$0xff] }
0x2099   : > { %v6284_v51 = vpack.c.bf16 %v5678_v30, %v5677_v46  ;;  %v5690_v6 = vld [vmem:[%s8619_s6 + $0x5] ss:$0 sm:$0xff] }
0x209a   : > { %v4877_v18 = vsel %vm1015_vm1, %v4876_v17, 0.0 }
0x209b   : > { %4878 = vadd.xlane.f32.xlu0 %v4877_v18  ;;  %6285 = vmatpush3.bf16.msra.mxu0 %v6284_v51 }
0x209c   : > { %6286 = vmatprep.subr.bf16.mxu0 %v7068_v0 }
0x209f   : > { %6288 = vmatpush3.bf16.msra.mxu0 %v6287_v33 }
0x20a0   : > { %6289 = vmatprep.subr.bf16.mxu0 %v7068_v0 }
0x20a3   : > { %6291 = vmatpush3.bf16.msra.mxu0 %v6290_v36 }
0x20a4   : > { %6292 = vmatprep.subr.bf16.mxu0 %v7068_v0 }
0x20a7   : > { %6294 = vmatpush3.bf16.msra.mxu0 %v6293_v48 }
0x2128   : > { %v4879_v20 = vpop.xlane.xlu0 %4878 }
0x2129   : > { %v4880_v21 = vmul.f32 0.03125, %v4879_v20 }
0x212b   : > { %v4881_v22 = vsub.f32 %v4876_v17, %v4880_v21 }
0x212d   : > { %v4882_v23 = vmul.f32 %v4881_v22, %v4881_v22 }
0x212f   : > { %v4883_v27 = vsel %vm1015_vm1, %v4882_v23, 0.0 }
0x2130   : > { %4884 = vadd.xlane.f32.xlu1 %v4883_v27 }
0x21bd   : > { %v4885_v37 = vpop.xlane.xlu1 %4884 }
0x21be   : > { %v4886_v38 = vmul.f32 0.03125, %v4885_v37 }
0x21c0   : > { %v4887_v39 = vadd.f32 1e-05, %v4886_v38 }
0x21c2   : > { %6548 = vrsqrt.f32 %v4887_v39 }
0x21cc   : > { %v6549_v40 = vpop.eup %6548 }
0x21cd   : > { %v4889_v42 = vmul.f32 %v6549_v40, %v4881_v22 }
0x21cf   : > { %v4896_v44 = vmul.f32 %v5673_v41, %v4889_v42 }
0x21d1   : > { %v4903_v45 = vadd.f32 %v5674_v43, %v4896_v44 }
0x21d3   : > { %6167 = vmatmul.mubr.msk.f32.vlgmr.msra.gmra.mrb[50].mxu1 %vm1015_vm1, %v4903_v45 }
0x21d4   : > { %6196 = vmatprep.mubr.msk.f32.mxu1 %vm7069_vm0, %v7070_v1  ;;  %6297 = vmatpush3.bf16.msra.mxu1 %v6296_v5 }
0x21d5   : > { %6298 = vmatprep.subr.bf16.mxu1 %v7068_v0 }
0x21d8   : > { %6300 = vmatpush3.bf16.msra.mxu1 %v6299_v10 }
0x22a6   : > { %v4986_v8 = vpop.f32.mrb[50].mxu1 }
0x22a7   : > { %v4987_v52 = vadd.f32 %v5675_v49, %v4986_v8  ;;  %v6168_v53 = vpop.f32.mrb[51].mxu1 }
0x22a9   : > { %v4990_v54 = vmax.f32 %v4987_v52, 0.0 }
0x22ab   : > { %6186 = vmatmul.mubr.msk.f32.vlgmr.msra.gmra.mrb[38].mxu0 %vm2949_vm8, %v4990_v54 }
0x237e   : > { %v5077_v56 = vpop.f32.mrb[38].mxu0 }
0x237f   : > { %v5078_v1 = vadd.f32 %v5685_v55, %v5077_v56  ;;  %v6187_v57 = vpop.f32.mrb[39].mxu0 }
0x2381   : > { %v5085_v58 = vadd.f32 %v5078_v1, %v4903_v45 }
0x2383   : > { %v5086_v3 = vsel %vm1015_vm1, %v5085_v58, 0.0 }
0x2384   : > { %5087 = vadd.xlane.f32.xlu0 %v5086_v3 }
0x2411   : > { %v5088_v59 = vpop.xlane.xlu0 %5087 }
0x2412   : > { %v5089_v60 = vmul.f32 0.03125, %v5088_v59 }
0x2414   : > { %v5090_v61 = vsub.f32 %v5085_v58, %v5089_v60 }
0x2416   : > { %v5091_v62 = vmul.f32 %v5090_v61, %v5090_v61 }
0x2418   : > { %v5092_v63 = vsel %vm1015_vm1, %v5091_v62, 0.0 }
0x2419   : > { %5093 = vadd.xlane.f32.xlu0 %v5092_v63 }
0x24a6   : > { %v5094_v11 = vpop.xlane.xlu0 %5093 }
0x24a7   : > { %v5095_v12 = vmul.f32 0.03125, %v5094_v11 }
0x24a9   : > { %v5096_v13 = vadd.f32 1e-05, %v5095_v12 }
0x24ab   : > { %6550 = vrsqrt.f32 %v5096_v13 }
0x24b5   : > { %v6551_v0 = vpop.eup %6550 }
0x24b6   : > { %v5098_v15 = vmul.f32 %v6551_v0, %v5090_v61 }
0x24b8   : > { %v5105_v16 = vmul.f32 %v5689_v14, %v5098_v15 }
0x24ba   : > { %v5112_v17 = vadd.f32 %v5690_v6, %v5105_v16 }
0x24bc   : > { %6197 = vmatmul.mubr.msk.f32.vlgmr.msra.gmra.mrb[52].mxu1 %vm1015_vm1, %v5112_v17 }
0x24bd   : > { %6909 = shalt.err (!%p6906_p11)
}
0x24be   : > { %s6910_s10 = scalar_lea.hbm %s8320_s3, 512  ;;  %s6914_s4 = scalar_lea.hbm %s8639_s14, 1024 }
0x24bf   : > { %p6911_p1 = scmp.ne.s32.totalorder %s8320_s3, %s6910_s10  ;;  %p6915_p7 = scmp.lt.u32.totalorder %s8320_s3, %s8639_s14 }
0x24c0   : > { %p6916_p2 = scmp.lt.u32.totalorder %s6914_s4, %s6910_s10  ;;  %p6918_p0 = scmp.lt.u32.totalorder %s6910_s10, %s8320_s3 }
0x24c1   : > { %p6912_p4 = pnand %p6911_p1, %p8640_p12 }
0x24c2   : > { %p6917_p13 = por %p6916_p2, %p6915_p7 }
0x24c3   : > { %p6913_p10 = pneg %p6912_p4 }
0x24c4   : > { %p6919_p3 = por %p6918_p0, %p6917_p13 }
0x24c6   : > { %p6920_p6 = pnand %p6919_p3, %p6913_p10 }
0x24c8   : > { %6923 = shalt.err (!%p6920_p6)
}
0x24c9   : > { %s7087_s30 = smov 128   ;;  %s8641_s8 = sld [smem:[#allocation66_spill]] }
0x24ca   : > { %6342 = dma.vmem_to_hbm [thread:$0]  (%p8640_p12), %s8323_s17, 512, %s8320_s3, %s5218_s19, %s7087_s30, %s7087_s30, %s8622_s24  }
0x24cb   : > { %s5265_s9 = sshll.u32 %s8214_s21, 4  ;;  %s7088_s4 = smov [#allocation25]   ;;  %s8360_s9 = int_to_ptr.vmem [resolvable:$true] %s5265_s9 }
0x24cc   : > { %s6924_s27 = scalar_lea.vmem %s8360_s9, 512  ;;  %s6928_s18 = sshll.u32 %s7088_s4, 4  ;;  %s6929_s18 = int_to_ptr.vmem [resolvable:$false] %s6928_s18 }
0x24cd   : > { %p6925_p9 = scmp.ne.s32.totalorder %s8360_s9, %s6924_s27  ;;  %s6930_s3 = scalar_lea.vmem %s6929_s18, 1024 }
0x24ce   : > { %p6931_p11 = scmp.lt.s32.totalorder %s8360_s9, %s6929_s18  ;;  %p6932_p1 = scmp.lt.s32.totalorder %s6930_s3, %s6924_s27 }
0x24cf   : > { %s8357_s10 = scalar_lea.hbm %s8641_s8, %s5709_s20  ;;  %p6926_p5 = pnand %p6925_p9, %p8640_p12 }
0x24d0   : > { %p6933_p4 = por %p6932_p1, %p6931_p11 }
0x24d1   : > { %p6927_p8 = pneg %p6926_p5 }
0x24d3   : > { %p6934_p10 = pnand %p6933_p4, %p6927_p8 }
0x24d5   : > { %6937 = shalt.err (!%p6934_p10)
}
0x24d6   : > { %s6938_s21 = scalar_lea.hbm %s8357_s10, 512  ;;  %s6942_s5 = scalar_lea.hbm %s8641_s8, 1024 }
0x24d7   : > { %p6939_p7 = scmp.ne.s32.totalorder %s8357_s10, %s6938_s21  ;;  %p6943_p0 = scmp.lt.u32.totalorder %s8357_s10, %s8641_s8 }
0x24d8   : > { %p6944_p3 = scmp.lt.u32.totalorder %s6942_s5, %s6938_s21  ;;  %p6946_p9 = scmp.lt.u32.totalorder %s6938_s21, %s8357_s10 }
0x24d9   : > { %p6940_p2 = pnand %p6939_p7, %p8640_p12 }
0x24da   : > { %p6945_p6 = por %p6944_p3, %p6943_p0 }
0x24db   : > { %p6941_p13 = pneg %p6940_p2 }
0x24dc   : > { %p6947_p5 = por %p6946_p9, %p6945_p6 }
0x24de   : > { %p6948_p8 = pnand %p6947_p5, %p6941_p13 }
0x24e0   : > { %6951 = shalt.err (!%p6948_p8)
}
0x24e1   : > { %6343 = dma.vmem_to_hbm [thread:$0]  (%p8640_p12), %s8360_s9, 512, %s8357_s10, %s5218_s19, %s7087_s30, %s7087_s30, %s8622_s24  }
0x24e2   : > { %s8642_s18 = sld [smem:[#allocation63_spill]]  ;;  %s5702_s3 = sshll.u32 %s7236_s29, 7 }
0x24e3   : > { %s977_s21 = scalar_lea.vmem [#allocation22], %s7621_s23  ;;  %s8643_s0 = sld [smem:[#allocation64_spill]] }
0x24e4   : > { %s5236_s20 = sshll.u32 %s977_s21, 4  ;;  %s5213_s24 = scalar_lea.sflag [#allocation4], %s7618_s25  ;;  %s8398_s20 = int_to_ptr.vmem [resolvable:$true] %s5236_s20 }
0x24e5   : > { %s6952_s19 = scalar_lea.vmem %s8398_s20, 128  ;;  %s7089_s29 = smov [#allocation22]  }
0x24e6   : > { %p6953_p11 = scmp.ne.s32.totalorder %s8398_s20, %s6952_s19  ;;  %s6956_s23 = sshll.u32 %s7089_s29, 4  ;;  %s6957_s23 = int_to_ptr.vmem [resolvable:$false] %s6956_s23 }
0x24e7   : > { %s6958_s30 = scalar_lea.vmem %s6957_s23, 256  ;;  %p6959_p10 = scmp.lt.s32.totalorder %s8398_s20, %s6957_s23 }
0x24e8   : > { %v5697_v18 = vld [vmem:[%s8642_s18] ss:$0 sm:$0xff]  ;;  %p6954_p1 = pnand %p6953_p11, %p8640_p12  ;;  %p6960_p7 = scmp.lt.s32.totalorder %s6958_s30, %s6952_s19 }
0x24e9   : > { %s8396_s7 = scalar_lea.hbm %s8643_s0, %s5702_s3 }
0x24ea   : > { %p6955_p4 = pneg %p6954_p1  ;;  %p6961_p2 = por %p6960_p7, %p6959_p10 }
0x24ec   : > { %p6962_p13 = pnand %p6961_p2, %p6955_p4 }
0x258f   : > { %v5207_v20 = vpop.f32.mrb[52].mxu1 }
0x2590   : > { %v5208_v21 = vadd.f32 %v5697_v18, %v5207_v20  ;;  %v6198_v22 = vpop.f32.mrb[53].mxu1 }
0x2592   : > { %5211 = vst [vmem:[%s977_s21] sm:$0xff] %v5208_v21 }
0x2593   : > { %6965 = shalt.err (!%p6962_p13)
}
0x2594   : > { %s6966_s25 = scalar_lea.hbm %s8396_s7, 128  ;;  %s6970_s13 = scalar_lea.hbm %s8643_s0, 256 }
0x2595   : > { %p6967_p0 = scmp.ne.s32.totalorder %s8396_s7, %s6966_s25  ;;  %p6971_p9 = scmp.lt.u32.totalorder %s8396_s7, %s8643_s0 }
0x2596   : > { %p6972_p5 = scmp.lt.u32.totalorder %s6970_s13, %s6966_s25  ;;  %p6974_p11 = scmp.lt.u32.totalorder %s6966_s25, %s8396_s7 }
0x2597   : > { %p6968_p3 = pnand %p6967_p0, %p8640_p12 }
0x2598   : > { %p6973_p8 = por %p6972_p5, %p6971_p9 }
0x2599   : > { %p6969_p6 = pneg %p6968_p3 }
0x259a   : > { %p6975_p1 = por %p6974_p11, %p6973_p8 }
0x259c   : > { %p6976_p4 = pnand %p6975_p1, %p6969_p6 }
0x259e   : > { %6979 = shalt.err (!%p6976_p4)
}
0x259f   : > { %6341 = dma.vmem_to_hbm [thread:$0]  (%p8640_p12), %s8398_s20, 128, %s8396_s7, %s5213_s24  }
0x25a0 PF: > { %s8644_s18 = sld [smem:[#allocation36_spill]]  ;;  %s8645_s3 = sld [smem:[#allocation41_spill]] }
0x25a1   : > { %p8647_p7 = scmp.ge.s32.totalorder %s7050_s28, 2 }
0x25a6   : > { %s5280_s21 = sand.u32 1, %s8644_s18   ;;  %p8646_p10 = scmp.ne.s32.totalorder %s8645_s3, 0 }
0x25a7   : > { %s5281_s17 = scalar_lea.sflag [#allocation4], %s5280_s21 }
0x25a8   : > { %p6386_p2 = pnand %p8647_p7, %p8646_p10 }
0x25aa   : > { %7029 = dma.done.wait (!%p6386_p2), %s5281_s17, 128  }
0x25ab   : > { %7031 = vsyncadd (!%p6386_p2), %s5281_s17, 4294967168  ;;  %s8648_s5 = sadd.s32 4294967294, %s7050_s28  }
0x25ac   : > { %s5289_s19 = sand.u32 1, %s8648_s5  }
0x25ad   : > { %s5290_s29 = scalar_lea.sflag [#allocation24], %s5289_s19 }
0x25ae   : > { %7033 = dma.done.wait (!%p6386_p2), %s5290_s29, 1024  }
0x25af   : > { %7035 = vsyncadd (!%p6386_p2), %s5290_s29, 4294966272  ;;  %s8649_s28 = sld [smem:[#allocation38_spill]]  ;;  %s8650_s16 = sld [smem:[#allocation37_spill]] }
0x25b0   : > { %s8651_s27 = sld [smem:[#allocation39_spill]]  ;;  %s8652_s5 = smov %s7042_s26 }
0x25b5   : > { %p51_p12 = scmp.ge.s32.totalorder %s8649_s28, 4   ;;  %s8653_s26 = smov %s8650_s16 }
0x25b7   :  { %53 = sbr.rel (!%p51_p12) target bundleno = 41 (0x29), region = 284 }
0x25be   :  { %5304 = vsyncpa [#allocation3], 1 }
0x25bf   :  { %5306 = vsyncpa [#allocation3 + $0x1], 1 }
0x25c0   :  { %5307 = vsyncpa [#allocation6], 1 }
0x25c1   :  { %5309 = vsyncpa [#allocation6 + $0x1], 1 }
0x25c2   :  { %5310 = vsyncpa [#allocation9], 1 }
0x25c3   :  { %5312 = vsyncpa [#allocation9 + $0x1], 1 }
0x25c4   :  { %5313 = vsyncpa [#allocation12], 1 }
0x25c5   :  { %5314 = vsyncpa [#allocation15], 1 }
0x25c6   :  { %5315 = vsyncpa [#allocation18], 1 }
0x25c7   :  { %5316 = vsyncpa [#allocation21], 1 }
0x25c8   :  { %5317 = vsyncpa [#allocation4], 1 }
0x25c9   :  { %5319 = vsyncpa [#allocation4 + $0x1], 1 }
0x25ca   :  { %5320 = vsyncpa [#allocation24], 1 }
0x25cb   :  { %5322 = vsyncpa [#allocation24 + $0x1], 1 }

</bundles_post_ra>
